<compile_context>
chip_gen: v5e
topology: v5e:2x2
jax: 0.10.0
libtpu: 0.0.40
codegen_flags: <defaults>
</compile_context>

<pallas_src>
import jax
import jax.numpy as jnp
from jax.experimental import pallas as pl
from jax.experimental.pallas import tpu as pltpu

HIDDEN = 128
NUM_CLASSES = 2
NEG_SLOPE = 0.01            # PyTorch nn.LeakyReLU default
LANE = 128                  # lane-dense padded width for the fc6 output
PER_CLIENT = HIDDEN // 4    # 32 features contributed by each client

_LAYER_DIMS = [
    (HIDDEN, HIDDEN),       # fc1
    (HIDDEN, 1024),         # fc2
    (1024, 512),            # fc3
    (512, 256),             # fc4
    (256, 128),             # fc5
    (128, NUM_CLASSES),     # fc6 (padded to LANE columns in storage)
]


def _leaky_relu(y):
    # One mul + one max (valid for 0 <= slope <= 1) instead of cmp+mul+select.
    return jnp.maximum(y, NEG_SLOPE * y)


def _mlp_kernel(x1_ref, x2_ref, x3_ref, x4_ref,
                w1_ref, b1_ref, w2_ref, b2_ref, w3_ref, b3_ref,
                w4_ref, b4_ref, w5_ref, b5_ref, w6_ref, b6_ref,
                out5_ref, out6_ref):
    """Fused concat + 6-layer MLP on one (tm, *) batch tile."""

    # --- fc1: torch.cat(dim=1) realized as four K=32 partial MXU passes ----
    def fc1_part(x_ref, lo):
        return jnp.dot(x_ref[...].astype(jnp.bfloat16),
                       w1_ref[lo:lo + PER_CLIENT, :],      # static ref slice
                       preferred_element_type=jnp.float32)

    y1 = (fc1_part(x1_ref, 0)
          + fc1_part(x2_ref, PER_CLIENT)
          + fc1_part(x3_ref, 2 * PER_CLIENT)
          + fc1_part(x4_ref, 3 * PER_CLIENT))
    h = _leaky_relu(y1 + b1_ref[...]).astype(jnp.bfloat16)

    # --- fc2..fc5: bf16 MXU pass, f32 bias + LeakyReLU epilogue -------------
    def layer_f32(h_bf16, w_ref, b_ref):
        y = jnp.dot(h_bf16, w_ref[...], preferred_element_type=jnp.float32)
        return _leaky_relu(y + b_ref[...])                  # f32 result

    h = layer_f32(h, w2_ref, b2_ref).astype(jnp.bfloat16)
    h = layer_f32(h, w3_ref, b3_ref).astype(jnp.bfloat16)
    h = layer_f32(h, w4_ref, b4_ref).astype(jnp.bfloat16)
    h5 = layer_f32(h, w5_ref, b5_ref)                       # keep f32: out5

    # --- fc6 (no activation), lane-dense 128 padded columns -----------------
    h6 = jnp.dot(h5.astype(jnp.bfloat16), w6_ref[...],
                 preferred_element_type=jnp.float32) + b6_ref[...]

    out5_ref[...] = h5
    out6_ref[...] = h6


def _round_up(n, m):
    return ((n + m - 1) // m) * m


@jax.jit
def server_resnet_cat_4clients_forward(x1, x2, x3, x4, params):
    """params: w1..w6 as (in, out) bf16 (w6/b6 zero-padded to 128 cols),
    b1..b6 as (1, out) f32.  Returns (out5, out6) matching the PyTorch module."""
    orig_batch, per_client = x1.shape

    # Pad only up to sublane granularity (multiple of 8); ragged last tiles
    # are handled by Pallas masking instead of a full wrapper-side pad copy.
    batch = _round_up(max(orig_batch, 8), 8)
    if batch != orig_batch:
        pad = ((0, batch - orig_batch), (0, 0))
        x1, x2, x3, x4 = (jnp.pad(v, pad) for v in (x1, x2, x3, x4))

    # Tile choice: one tile for tiny batches; otherwise >= 2 grid steps so the
    # "parallel" axis can shard across v7x's two TensorCores, capped at 512
    # rows to amortize per-step overhead (v6e) within v7x's VMEM budget.
    if batch < 16:
        tm = batch
    else:
        tm = min(512, _round_up(pl.cdiv(batch, 2), 8))
    grid = (pl.cdiv(batch, tm),)

    x_spec = pl.BlockSpec((tm, per_client), lambda i: (i, 0))

    operands = [x1, x2, x3, x4]
    param_specs = []
    for li in range(1, 7):
        w = params[f"w{li}"]
        b = params[f"b{li}"]
        operands += [w, b]
        # Constant block index -> weights/biases stay resident in VMEM.
        param_specs += [pl.BlockSpec(w.shape, lambda i: (0, 0)),
                        pl.BlockSpec(b.shape, lambda i: (0, 0))]

    out_spec = pl.BlockSpec((tm, LANE), lambda i: (i, 0))

    # Advisory cost hint for XLA's scheduler.
    mac = sum(params[f"w{li}"].shape[0] * params[f"w{li}"].shape[1]
              for li in range(1, 7))
    weight_bytes = sum(int(params[f"w{li}"].size) * params[f"w{li}"].dtype.itemsize
                       + int(params[f"b{li}"].size) * 4 for li in range(1, 7))
    bytes_accessed = (weight_bytes
                      + 4 * batch * per_client * 4      # x1..x4
                      + 2 * batch * LANE * 4)           # out5, out6 (padded)
    cost = pl.CostEstimate(flops=2 * batch * mac, transcendentals=0,
                           bytes_accessed=bytes_accessed)

    out5, out6p = pl.pallas_call(
        _mlp_kernel,
        out_shape=(jax.ShapeDtypeStruct((batch, HIDDEN), jnp.float32),
                   jax.ShapeDtypeStruct((batch, LANE), jnp.float32)),
        grid=grid,
        in_specs=[x_spec] * 4 + param_specs,
        out_specs=(out_spec, out_spec),
        compiler_params=pltpu.CompilerParams(
            dimension_semantics=("parallel",),
            vmem_limit_bytes=32 << 20),
        cost_estimate=cost,
    )(*operands)

    return out5[:orig_batch], out6p[:orig_batch, :NUM_CLASSES]


def init_params(key, hidden=HIDDEN, num_classes=NUM_CLASSES):
    """nn.Linear-style U(-1/sqrt(fan_in), 1/sqrt(fan_in)) init.

    Weights stored transposed to (in, out) in bf16; biases (1, out) in f32.
    fc6's weight/bias are zero-padded to LANE output columns (lane-dense).
    Note: bf16 weight storage is an intentional precision/bandwidth trade-off
    vs the f32 PyTorch module (matmuls still accumulate in f32)."""
    dims = list(_LAYER_DIMS)
    dims[0] = (hidden, hidden)
    dims[-1] = (128, num_classes)
    params = {}
    keys = jax.random.split(key, 2 * len(dims))
    for i, (fan_in, fan_out) in enumerate(dims):
        bound = 1.0 / (fan_in ** 0.5)
        w = jax.random.uniform(keys[2 * i], (fan_in, fan_out),
                               jnp.float32, -bound, bound)
        b = jax.random.uniform(keys[2 * i + 1], (1, fan_out),
                               jnp.float32, -bound, bound)
        if i == len(dims) - 1 and fan_out < LANE:
            w = jnp.pad(w, ((0, 0), (0, LANE - fan_out)))
            b = jnp.pad(b, ((0, 0), (0, LANE - fan_out)))
        params[f"w{i + 1}"] = w.astype(jnp.bfloat16)
        params[f"b{i + 1}"] = b                 # biases stay f32
    return params


if __name__ == "__main__":
    key = jax.random.PRNGKey(0)
    pkey, k1, k2, k3, k4 = jax.random.split(key, 5)

    params = init_params(pkey)

    # Each of the 4 clients contributes hidden/4 = 32 features; batch = 8.
    batch = 8
    x1 = jax.random.normal(k1, (batch, PER_CLIENT), jnp.float32)
    x2 = jax.random.normal(k2, (batch, PER_CLIENT), jnp.float32)
    x3 = jax.random.normal(k3, (batch, PER_CLIENT), jnp.float32)
    x4 = jax.random.normal(k4, (batch, PER_CLIENT), jnp.float32)

    out5, out6 = server_resnet_cat_4clients_forward(x1, x2, x3, x4, params)
    jax.block_until_ready((out5, out6))

    # Pure-JAX reference with identical numerics (bf16 weights, f32 accumulate).
    def ref_forward(a1, a2, a3, a4, p):
        x = jnp.concatenate([a1, a2, a3, a4], axis=1)
        h = x
        for i in range(1, 6):
            y = jnp.dot(h.astype(jnp.bfloat16), p[f"w{i}"],
                        preferred_element_type=jnp.float32) + p[f"b{i}"]
            h = jnp.maximum(y, NEG_SLOPE * y)
        h6 = jnp.dot(h.astype(jnp.bfloat16), p["w6"],
                     preferred_element_type=jnp.float32) + p["b6"]
        return h, h6[:, :NUM_CLASSES]

    r5, r6 = ref_forward(x1, x2, x3, x4, params)
    assert out5.shape == (batch, HIDDEN) and out6.shape == (batch, NUM_CLASSES)
    assert jnp.allclose(out5, r5, atol=2e-3, rtol=2e-3), \
        float(jnp.max(jnp.abs(out5 - r5)))
    assert jnp.allclose(out6, r6, atol=2e-3, rtol=2e-3), \
        float(jnp.max(jnp.abs(out6 - r6)))

    print("KERNEL_OK")
</pallas_src>

<mosaic_0001>
module attributes {stable_mosaic.version = 11 : i64} {
  func.func @_mlp_kernel(%arg0: i32, %arg1: memref<8x32xf32, #tpu.memory_space<vmem>>, %arg2: memref<8x32xf32, #tpu.memory_space<vmem>>, %arg3: memref<8x32xf32, #tpu.memory_space<vmem>>, %arg4: memref<8x32xf32, #tpu.memory_space<vmem>>, %arg5: memref<128x128xbf16, #tpu.memory_space<vmem>>, %arg6: memref<1x128xf32, #tpu.memory_space<vmem>>, %arg7: memref<128x1024xbf16, #tpu.memory_space<vmem>>, %arg8: memref<1x1024xf32, #tpu.memory_space<vmem>>, %arg9: memref<1024x512xbf16, #tpu.memory_space<vmem>>, %arg10: memref<1x512xf32, #tpu.memory_space<vmem>>, %arg11: memref<512x256xbf16, #tpu.memory_space<vmem>>, %arg12: memref<1x256xf32, #tpu.memory_space<vmem>>, %arg13: memref<256x128xbf16, #tpu.memory_space<vmem>>, %arg14: memref<1x128xf32, #tpu.memory_space<vmem>>, %arg15: memref<128x128xbf16, #tpu.memory_space<vmem>>, %arg16: memref<1x128xf32, #tpu.memory_space<vmem>>, %arg17: memref<8x128xf32, #tpu.memory_space<vmem>>, %arg18: memref<8x128xf32, #tpu.memory_space<vmem>>) attributes {dimension_semantics = [#tpu.dimension_semantics<parallel>], iteration_bounds = array<i64: 1>, scalar_prefetch = 0 : i64, scratch_operands = 0 : i64, tpu.core_type = #tpu.core_type<tc>, window_params = [{transform_indices = @transform_0, window_bounds = array<i64: 8, 32>}, {transform_indices = @transform_1, window_bounds = array<i64: 8, 32>}, {transform_indices = @transform_2, window_bounds = array<i64: 8, 32>}, {transform_indices = @transform_3, window_bounds = array<i64: 8, 32>}, {pipeline_mode = #tpu.pipeline_mode<synchronous>, transform_indices = @transform_4, window_bounds = array<i64: 128, 128>}, {pipeline_mode = #tpu.pipeline_mode<synchronous>, transform_indices = @transform_5, window_bounds = array<i64: 1, 128>}, {pipeline_mode = #tpu.pipeline_mode<synchronous>, transform_indices = @transform_6, window_bounds = array<i64: 128, 1024>}, {pipeline_mode = #tpu.pipeline_mode<synchronous>, transform_indices = @transform_7, window_bounds = array<i64: 1, 1024>}, {pipeline_mode = #tpu.pipeline_mode<synchronous>, transform_indices = @transform_8, window_bounds = array<i64: 1024, 512>}, {pipeline_mode = #tpu.pipeline_mode<synchronous>, transform_indices = @transform_9, window_bounds = array<i64: 1, 512>}, {pipeline_mode = #tpu.pipeline_mode<synchronous>, transform_indices = @transform_10, window_bounds = array<i64: 512, 256>}, {pipeline_mode = #tpu.pipeline_mode<synchronous>, transform_indices = @transform_11, window_bounds = array<i64: 1, 256>}, {pipeline_mode = #tpu.pipeline_mode<synchronous>, transform_indices = @transform_12, window_bounds = array<i64: 256, 128>}, {pipeline_mode = #tpu.pipeline_mode<synchronous>, transform_indices = @transform_13, window_bounds = array<i64: 1, 128>}, {pipeline_mode = #tpu.pipeline_mode<synchronous>, transform_indices = @transform_14, window_bounds = array<i64: 128, 128>}, {pipeline_mode = #tpu.pipeline_mode<synchronous>, transform_indices = @transform_15, window_bounds = array<i64: 1, 128>}, {transform_indices = @transform_16, window_bounds = array<i64: 8, 128>}, {transform_indices = @transform_17, window_bounds = array<i64: 8, 128>}]} {
    %c0 = arith.constant 0 : index
    %c0_0 = arith.constant 0 : index
    %0 = vector.load %arg1[%c0, %c0_0] : memref<8x32xf32, #tpu.memory_space<vmem>>, vector<8x32xf32>
    %1 = arith.truncf %0 : vector<8x32xf32> to vector<8x32xbf16>
    %c0_1 = arith.constant 0 : index
    %c0_2 = arith.constant 0 : index
    %2 = vector.load %arg5[%c0_1, %c0_2] : memref<128x128xbf16, #tpu.memory_space<vmem>>, vector<32x128xbf16>
    %cst = arith.constant dense<0.000000e+00> : vector<8x128xf32>
    %3 = tpu.matmul %1, %2, %cst {dimension_numbers = #tpu.dot_dimension_numbers<[1], [0], [0], [1], [0, 0, 1, 1], [], []>} : vector<8x32xbf16>, vector<32x128xbf16>, vector<8x128xf32> -> vector<8x128xf32>
    %c0_3 = arith.constant 0 : index
    %c0_4 = arith.constant 0 : index
    %4 = vector.load %arg2[%c0_3, %c0_4] : memref<8x32xf32, #tpu.memory_space<vmem>>, vector<8x32xf32>
    %5 = arith.truncf %4 : vector<8x32xf32> to vector<8x32xbf16>
    %c32 = arith.constant 32 : index
    %c0_5 = arith.constant 0 : index
    %6 = vector.load %arg5[%c32, %c0_5] : memref<128x128xbf16, #tpu.memory_space<vmem>>, vector<32x128xbf16>
    %cst_6 = arith.constant dense<0.000000e+00> : vector<8x128xf32>
    %7 = tpu.matmul %5, %6, %cst_6 {dimension_numbers = #tpu.dot_dimension_numbers<[1], [0], [0], [1], [0, 0, 1, 1], [], []>} : vector<8x32xbf16>, vector<32x128xbf16>, vector<8x128xf32> -> vector<8x128xf32>
    %8 = arith.addf %3, %7 : vector<8x128xf32>
    %c0_7 = arith.constant 0 : index
    %c0_8 = arith.constant 0 : index
    %9 = vector.load %arg3[%c0_7, %c0_8] : memref<8x32xf32, #tpu.memory_space<vmem>>, vector<8x32xf32>
    %10 = arith.truncf %9 : vector<8x32xf32> to vector<8x32xbf16>
    %c64 = arith.constant 64 : index
    %c0_9 = arith.constant 0 : index
    %11 = vector.load %arg5[%c64, %c0_9] : memref<128x128xbf16, #tpu.memory_space<vmem>>, vector<32x128xbf16>
    %cst_10 = arith.constant dense<0.000000e+00> : vector<8x128xf32>
    %12 = tpu.matmul %10, %11, %cst_10 {dimension_numbers = #tpu.dot_dimension_numbers<[1], [0], [0], [1], [0, 0, 1, 1], [], []>} : vector<8x32xbf16>, vector<32x128xbf16>, vector<8x128xf32> -> vector<8x128xf32>
    %13 = arith.addf %8, %12 : vector<8x128xf32>
    %c0_11 = arith.constant 0 : index
    %c0_12 = arith.constant 0 : index
    %14 = vector.load %arg4[%c0_11, %c0_12] : memref<8x32xf32, #tpu.memory_space<vmem>>, vector<8x32xf32>
    %15 = arith.truncf %14 : vector<8x32xf32> to vector<8x32xbf16>
    %c96 = arith.constant 96 : index
    %c0_13 = arith.constant 0 : index
    %16 = vector.load %arg5[%c96, %c0_13] : memref<128x128xbf16, #tpu.memory_space<vmem>>, vector<32x128xbf16>
    %cst_14 = arith.constant dense<0.000000e+00> : vector<8x128xf32>
    %17 = tpu.matmul %15, %16, %cst_14 {dimension_numbers = #tpu.dot_dimension_numbers<[1], [0], [0], [1], [0, 0, 1, 1], [], []>} : vector<8x32xbf16>, vector<32x128xbf16>, vector<8x128xf32> -> vector<8x128xf32>
    %18 = arith.addf %13, %17 : vector<8x128xf32>
    %c0_15 = arith.constant 0 : index
    %c0_16 = arith.constant 0 : index
    %19 = vector.load %arg6[%c0_15, %c0_16] : memref<1x128xf32, #tpu.memory_space<vmem>>, vector<1x128xf32>
    %20 = vector.broadcast %19 : vector<1x128xf32> to vector<8x128xf32>
    %21 = arith.addf %18, %20 : vector<8x128xf32>
    %cst_17 = arith.constant 0.00999999977 : f32
    %22 = vector.broadcast %cst_17 : f32 to vector<8x128xf32>
    %23 = arith.mulf %22, %21 : vector<8x128xf32>
    %24 = arith.maximumf %21, %23 : vector<8x128xf32>
    %25 = arith.truncf %24 : vector<8x128xf32> to vector<8x128xbf16>
    %c0_18 = arith.constant 0 : index
    %c0_19 = arith.constant 0 : index
    %26 = vector.load %arg7[%c0_18, %c0_19] : memref<128x1024xbf16, #tpu.memory_space<vmem>>, vector<128x1024xbf16>
    %cst_20 = arith.constant dense<0.000000e+00> : vector<8x1024xf32>
    %27 = tpu.matmul %25, %26, %cst_20 {dimension_numbers = #tpu.dot_dimension_numbers<[1], [0], [0], [1], [0, 0, 1, 1], [], []>} : vector<8x128xbf16>, vector<128x1024xbf16>, vector<8x1024xf32> -> vector<8x1024xf32>
    %c0_21 = arith.constant 0 : index
    %c0_22 = arith.constant 0 : index
    %28 = vector.load %arg8[%c0_21, %c0_22] : memref<1x1024xf32, #tpu.memory_space<vmem>>, vector<1x1024xf32>
    %29 = vector.broadcast %28 : vector<1x1024xf32> to vector<8x1024xf32>
    %30 = arith.addf %27, %29 : vector<8x1024xf32>
    %cst_23 = arith.constant 0.00999999977 : f32
    %31 = vector.broadcast %cst_23 : f32 to vector<8x1024xf32>
    %32 = arith.mulf %31, %30 : vector<8x1024xf32>
    %33 = arith.maximumf %30, %32 : vector<8x1024xf32>
    %34 = arith.truncf %33 : vector<8x1024xf32> to vector<8x1024xbf16>
    %c0_24 = arith.constant 0 : index
    %c0_25 = arith.constant 0 : index
    %35 = vector.load %arg9[%c0_24, %c0_25] : memref<1024x512xbf16, #tpu.memory_space<vmem>>, vector<1024x512xbf16>
    %cst_26 = arith.constant dense<0.000000e+00> : vector<8x512xf32>
    %36 = tpu.matmul %34, %35, %cst_26 {dimension_numbers = #tpu.dot_dimension_numbers<[1], [0], [0], [1], [0, 0, 1, 1], [], []>} : vector<8x1024xbf16>, vector<1024x512xbf16>, vector<8x512xf32> -> vector<8x512xf32>
    %c0_27 = arith.constant 0 : index
    %c0_28 = arith.constant 0 : index
    %37 = vector.load %arg10[%c0_27, %c0_28] : memref<1x512xf32, #tpu.memory_space<vmem>>, vector<1x512xf32>
    %38 = vector.broadcast %37 : vector<1x512xf32> to vector<8x512xf32>
    %39 = arith.addf %36, %38 : vector<8x512xf32>
    %cst_29 = arith.constant 0.00999999977 : f32
    %40 = vector.broadcast %cst_29 : f32 to vector<8x512xf32>
    %41 = arith.mulf %40, %39 : vector<8x512xf32>
    %42 = arith.maximumf %39, %41 : vector<8x512xf32>
    %43 = arith.truncf %42 : vector<8x512xf32> to vector<8x512xbf16>
    %c0_30 = arith.constant 0 : index
    %c0_31 = arith.constant 0 : index
    %44 = vector.load %arg11[%c0_30, %c0_31] : memref<512x256xbf16, #tpu.memory_space<vmem>>, vector<512x256xbf16>
    %cst_32 = arith.constant dense<0.000000e+00> : vector<8x256xf32>
    %45 = tpu.matmul %43, %44, %cst_32 {dimension_numbers = #tpu.dot_dimension_numbers<[1], [0], [0], [1], [0, 0, 1, 1], [], []>} : vector<8x512xbf16>, vector<512x256xbf16>, vector<8x256xf32> -> vector<8x256xf32>
    %c0_33 = arith.constant 0 : index
    %c0_34 = arith.constant 0 : index
    %46 = vector.load %arg12[%c0_33, %c0_34] : memref<1x256xf32, #tpu.memory_space<vmem>>, vector<1x256xf32>
    %47 = vector.broadcast %46 : vector<1x256xf32> to vector<8x256xf32>
    %48 = arith.addf %45, %47 : vector<8x256xf32>
    %cst_35 = arith.constant 0.00999999977 : f32
    %49 = vector.broadcast %cst_35 : f32 to vector<8x256xf32>
    %50 = arith.mulf %49, %48 : vector<8x256xf32>
    %51 = arith.maximumf %48, %50 : vector<8x256xf32>
    %52 = arith.truncf %51 : vector<8x256xf32> to vector<8x256xbf16>
    %c0_36 = arith.constant 0 : index
    %c0_37 = arith.constant 0 : index
    %53 = vector.load %arg13[%c0_36, %c0_37] : memref<256x128xbf16, #tpu.memory_space<vmem>>, vector<256x128xbf16>
    %cst_38 = arith.constant dense<0.000000e+00> : vector<8x128xf32>
    %54 = tpu.matmul %52, %53, %cst_38 {dimension_numbers = #tpu.dot_dimension_numbers<[1], [0], [0], [1], [0, 0, 1, 1], [], []>} : vector<8x256xbf16>, vector<256x128xbf16>, vector<8x128xf32> -> vector<8x128xf32>
    %c0_39 = arith.constant 0 : index
    %c0_40 = arith.constant 0 : index
    %55 = vector.load %arg14[%c0_39, %c0_40] : memref<1x128xf32, #tpu.memory_space<vmem>>, vector<1x128xf32>
    %56 = vector.broadcast %55 : vector<1x128xf32> to vector<8x128xf32>
    %57 = arith.addf %54, %56 : vector<8x128xf32>
    %cst_41 = arith.constant 0.00999999977 : f32
    %58 = vector.broadcast %cst_41 : f32 to vector<8x128xf32>
    %59 = arith.mulf %58, %57 : vector<8x128xf32>
    %60 = arith.maximumf %57, %59 : vector<8x128xf32>
    %61 = arith.truncf %60 : vector<8x128xf32> to vector<8x128xbf16>
    %c0_42 = arith.constant 0 : index
    %c0_43 = arith.constant 0 : index
    %62 = vector.load %arg15[%c0_42, %c0_43] : memref<128x128xbf16, #tpu.memory_space<vmem>>, vector<128x128xbf16>
    %cst_44 = arith.constant dense<0.000000e+00> : vector<8x128xf32>
    %63 = tpu.matmul %61, %62, %cst_44 {dimension_numbers = #tpu.dot_dimension_numbers<[1], [0], [0], [1], [0, 0, 1, 1], [], []>} : vector<8x128xbf16>, vector<128x128xbf16>, vector<8x128xf32> -> vector<8x128xf32>
    %c0_45 = arith.constant 0 : index
    %c0_46 = arith.constant 0 : index
    %64 = vector.load %arg16[%c0_45, %c0_46] : memref<1x128xf32, #tpu.memory_space<vmem>>, vector<1x128xf32>
    %65 = vector.broadcast %64 : vector<1x128xf32> to vector<8x128xf32>
    %66 = arith.addf %63, %65 : vector<8x128xf32>
    %c0_47 = arith.constant 0 : index
    %c0_48 = arith.constant 0 : index
    %67 = vector.load %arg17[%c0_47, %c0_48] : memref<8x128xf32, #tpu.memory_space<vmem>>, vector<8x128xf32>
    tpu.vector_store %arg17[%c0_47, %c0_48], %60 {strides = array<i32>} : memref<8x128xf32, #tpu.memory_space<vmem>>, vector<8x128xf32>,
    %c0_49 = arith.constant 0 : index
    %c0_50 = arith.constant 0 : index
    %68 = vector.load %arg18[%c0_49, %c0_50] : memref<8x128xf32, #tpu.memory_space<vmem>>, vector<8x128xf32>
    tpu.vector_store %arg18[%c0_49, %c0_50], %66 {strides = array<i32>} : memref<8x128xf32, #tpu.memory_space<vmem>>, vector<8x128xf32>,
    return
  }
  func.func @transform_0(%arg0: i32) -> (i32, i32) {
    %c0_i32 = arith.constant 0 : i32
    %c0_i32_0 = arith.constant 0 : i32
    return %arg0, %c0_i32 : i32, i32
  }
  func.func @transform_1(%arg0: i32) -> (i32, i32) {
    %c0_i32 = arith.constant 0 : i32
    %c0_i32_0 = arith.constant 0 : i32
    return %arg0, %c0_i32 : i32, i32
  }
  func.func @transform_2(%arg0: i32) -> (i32, i32) {
    %c0_i32 = arith.constant 0 : i32
    %c0_i32_0 = arith.constant 0 : i32
    return %arg0, %c0_i32 : i32, i32
  }
  func.func @transform_3(%arg0: i32) -> (i32, i32) {
    %c0_i32 = arith.constant 0 : i32
    %c0_i32_0 = arith.constant 0 : i32
    return %arg0, %c0_i32 : i32, i32
  }
  func.func @transform_4(%arg0: i32) -> (i32, i32) {
    %c0_i32 = arith.constant 0 : i32
    %c0_i32_0 = arith.constant 0 : i32
    %c0_i32_1 = arith.constant 0 : i32
    return %c0_i32, %c0_i32_0 : i32, i32
  }
  func.func @transform_5(%arg0: i32) -> (i32, i32) {
    %c0_i32 = arith.constant 0 : i32
    %c0_i32_0 = arith.constant 0 : i32
    %c0_i32_1 = arith.constant 0 : i32
    return %c0_i32, %c0_i32_0 : i32, i32
  }
  func.func @transform_6(%arg0: i32) -> (i32, i32) {
    %c0_i32 = arith.constant 0 : i32
    %c0_i32_0 = arith.constant 0 : i32
    %c0_i32_1 = arith.constant 0 : i32
    return %c0_i32, %c0_i32_0 : i32, i32
  }
  func.func @transform_7(%arg0: i32) -> (i32, i32) {
    %c0_i32 = arith.constant 0 : i32
    %c0_i32_0 = arith.constant 0 : i32
    %c0_i32_1 = arith.constant 0 : i32
    return %c0_i32, %c0_i32_0 : i32, i32
  }
  func.func @transform_8(%arg0: i32) -> (i32, i32) {
    %c0_i32 = arith.constant 0 : i32
    %c0_i32_0 = arith.constant 0 : i32
    %c0_i32_1 = arith.constant 0 : i32
    return %c0_i32, %c0_i32_0 : i32, i32
  }
  func.func @transform_9(%arg0: i32) -> (i32, i32) {
    %c0_i32 = arith.constant 0 : i32
    %c0_i32_0 = arith.constant 0 : i32
    %c0_i32_1 = arith.constant 0 : i32
    return %c0_i32, %c0_i32_0 : i32, i32
  }
  func.func @transform_10(%arg0: i32) -> (i32, i32) {
    %c0_i32 = arith.constant 0 : i32
    %c0_i32_0 = arith.constant 0 : i32
    %c0_i32_1 = arith.constant 0 : i32
    return %c0_i32, %c0_i32_0 : i32, i32
  }
  func.func @transform_11(%arg0: i32) -> (i32, i32) {
    %c0_i32 = arith.constant 0 : i32
    %c0_i32_0 = arith.constant 0 : i32
    %c0_i32_1 = arith.constant 0 : i32
    return %c0_i32, %c0_i32_0 : i32, i32
  }
  func.func @transform_12(%arg0: i32) -> (i32, i32) {
    %c0_i32 = arith.constant 0 : i32
    %c0_i32_0 = arith.constant 0 : i32
    %c0_i32_1 = arith.constant 0 : i32
    return %c0_i32, %c0_i32_0 : i32, i32
  }
  func.func @transform_13(%arg0: i32) -> (i32, i32) {
    %c0_i32 = arith.constant 0 : i32
    %c0_i32_0 = arith.constant 0 : i32
    %c0_i32_1 = arith.constant 0 : i32
    return %c0_i32, %c0_i32_0 : i32, i32
  }
  func.func @transform_14(%arg0: i32) -> (i32, i32) {
    %c0_i32 = arith.constant 0 : i32
    %c0_i32_0 = arith.constant 0 : i32
    %c0_i32_1 = arith.constant 0 : i32
    return %c0_i32, %c0_i32_0 : i32, i32
  }
  func.func @transform_15(%arg0: i32) -> (i32, i32) {
    %c0_i32 = arith.constant 0 : i32
    %c0_i32_0 = arith.constant 0 : i32
    %c0_i32_1 = arith.constant 0 : i32
    return %c0_i32, %c0_i32_0 : i32, i32
  }
  func.func @transform_16(%arg0: i32) -> (i32, i32) {
    %c0_i32 = arith.constant 0 : i32
    %c0_i32_0 = arith.constant 0 : i32
    return %arg0, %c0_i32 : i32, i32
  }
  func.func @transform_17(%arg0: i32) -> (i32, i32) {
    %c0_i32 = arith.constant 0 : i32
    %c0_i32_0 = arith.constant 0 : i32
    return %arg0, %c0_i32 : i32, i32
  }
}

</mosaic_0001>

<bundles_post_ra>
// kernel: server_resnet_cat_4clients_forward.1
= control target key start
LH: loop header
LB: loop body
LE: loop exit
PB: predicated region body
PF: predicated region fallthrough
CT: control target
= control target key end

     0   :  { %s6395_s0 = inlined_call_operand.hbm [shape: f32[8,32], index: 0, kind: input, shape index: {}]   ;;  %s6396_s1 = inlined_call_operand.hbm [shape: f32[8,32], index: 1, kind: input, shape index: {}]   ;;  %s6397_s2 = inlined_call_operand.hbm [shape: f32[8,32], index: 2, kind: input, shape index: {}]   ;;  %s6398_s3 = inlined_call_operand.hbm [shape: f32[8,32], index: 3, kind: input, shape index: {}]   ;;  %s6399_s4 = inlined_call_operand.hbm [shape: bf16[128,128], index: 4, kind: input, shape index: {}]   ;;  %s6400_s5 = inlined_call_operand.hbm [shape: f32[1,128], index: 5, kind: input, shape index: {}]   ;;  %s6401_s6 = inlined_call_operand.hbm [shape: bf16[128,1024], index: 6, kind: input, shape index: {}]   ;;  %s6402_s7 = inlined_call_operand.hbm [shape: f32[1,1024], index: 7, kind: input, shape index: {}]   ;;  %s6403_s8 = inlined_call_operand.hbm [shape: bf16[1024,512], index: 8, kind: input, shape index: {}]   ;;  %s6404_s9 = inlined_call_operand.vmem [shape: f32[1,512], index: 9, kind: input, shape index: {}]   ;;  %s6405_s10 = inlined_call_operand.hbm [shape: bf16[512,256], index: 10, kind: input, shape index: {}]   ;;  %s6406_s11 = inlined_call_operand.vmem [shape: f32[1,256], index: 11, kind: input, shape index: {}]   ;;  %s6407_s12 = inlined_call_operand.hbm [shape: bf16[256,128], index: 12, kind: input, shape index: {}]   ;;  %s6408_s13 = inlined_call_operand.vmem [shape: f32[1,128], index: 13, kind: input, shape index: {}]   ;;  %s6409_s14 = inlined_call_operand.hbm [shape: bf16[128,128], index: 14, kind: input, shape index: {}]   ;;  %s6410_s15 = inlined_call_operand.vmem [shape: f32[1,128], index: 15, kind: input, shape index: {}]   ;;  %s6411_s16 = inlined_call_operand.hbm [shape: f32[8,128], index: 16, kind: output, shape index: {0}]   ;;  %s6412_s17 = inlined_call_operand.vmem [shape: f32[8,128], index: 17, kind: output, shape index: {1}]  }
   0x1   :  { %6413 = sst [smem:[#allocation31_spill]] %s6395_s0 }
   0x2   :  { %6414 = sst [smem:[#allocation32_spill]] %s6396_s1 }
   0x3   :  { %23 = vsyncpa [#allocation3], 0 }
   0x4   :  { %24 = vsyncpa [#allocation6], 0 }
   0x5   :  { %25 = vsyncpa [#allocation9], 0 }
   0x6   :  { %26 = vsyncpa [#allocation12], 0 }
   0x7   :  { %27 = vsyncpa [#allocation15], 0 }
   0x8   :  { %28 = vsyncpa [#allocation18], 0 }
   0x9   :  { %29 = vsyncpa [#allocation21], 0  ;;  %s6415_s26 = sld [smem:[#allocation32_spill]] }
   0xf   :  { %s47_s27 = sshll.u32 %s6415_s26, 4  ;;  %s48_s27 = int_to_ptr.hbm [resolvable:$true] %s47_s27 }
  0x10   :  { %30 = vsyncpa [#allocation4], 0  ;;  %s6091_s28 = smov [#allocation5]   ;;  %s69_s18 = sshll.u32 %s6398_s3, 4  ;;  %s70_s18 = int_to_ptr.hbm [resolvable:$true] %s69_s18 }
  0x11   :  { %s49_s29 = sshll.u32 %s6091_s28, 4  ;;  %s6092_s19 = smov [#allocation8]   ;;  %s50_s29 = int_to_ptr.vmem [resolvable:$true] %s49_s29 }
  0x12   :  { %52 = dma.hbm_to_vmem [thread:$0]  %s48_s27, 128, %s50_s29, [#allocation6]  }
  0x13   :  { %s71_s1 = sshll.u32 %s6092_s19, 4  ;;  %s93_s22 = sshll.u32 %s6400_s5, 4  ;;  %s72_s1 = int_to_ptr.vmem [resolvable:$true] %s71_s1  ;;  %s94_s22 = int_to_ptr.hbm [resolvable:$true] %s93_s22 }
  0x14   :  { %74 = dma.hbm_to_vmem [thread:$0]  %s70_s18, 128, %s72_s1, [#allocation9]  }
  0x15   :  { %s117_s25 = sshll.u32 %s6402_s7, 4  ;;  %s6093_s26 = smov [#allocation11]   ;;  %s118_s25 = int_to_ptr.hbm [resolvable:$true] %s117_s25 }
  0x16   :  { %s95_s28 = sshll.u32 %s6093_s26, 4  ;;  %s6094_s3 = smov [#allocation14]   ;;  %s96_s28 = int_to_ptr.vmem [resolvable:$true] %s95_s28 }
  0x17   :  { %98 = dma.hbm_to_vmem [thread:$0]  %s94_s22, 16, %s96_s28, [#allocation12]  }
  0x18   :  { %s119_s27 = sshll.u32 %s6094_s3, 4  ;;  %s142_s30 = sshll.u32 %s6405_s10, 4  ;;  %s120_s27 = int_to_ptr.vmem [resolvable:$true] %s119_s27  ;;  %s143_s30 = int_to_ptr.hbm [resolvable:$true] %s142_s30 }
  0x19   :  { %122 = dma.hbm_to_vmem [thread:$0]  %s118_s25, 128, %s120_s27, [#allocation15]  }
  0x1a   :  { %s6095_s5 = smov [#allocation17]   ;;  %s6416_s7 = sld [smem:[#allocation31_spill]] }
  0x1b   :  { %s144_s18 = sshll.u32 %s6095_s5, 4  ;;  %s6096_s21 = smov 128   ;;  %s145_s18 = int_to_ptr.vmem [resolvable:$true] %s144_s18 }
  0x1c   :  { %s6097_s23 = smov 8   ;;  %s6098_s22 = smov [#allocation2]  }
  0x1d   :  { %150 = dma.hbm_to_vmem [thread:$0]  %s143_s30, 8192, %s145_s18, [#allocation18], %s6096_s21, %s6096_s21, %s6097_s23  }
  0x1e   :  { %s38_s24 = sshll.u32 %s6098_s22, 4  ;;  %s58_s10 = sshll.u32 %s6397_s2, 4  ;;  %s39_s24 = int_to_ptr.vmem [resolvable:$true] %s38_s24  ;;  %s59_s10 = int_to_ptr.hbm [resolvable:$true] %s58_s10 }
  0x1f   :  { %s79_s27 = sshll.u32 %s6399_s4, 4  ;;  %s6099_s29 = smov [#allocation7]   ;;  %s80_s27 = int_to_ptr.hbm [resolvable:$true] %s79_s27 }
  0x20   :  { %s36_s20 = sshll.u32 %s6416_s7, 4  ;;  %s60_s0 = sshll.u32 %s6099_s29, 4  ;;  %s37_s20 = int_to_ptr.hbm [resolvable:$true] %s36_s20  ;;  %s61_s0 = int_to_ptr.vmem [resolvable:$true] %s60_s0 }
  0x21   :  { %41 = dma.hbm_to_vmem [thread:$0]  %s37_s20, 128, %s39_s24, [#allocation3]  }
  0x22   :  { %63 = dma.hbm_to_vmem [thread:$0]  %s59_s10, 128, %s61_s0, [#allocation6]  }
  0x23   :  { %s6100_s30 = smov [#allocation10]   ;;  %s6101_s18 = smov 64  }
  0x24   :  { %s81_s5 = sshll.u32 %s6100_s30, 4  ;;  %s6102_s19 = smov 4   ;;  %s82_s5 = int_to_ptr.vmem [resolvable:$true] %s81_s5 }
  0x25   :  { %87 = dma.hbm_to_vmem [thread:$0]  %s80_s27, 1024, %s82_s5, [#allocation9], %s6101_s18, %s6101_s18, %s6102_s19  }
  0x26   :  { %s103_s7 = sshll.u32 %s6401_s6, 4  ;;  %s6103_s4 = smov [#allocation13]   ;;  %s104_s7 = int_to_ptr.hbm [resolvable:$true] %s103_s7 }
  0x27   :  { %s105_s20 = sshll.u32 %s6103_s4, 4  ;;  %s127_s22 = sshll.u32 %s6403_s8, 4  ;;  %s106_s20 = int_to_ptr.vmem [resolvable:$true] %s105_s20  ;;  %s128_s22 = int_to_ptr.hbm [resolvable:$true] %s127_s22 }
  0x28   :  { %s6104_s24 = smov 512   ;;  %s6105_s26 = smov 32  }
  0x29   :  { %111 = dma.hbm_to_vmem [thread:$0]  %s104_s7, 8192, %s106_s20, [#allocation12], %s6104_s24, %s6104_s24, %s6105_s26  }
  0x2a   :  { %s6106_s28 = smov [#allocation16]   ;;  %s6107_s25 = smov 256  }
  0x2b   :  { %s129_s10 = sshll.u32 %s6106_s28, 4  ;;  %s6108_s3 = smov 16   ;;  %s130_s10 = int_to_ptr.vmem [resolvable:$true] %s129_s10 }
  0x2c   :  { %135 = dma.hbm_to_vmem [thread:$0]  %s128_s22, 32768, %s130_s10, [#allocation15], %s6107_s25, %s6107_s25, %s6108_s3  }
  0x2d   :  { %s157_s29 = sshll.u32 %s6407_s12, 4  ;;  %s6109_s0 = smov [#allocation19]   ;;  %s158_s29 = int_to_ptr.hbm [resolvable:$true] %s157_s29 }
  0x2e   :  { %s159_s30 = sshll.u32 %s6109_s0, 4  ;;  %s172_s2 = sshll.u32 %s6409_s14, 4  ;;  %s160_s30 = int_to_ptr.vmem [resolvable:$true] %s159_s30  ;;  %s173_s2 = int_to_ptr.hbm [resolvable:$true] %s172_s2 }
  0x2f   :  { %165 = dma.hbm_to_vmem [thread:$0]  %s158_s29, 2048, %s160_s30, [#allocation18], %s6101_s18, %s6101_s18, %s6102_s19  }
  0x30   :  { %s6110_s1 = smov [#allocation20]  }
  0x31   :  { %s174_s7 = sshll.u32 %s6110_s1, 4  ;;  %s175_s7 = int_to_ptr.vmem [resolvable:$true] %s174_s7 }
  0x32   :  { %180 = dma.hbm_to_vmem [thread:$0]  %s173_s2, 1024, %s175_s7, [#allocation21], %s6101_s18, %s6101_s18, %s6102_s19  }
  0x33   :  { %6075 = dma.done.wait [#allocation3], 128  }
  0x34   :  { %6076 = vsyncadd [#allocation3], 4294967168 }
  0x35   :  { %6077 = dma.done.wait [#allocation6], 256  }
  0x36   :  { %6078 = vsyncadd [#allocation6], 4294967040 }
  0x37   :  { %6079 = dma.done.wait [#allocation9], 1152  }
  0x38   :  { %6080 = vsyncadd [#allocation9], 4294966144 }
  0x39   :  { %6081 = dma.done.wait [#allocation12], 8208  }
  0x3a   :  { %6082 = vsyncadd [#allocation12], 4294959088 }
  0x3b   :  { %6083 = dma.done.wait [#allocation15], 32896  }
  0x3c   :  { %6084 = vsyncadd [#allocation15], 4294934400 }
  0x3d   :  { %6085 = dma.done.wait [#allocation18], 10240  }
  0x3e   :  { %6086 = vsyncadd [#allocation18], 4294957056 }
  0x3f   :  { %6087 = dma.done.wait [#allocation21], 1024  }
  0x40   :  { %6088 = vsyncadd [#allocation21], 4294966272  ;;  %v5325_v0 = vld [vmem:[#allocation10 + $0x18] sm:$0xff]  ;;  %v5327_v1 = vld [vmem:[#allocation10 + $0x28] sm:$0xff]  ;;  %vm256_vm0 = vcmask 261120   ;;  %s6111_s21 = smov [#allocation22]  }
  0x41   :  { %v5324_v2 = vld [vmem:[#allocation10 + $0x10] sm:$0xff]  ;;  %v5323_v3 = vld [vmem:[#allocation10 + $0x8] sm:$0xff]  ;;  %266 = vmatpush.bf16.msra.mxu3 %v5325_v0  ;;  %328 = vmatpush.bf16.msra.mxu2 %v5327_v1  ;;  %v5326_v4 = vld [vmem:[#allocation10 + $0x20] sm:$0xff]  ;;  %s3632_s23 = sshll.u32 %s6111_s21, 4  ;;  %s3634_s26 = sshll.u32 %s6411_s16, 4  ;;  %s3633_s23 = int_to_ptr.vmem [resolvable:$true] %s3632_s23  ;;  %s3635_s26 = int_to_ptr.hbm [resolvable:$true] %s3634_s26 }
  0x42   :  { %v238_v5 = vld [vmem:[#allocation5] sm:$0xff]  ;;  %v301_v6 = vld [vmem:[#allocation7] sm:$0xff]  ;;  %294 = vmatpush.bf16.msra.mxu1 %v5323_v3  ;;  %v5322_v7 = vld [vmem:[#allocation10] sm:$0xff] }
  0x43   :  { %v232_v8 = vld [vmem:[#allocation2] sm:$0xff]  ;;  %v5329_v9 = vld [vmem:[#allocation10 + $0x38] sm:$0xff]  ;;  %v239_v13 = vpack.c.bf16 %v238_v5, %v238_v5  ;;  %v302_v14 = vpack.c.bf16 %v301_v6, %v301_v6  ;;  %v5328_v15 = vld [vmem:[#allocation10 + $0x30] sm:$0xff] }
  0x44   :  { %v3916_v10 = vld [vmem:[#allocation13 + $0x1c0] sm:$0xf]  ;;  %v5386_v12 = vld [vmem:[#allocation13 + $0x1c4] sm:$0xf]  ;;  %v3924_v18 = vld [vmem:[#allocation13 + $0x1c8] sm:$0xf]  ;;  %v233_v20 = vpack.c.bf16 %v232_v8, %v232_v8 }
  0x45   :  { %v5390_v11 = vld [vmem:[#allocation13 + $0x1dc] sm:$0xf0]  ;;  %v3918_v17 = vld [vmem:[#allocation13 + $0x1e0] sm:$0xf0]  ;;  %v5391_v19 = vld [vmem:[#allocation13 + $0x1e4] sm:$0xf0]  ;;  %267 = vmatpush.bf16.msra.mxu3 %v5324_v2  ;;  %329 = vmatpush.bf16.msra.mxu2 %v5326_v4 }
  0x46   :  { %v3917_v16 = vor.u32 %v5390_v11, %v3916_v10  ;;  %v3921_v21 = vor.u32 %v5386_v12, %v3918_v17  ;;  %v3925_v22 = vor.u32 %v5391_v19, %v3924_v18  ;;  %v5387_v23 = vld [vmem:[#allocation13 + $0x1cc] sm:$0xf]  ;;  %v3884_v25 = vld [vmem:[#allocation13 + $0x180] sm:$0xf]  ;;  %295 = vmatpush.bf16.msra.mxu1 %v5322_v7  ;;  %v5378_v27 = vld [vmem:[#allocation13 + $0x184] sm:$0xf] }
  0x47   :  { %v3926_v24 = vld [vmem:[#allocation13 + $0x1e8] sm:$0xf0]  ;;  %v5382_v26 = vld [vmem:[#allocation13 + $0x19c] sm:$0xf0]  ;;  %v3886_v28 = vld [vmem:[#allocation13 + $0x1a0] sm:$0xf0] }
  0x48   :  { %781 = vmatpush.bf16.msra.mxu0 %v3917_v16  ;;  %v3929_v29 = vor.u32 %v5387_v23, %v3926_v24  ;;  %v3885_v30 = vor.u32 %v5382_v26, %v3884_v25  ;;  %v3892_v31 = vld [vmem:[#allocation13 + $0x188] sm:$0xf]  ;;  %v5379_v33 = vld [vmem:[#allocation13 + $0x18c] sm:$0xf]  ;;  %3662 = vmatmul.msk.bf16.vlgmr.msra.gmra.mxu3 %vm256_vm0, %v239_v13  ;;  %v3889_v34 = vor.u32 %v5378_v27, %v3886_v28  ;;  %v3852_v36 = vld [vmem:[#allocation13 + $0x140] sm:$0xf] }
  0x49   :  { %363 = vmatpush.bf16.msrb.mxu3 %v5329_v9  ;;  %v5383_v32 = vld [vmem:[#allocation13 + $0x1a4] sm:$0xf0]  ;;  %3680 = vmatmul.msk.bf16.vlgmr.msra.gmra.mxu2 %vm256_vm0, %v302_v14  ;;  %v3894_v35 = vld [vmem:[#allocation13 + $0x1a8] sm:$0xf0]  ;;  %v5374_v37 = vld [vmem:[#allocation13 + $0x15c] sm:$0xf0] }
  0x4a   :  { %794 = vmatpush.bf16.msrb.mxu1 %v3921_v21  ;;  %807 = vmatpush.bf16.msrb.mxu2 %v3925_v22  ;;  %v3893_v38 = vor.u32 %v5383_v32, %v3892_v31  ;;  %v5370_v39 = vld [vmem:[#allocation13 + $0x144] sm:$0xf]  ;;  %v3860_v41 = vld [vmem:[#allocation13 + $0x148] sm:$0xf]  ;;  %v3897_v43 = vor.u32 %v5379_v33, %v3894_v35  ;;  %v3853_v44 = vor.u32 %v5374_v37, %v3852_v36  ;;  %v5371_v45 = vld [vmem:[#allocation13 + $0x14c] sm:$0xf] }
  0x4b   :  { %3671 = vmatmul.msk.bf16.vlgmr.msra.gmra.mxu1 %vm256_vm0, %v233_v20  ;;  %v3854_v40 = vld [vmem:[#allocation13 + $0x160] sm:$0xf0]  ;;  %v5375_v42 = vld [vmem:[#allocation13 + $0x164] sm:$0xf0]  ;;  %v3862_v47 = vld [vmem:[#allocation13 + $0x168] sm:$0xf0] }
  0x4c   :  { %782 = vmatpush.bf16.msra.mxu0 %v3885_v30  ;;  %v3857_v46 = vor.u32 %v5370_v39, %v3854_v40  ;;  %v3820_v48 = vld [vmem:[#allocation13 + $0x100] sm:$0xf]  ;;  %v3861_v50 = vor.u32 %v5375_v42, %v3860_v41  ;;  %v5362_v51 = vld [vmem:[#allocation13 + $0x104] sm:$0xf]  ;;  %v3828_v53 = vld [vmem:[#allocation13 + $0x108] sm:$0xf]  ;;  %v3865_v56 = vor.u32 %v5371_v45, %v3862_v47 }
  0x4d   :  { %364 = vmatpush.bf16.msrb.mxu3 %v5328_v15  ;;  %v5366_v49 = vld [vmem:[#allocation13 + $0x11c] sm:$0xf0]  ;;  %v3822_v52 = vld [vmem:[#allocation13 + $0x120] sm:$0xf0]  ;;  %v5367_v54 = vld [vmem:[#allocation13 + $0x124] sm:$0xf0] }
  0x4e   :  { %795 = vmatpush.bf16.msrb.mxu1 %v3889_v34  ;;  %808 = vmatpush.bf16.msrb.mxu2 %v3893_v38  ;;  %v336_v55 = vld [vmem:[#allocation8] sm:$0xff]  ;;  %v3821_v57 = vor.u32 %v5366_v49, %v3820_v48  ;;  %v5363_v58 = vld [vmem:[#allocation13 + $0x10c] sm:$0xf]  ;;  %v3788_v60 = vld [vmem:[#allocation13 + $0xc0] sm:$0xf]  ;;  %v3825_v61 = vor.u32 %v5362_v51, %v3822_v52  ;;  %v3829_v63 = vor.u32 %v5367_v54, %v3828_v53 }
  0x4f   :  { %v3830_v59 = vld [vmem:[#allocation13 + $0x128] sm:$0xf0]  ;;  %v5358_v62 = vld [vmem:[#allocation13 + $0xdc] sm:$0xf0]  ;;  %v5354_v0 = vld [vmem:[#allocation13 + $0xc4] sm:$0xf]  ;;  %v337_v6 = vpack.c.bf16 %v336_v55, %v336_v55 }
  0x50   :  { %783 = vmatpush.bf16.msra.mxu0 %v3853_v44  ;;  %v3790_v1 = vld [vmem:[#allocation13 + $0xe0] sm:$0xf0]  ;;  %v3796_v2 = vld [vmem:[#allocation13 + $0xc8] sm:$0xf]  ;;  %v3833_v4 = vor.u32 %v5363_v58, %v3830_v59  ;;  %v3789_v5 = vor.u32 %v5358_v62, %v3788_v60  ;;  %v5355_v8 = vld [vmem:[#allocation13 + $0xcc] sm:$0xf] }
  0x51   :  { %820 = vmatpush.bf16.msra.mxu3 %v3929_v29  ;;  %v5359_v3 = vld [vmem:[#allocation13 + $0xe4] sm:$0xf0]  ;;  %v3793_v7 = vor.u32 %v5354_v0, %v3790_v1  ;;  %v3798_v9 = vld [vmem:[#allocation13 + $0xe8] sm:$0xf0]  ;;  %v3756_v12 = vld [vmem:[#allocation13 + $0x80] sm:$0xf] }
  0x52   :  { %796 = vmatpush.bf16.msrb.mxu1 %v3857_v46  ;;  %809 = vmatpush.bf16.msrb.mxu2 %v3861_v50  ;;  %v3797_v10 = vor.u32 %v5359_v3, %v3796_v2  ;;  %v3801_v11 = vor.u32 %v5355_v8, %v3798_v9  ;;  %v5350_v13 = vld [vmem:[#allocation13 + $0x9c] sm:$0xf0]  ;;  %v5346_v14 = vld [vmem:[#allocation13 + $0x84] sm:$0xf]  ;;  %v3764_v17 = vld [vmem:[#allocation13 + $0x88] sm:$0xf] }
  0x53   :  { %v3757_v15 = vor.u32 %v5350_v13, %v3756_v12  ;;  %v3758_v16 = vld [vmem:[#allocation13 + $0xa0] sm:$0xf0]  ;;  %v5351_v18 = vld [vmem:[#allocation13 + $0xa4] sm:$0xf0]  ;;  %v5347_v21 = vld [vmem:[#allocation13 + $0x8c] sm:$0xf] }
  0x54   :  { %784 = vmatpush.bf16.msra.mxu0 %v3821_v57  ;;  %v3761_v19 = vor.u32 %v5346_v14, %v3758_v16  ;;  %v3765_v20 = vor.u32 %v5351_v18, %v3764_v17  ;;  %v3766_v22 = vld [vmem:[#allocation13 + $0xa8] sm:$0xf0]  ;;  %v3724_v24 = vld [vmem:[#allocation13 + $0x40] sm:$0xf]  ;;  %v5338_v26 = vld [vmem:[#allocation13 + $0x44] sm:$0xf] }
  0x55   :  { %821 = vmatpush.bf16.msra.mxu3 %v3897_v43  ;;  %v3769_v23 = vor.u32 %v5347_v21, %v3766_v22  ;;  %v5342_v25 = vld [vmem:[#allocation13 + $0x5c] sm:$0xf0]  ;;  %v3726_v28 = vld [vmem:[#allocation13 + $0x60] sm:$0xf0]  ;;  %v3732_v29 = vld [vmem:[#allocation13 + $0x48] sm:$0xf] }
  0x56   :  { %797 = vmatpush.bf16.msrb.mxu1 %v3825_v61  ;;  %810 = vmatpush.bf16.msrb.mxu2 %v3829_v63  ;;  %v3725_v27 = vor.u32 %v5342_v25, %v3724_v24  ;;  %v5343_v30 = vld [vmem:[#allocation13 + $0x64] sm:$0xf0]  ;;  %v3729_v31 = vor.u32 %v5338_v26, %v3726_v28  ;;  %v5339_v33 = vld [vmem:[#allocation13 + $0x4c] sm:$0xf]  ;;  %v3692_v36 = vld [vmem:[#allocation13] sm:$0xf] }
  0x57   :  { %v3733_v32 = vor.u32 %v5343_v30, %v3732_v29  ;;  %v3734_v34 = vld [vmem:[#allocation13 + $0x68] sm:$0xf0]  ;;  %v5334_v37 = vld [vmem:[#allocation13 + $0x1c] sm:$0xf0]  ;;  %v5330_v38 = vld [vmem:[#allocation13 + $0x4] sm:$0xf] }
  0x58   :  { %785 = vmatpush.bf16.msra.mxu0 %v3789_v5  ;;  %3689 = vmatmul.msk.bf16.vlgmr.msrb.gmra.mxu3 %vm256_vm0, %v337_v6  ;;  %v3737_v35 = vor.u32 %v5339_v33, %v3734_v34  ;;  %v3693_v39 = vor.u32 %v5334_v37, %v3692_v36  ;;  %v3694_v40 = vld [vmem:[#allocation13 + $0x20] sm:$0xf0]  ;;  %v3700_v41 = vld [vmem:[#allocation13 + $0x8] sm:$0xf]  ;;  %v5331_v45 = vld [vmem:[#allocation13 + $0xc] sm:$0xf] }
  0x59   :  { %822 = vmatpush.bf16.msra.mxu3 %v3865_v56  ;;  %v5335_v42 = vld [vmem:[#allocation13 + $0x24] sm:$0xf0]  ;;  %v3697_v43 = vor.u32 %v5330_v38, %v3694_v40  ;;  %v3702_v46 = vld [vmem:[#allocation13 + $0x28] sm:$0xf0]  ;;  %v3932_v47 = vld [vmem:[#allocation13 + $0x1d0] sm:$0xf] }
  0x5a   :  { %798 = vmatpush.bf16.msrb.mxu1 %v3793_v7  ;;  %811 = vmatpush.bf16.msrb.mxu2 %v3797_v10  ;;  %v3701_v44 = vor.u32 %v5335_v42, %v3700_v41  ;;  %v3705_v48 = vor.u32 %v5331_v45, %v3702_v46  ;;  %v5392_v49 = vld [vmem:[#allocation13 + $0x1ec] sm:$0xf0]  ;;  %v5388_v50 = vld [vmem:[#allocation13 + $0x1d4] sm:$0xf]  ;;  %v3940_v54 = vld [vmem:[#allocation13 + $0x1d8] sm:$0xf] }
  0x5b   :  { %v3934_v51 = vld [vmem:[#allocation13 + $0x1f0] sm:$0xf0]  ;;  %v3933_v52 = vor.u32 %v5392_v49, %v3932_v47  ;;  %v5393_v55 = vld [vmem:[#allocation13 + $0x1f4] sm:$0xf0]  ;;  %v5389_v56 = vld [vmem:[#allocation13 + $0x1dc] sm:$0xf] }
  0x5c   :  { %786 = vmatpush.bf16.msra.mxu0 %v3757_v15  ;;  %v3937_v53 = vor.u32 %v5388_v50, %v3934_v51  ;;  %v3941_v57 = vor.u32 %v5393_v55, %v3940_v54  ;;  %v3942_v58 = vld [vmem:[#allocation13 + $0x1f8] sm:$0xf0]  ;;  %v3900_v59 = vld [vmem:[#allocation13 + $0x190] sm:$0xf]  ;;  %v5380_v63 = vld [vmem:[#allocation13 + $0x194] sm:$0xf] }
  0x5d   :  { %823 = vmatpush.bf16.msra.mxu3 %v3833_v4  ;;  %v5384_v60 = vld [vmem:[#allocation13 + $0x1ac] sm:$0xf0]  ;;  %v3945_v61 = vor.u32 %v5389_v56, %v3942_v58  ;;  %v3902_v0 = vld [vmem:[#allocation13 + $0x1b0] sm:$0xf0]  ;;  %v3908_v1 = vld [vmem:[#allocation13 + $0x198] sm:$0xf] }
  0x5e   :  { %799 = vmatpush.bf16.msrb.mxu1 %v3761_v19  ;;  %812 = vmatpush.bf16.msrb.mxu2 %v3765_v20  ;;  %v3901_v62 = vor.u32 %v5384_v60, %v3900_v59  ;;  %v3905_v2 = vor.u32 %v5380_v63, %v3902_v0  ;;  %v5385_v3 = vld [vmem:[#allocation13 + $0x1b4] sm:$0xf0]  ;;  %v5381_v4 = vld [vmem:[#allocation13 + $0x19c] sm:$0xf]  ;;  %v3868_v8 = vld [vmem:[#allocation13 + $0x150] sm:$0xf] }
  0x5f   :  { %v3910_v5 = vld [vmem:[#allocation13 + $0x1b8] sm:$0xf0]  ;;  %v3909_v6 = vor.u32 %v5385_v3, %v3908_v1  ;;  %v5376_v9 = vld [vmem:[#allocation13 + $0x16c] sm:$0xf0]  ;;  %v3870_v12 = vld [vmem:[#allocation13 + $0x170] sm:$0xf0] }
  0x60   :  { %787 = vmatpush.bf16.msra.mxu0 %v3725_v27  ;;  %v3913_v7 = vor.u32 %v5381_v4, %v3910_v5  ;;  %v3869_v10 = vor.u32 %v5376_v9, %v3868_v8  ;;  %v3876_v13 = vld [vmem:[#allocation13 + $0x158] sm:$0xf]  ;;  %v5373_v16 = vld [vmem:[#allocation13 + $0x15c] sm:$0xf]  ;;  %v3836_v20 = vld [vmem:[#allocation13 + $0x110] sm:$0xf] }
  0x61   :  { %824 = vmatpush.bf16.msra.mxu3 %v3801_v11  ;;  %v5372_v11 = vld [vmem:[#allocation13 + $0x154] sm:$0xf]  ;;  %v5377_v15 = vld [vmem:[#allocation13 + $0x174] sm:$0xf0]  ;;  %v3878_v17 = vld [vmem:[#allocation13 + $0x178] sm:$0xf0] }
  0x62   :  { %800 = vmatpush.bf16.msrb.mxu1 %v3729_v31  ;;  %813 = vmatpush.bf16.msrb.mxu2 %v3733_v32  ;;  %v3873_v14 = vor.u32 %v5372_v11, %v3870_v12  ;;  %v3877_v18 = vor.u32 %v5377_v15, %v3876_v13  ;;  %v3881_v19 = vor.u32 %v5373_v16, %v3878_v17  ;;  %v5368_v21 = vld [vmem:[#allocation13 + $0x12c] sm:$0xf0]  ;;  %v5364_v22 = vld [vmem:[#allocation13 + $0x114] sm:$0xf]  ;;  %v3844_v25 = vld [vmem:[#allocation13 + $0x118] sm:$0xf] }
  0x63   :  { %v3838_v24 = vld [vmem:[#allocation13 + $0x130] sm:$0xf0]  ;;  %v5369_v26 = vld [vmem:[#allocation13 + $0x134] sm:$0xf0]  ;;  %v5365_v29 = vld [vmem:[#allocation13 + $0x11c] sm:$0xf] }
  0x64   :  { %788 = vmatpush.bf16.msra.mxu0 %v3693_v39  ;;  %v3841_v27 = vor.u32 %v5364_v22, %v3838_v24  ;;  %v3845_v28 = vor.u32 %v5369_v26, %v3844_v25  ;;  %v3846_v30 = vld [vmem:[#allocation13 + $0x138] sm:$0xf0]  ;;  %v3804_v32 = vld [vmem:[#allocation13 + $0xd0] sm:$0xf]  ;;  %v5356_v34 = vld [vmem:[#allocation13 + $0xd4] sm:$0xf] }
  0x65   :  { %825 = vmatpush.bf16.msra.mxu3 %v3769_v23  ;;  %v3837_v23 = vor.u32 %v5368_v21, %v3836_v20  ;;  %v3849_v31 = vor.u32 %v5365_v29, %v3846_v30  ;;  %v5360_v33 = vld [vmem:[#allocation13 + $0xec] sm:$0xf0]  ;;  %v3806_v37 = vld [vmem:[#allocation13 + $0xf0] sm:$0xf0]  ;;  %v3812_v38 = vld [vmem:[#allocation13 + $0xd8] sm:$0xf] }
  0x66   :  { %801 = vmatpush.bf16.msrb.mxu1 %v3697_v43  ;;  %814 = vmatpush.bf16.msrb.mxu2 %v3701_v44  ;;  %v3805_v36 = vor.u32 %v5360_v33, %v3804_v32  ;;  %v5361_v39 = vld [vmem:[#allocation13 + $0xf4] sm:$0xf0]  ;;  %v3809_v40 = vor.u32 %v5356_v34, %v3806_v37  ;;  %v5357_v42 = vld [vmem:[#allocation13 + $0xdc] sm:$0xf]  ;;  %v3772_v44 = vld [vmem:[#allocation13 + $0x90] sm:$0xf] }
  0x67   :  { %v3813_v41 = vor.u32 %v5361_v39, %v3812_v38  ;;  %v3814_v43 = vld [vmem:[#allocation13 + $0xf8] sm:$0xf0]  ;;  %v5352_v46 = vld [vmem:[#allocation13 + $0xac] sm:$0xf0]  ;;  %v5348_v47 = vld [vmem:[#allocation13 + $0x94] sm:$0xf] }
  0x68   :  { %833 = vmatpush.bf16.msrb.mxu0 %v3933_v52  ;;  %v3817_v45 = vor.u32 %v5357_v42, %v3814_v43  ;;  %v3773_v49 = vor.u32 %v5352_v46, %v3772_v44  ;;  %v3780_v51 = vld [vmem:[#allocation13 + $0x98] sm:$0xf]  ;;  %v3782_v55 = vld [vmem:[#allocation13 + $0xb8] sm:$0xf0]  ;;  %v3740_v56 = vld [vmem:[#allocation13 + $0x50] sm:$0xf] }
  0x69   :  { %826 = vmatpush.bf16.msra.mxu3 %v3737_v35  ;;  %v5353_v52 = vld [vmem:[#allocation13 + $0xb4] sm:$0xf0]  ;;  %v5341_v1 = vld [vmem:[#allocation13 + $0x5c] sm:$0xf]  ;;  %v3708_v5 = vld [vmem:[#allocation13 + $0x10] sm:$0xf] }
  0x6a   :  { %846 = vmatpush.bf16.msra.mxu1 %v3937_v53  ;;  %859 = vmatpush.bf16.msra.mxu2 %v3941_v57  ;;  %v5349_v53 = vld [vmem:[#allocation13 + $0x9c] sm:$0xf]  ;;  %v3781_v54 = vor.u32 %v5353_v52, %v3780_v51  ;;  %v5344_v57 = vld [vmem:[#allocation13 + $0x6c] sm:$0xf0]  ;;  %v3748_v63 = vld [vmem:[#allocation13 + $0x58] sm:$0xf] }
  0x6b   :  { %v3785_v60 = vor.u32 %v5349_v53, %v3782_v55  ;;  %v5345_v0 = vld [vmem:[#allocation13 + $0x74] sm:$0xf0]  ;;  %v3741_v3 = vor.u32 %v5344_v57, %v3740_v56  ;;  %v5336_v8 = vld [vmem:[#allocation13 + $0x2c] sm:$0xf0]  ;;  %v5332_v9 = vld [vmem:[#allocation13 + $0x14] sm:$0xf] }
  0x6c   :  { %834 = vmatpush.bf16.msrb.mxu0 %v3901_v62  ;;  %v3742_v62 = vld [vmem:[#allocation13 + $0x70] sm:$0xf0]  ;;  %v3716_v12 = vld [vmem:[#allocation13 + $0x18] sm:$0xf]  ;;  %v3718_v15 = vld [vmem:[#allocation13 + $0x38] sm:$0xf0]  ;;  %v3709_v16 = vor.u32 %v5336_v8, %v3708_v5 }
  0x6d   :  { %827 = vmatpush.bf16.msra.mxu3 %v3705_v48  ;;  %v3774_v48 = vld [vmem:[#allocation13 + $0xb0] sm:$0xf0]  ;;  %v5337_v13 = vld [vmem:[#allocation13 + $0x34] sm:$0xf0]  ;;  %v5759_v24 = vld [vmem:[#allocation11] ss:$0 sm:$0xff] }
  0x6e   :  { %847 = vmatpush.bf16.msra.mxu1 %v3905_v2  ;;  %860 = vmatpush.bf16.msra.mxu2 %v3909_v6  ;;  %v3777_v50 = vor.u32 %v5348_v47, %v3774_v48  ;;  %v3750_v2 = vld [vmem:[#allocation13 + $0x78] sm:$0xf0]  ;;  %v4060_v29 = vld [vmem:[#allocation16 + $0xe0] sm:$0xf]  ;;  %v5424_v30 = vld [vmem:[#allocation16 + $0xec] sm:$0xf0] }
  0x6f   :  { %v3753_v11 = vor.u32 %v5341_v1, %v3750_v2  ;;  %v5456_v32 = vld [vmem:[#allocation16 + $0x1ec] sm:$0xf0]  ;;  %v4316_v33 = vld [vmem:[#allocation16 + $0x2e0] sm:$0xf] }
  0x70   :  { %835 = vmatpush.bf16.msrb.mxu0 %v3869_v10  ;;  %v3710_v10 = vld [vmem:[#allocation13 + $0x30] sm:$0xf0]  ;;  %v4444_v37 = vld [vmem:[#allocation16 + $0x3e0] sm:$0xf]  ;;  %v5520_v38 = vld [vmem:[#allocation16 + $0x3ec] sm:$0xf0] }
  0x71   :  { %872 = vmatpush.bf16.msrb.mxu3 %v3945_v61  ;;  %v5340_v61 = vld [vmem:[#allocation13 + $0x54] sm:$0xf]  ;;  %v3713_v17 = vor.u32 %v5332_v9, %v3710_v10  ;;  %v4044_v42 = vld [vmem:[#allocation16 + $0xc0] sm:$0xf]  ;;  %v5420_v43 = vld [vmem:[#allocation16 + $0xcc] sm:$0xf0]  ;;  %v4445_v47 = vor.u32 %v5520_v38, %v4444_v37 }
  0x72   :  { %848 = vmatpush.bf16.msra.mxu1 %v3873_v14  ;;  %861 = vmatpush.bf16.msra.mxu2 %v3877_v18  ;;  %v3745_v4 = vor.u32 %v5340_v61, %v3742_v62  ;;  %v5333_v14 = vld [vmem:[#allocation13 + $0x1c] sm:$0xf]  ;;  %v3717_v18 = vor.u32 %v5337_v13, %v3716_v12  ;;  %v4172_v44 = vld [vmem:[#allocation16 + $0x1c0] sm:$0xf]  ;;  %v5516_v51 = vld [vmem:[#allocation16 + $0x3cc] sm:$0xf0]  ;;  %v4045_v52 = vor.u32 %v5420_v43, %v4044_v42 }
  0x73   :  { %v3721_v21 = vor.u32 %v5333_v14, %v3718_v15  ;;  %v4300_v48 = vld [vmem:[#allocation16 + $0x2c0] sm:$0xf]  ;;  %v5416_v55 = vld [vmem:[#allocation16 + $0xac] sm:$0xf0] }
  0x74   :  { %836 = vmatpush.bf16.msrb.mxu0 %v3837_v23  ;;  %v4156_v56 = vld [vmem:[#allocation16 + $0x1a0] sm:$0xf]  ;;  %v5448_v57 = vld [vmem:[#allocation16 + $0x1ac] sm:$0xf0] }
  0x75   :  { %873 = vmatpush.bf16.msrb.mxu3 %v3913_v7  ;;  %v3749_v7 = vor.u32 %v5345_v0, %v3748_v63  ;;  %v5480_v61 = vld [vmem:[#allocation16 + $0x2ac] sm:$0xf0]  ;;  %v4412_v62 = vld [vmem:[#allocation16 + $0x3a0] sm:$0xf]  ;;  %v4157_v1 = vor.u32 %v5448_v57, %v4156_v56 }
  0x76   :  { %849 = vmatpush.bf16.msra.mxu1 %v3841_v27  ;;  %862 = vmatpush.bf16.msra.mxu2 %v3845_v28  ;;  %v5512_v63 = vld [vmem:[#allocation16 + $0x3ac] sm:$0xf0]  ;;  %v4012_v2 = vld [vmem:[#allocation16 + $0x80] sm:$0xf] }
  0x77   :  { %v5444_v5 = vld [vmem:[#allocation16 + $0x18c] sm:$0xf0]  ;;  %v4268_v8 = vld [vmem:[#allocation16 + $0x280] sm:$0xf] }
  0x78   :  { %837 = vmatpush.bf16.msrb.mxu0 %v3805_v36  ;;  %v5488_v36 = vld [vmem:[#allocation16 + $0x2ec] sm:$0xf0]  ;;  %v4396_v10 = vld [vmem:[#allocation16 + $0x380] sm:$0xf] }
  0x79   :  { %874 = vmatpush.bf16.msrb.mxu3 %v3881_v19  ;;  %v4317_v46 = vor.u32 %v5488_v36, %v4316_v33  ;;  %v5476_v9 = vld [vmem:[#allocation16 + $0x28c] sm:$0xf0]  ;;  %v3996_v14 = vld [vmem:[#allocation16 + $0x60] sm:$0xf] }
  0x7a   :  { %850 = vmatpush.bf16.msra.mxu1 %v3809_v40  ;;  %863 = vmatpush.bf16.msra.mxu2 %v3813_v41  ;;  %v5408_v15 = vld [vmem:[#allocation16 + $0x6c] sm:$0xf0]  ;;  %v4700_v56 = vld [vmem:[#allocation16 + $0x5e0] sm:$0xf] }
  0x7b   :  { %v5468_v33 = vld [vmem:[#allocation16 + $0x24c] sm:$0xf0] }
  0x7c   :  { %838 = vmatpush.bf16.msrb.mxu0 %v3773_v49  ;;  %v5484_v49 = vld [vmem:[#allocation16 + $0x2cc] sm:$0xf0] }
  0x7d   :  { %875 = vmatpush.bf16.msrb.mxu3 %v3849_v31  ;;  %v4188_v31 = vld [vmem:[#allocation16 + $0x1e0] sm:$0xf]  ;;  %v5500_v36 = vld [vmem:[#allocation16 + $0x34c] sm:$0xf0] }
  0x7e   :  { %851 = vmatpush.bf16.msra.mxu1 %v3777_v50  ;;  %864 = vmatpush.bf16.msra.mxu2 %v3781_v54  ;;  %v4189_v41 = vor.u32 %v5456_v32, %v4188_v31  ;;  %v4428_v50 = vld [vmem:[#allocation16 + $0x3c0] sm:$0xf]  ;;  %v5432_v42 = vld [vmem:[#allocation16 + $0x12c] sm:$0xf0] }
  0x7f   :  { %v4028_v54 = vld [vmem:[#allocation16 + $0xa0] sm:$0xf] }
  0x80   :  { %839 = vmatpush.bf16.msrb.mxu0 %v3741_v3  ;;  %v4029_v0 = vor.u32 %v5416_v55, %v4028_v54  ;;  %v5412_v3 = vld [vmem:[#allocation16 + $0x8c] sm:$0xf0]  ;;  %v4236_v32 = vld [vmem:[#allocation16 + $0x240] sm:$0xf] }
  0x81   :  { %876 = vmatpush.bf16.msrb.mxu3 %v3817_v45  ;;  %v5452_v45 = vld [vmem:[#allocation16 + $0x1cc] sm:$0xf0]  ;;  %v4013_v12 = vor.u32 %v5412_v3, %v4012_v2  ;;  %v4237_v43 = vor.u32 %v5468_v33, %v4236_v32  ;;  %v4572_v54 = vld [vmem:[#allocation16 + $0x4e0] sm:$0xf] }
  0x82   :  { %852 = vmatpush.bf16.msra.mxu1 %v3745_v4  ;;  %865 = vmatpush.bf16.msra.mxu2 %v3749_v7  ;;  %v4173_v53 = vor.u32 %v5452_v45, %v4172_v44  ;;  %v4140_v4 = vld [vmem:[#allocation16 + $0x180] sm:$0xf]  ;;  %v4413_v7 = vor.u32 %v5512_v63, %v4412_v62  ;;  %v5552_v55 = vld [vmem:[#allocation16 + $0x4ec] sm:$0xf0] }
  0x83   :  { %v4141_v13 = vor.u32 %v5444_v5, %v4140_v4  ;;  %v4220_v45 = vld [vmem:[#allocation16 + $0x220] sm:$0xf]  ;;  %v5492_v63 = vld [vmem:[#allocation16 + $0x30c] sm:$0xf0] }
  0x84   :  { %840 = vmatpush.bf16.msrb.mxu0 %v3709_v16  ;;  %v4124_v16 = vld [vmem:[#allocation16 + $0x160] sm:$0xf]  ;;  %v5616_v3 = vld [vmem:[#allocation16 + $0x6ec] sm:$0xf0] }
  0x85   :  { %877 = vmatpush.bf16.msrb.mxu3 %v3785_v60  ;;  %v4284_v60 = vld [vmem:[#allocation16 + $0x2a0] sm:$0xf]  ;;  %v5648_v5 = vld [vmem:[#allocation16 + $0x7ec] sm:$0xf0] }
  0x86   :  { %853 = vmatpush.bf16.msra.mxu1 %v3713_v17  ;;  %866 = vmatpush.bf16.msra.mxu2 %v3717_v18  ;;  %v5440_v17 = vld [vmem:[#allocation16 + $0x16c] sm:$0xf0]  ;;  %v4269_v18 = vor.u32 %v5476_v9, %v4268_v8  ;;  %v4332_v62 = vld [vmem:[#allocation16 + $0x300] sm:$0xf] }
  0x87   :  { %v4956_v4 = vld [vmem:[#allocation16 + $0x7e0] sm:$0xf]  ;;  %v5548_v9 = vld [vmem:[#allocation16 + $0x4cc] sm:$0xf0] }
  0x88   :  { %v4556_v8 = vld [vmem:[#allocation16 + $0x4c0] sm:$0xf] }
  0x89   :  { %878 = vmatpush.bf16.msrb.mxu3 %v3753_v11  ;;  %v5508_v11 = vld [vmem:[#allocation16 + $0x38c] sm:$0xf0] }
  0x8d   :  { %879 = vmatpush.bf16.msrb.mxu3 %v3721_v21  ;;  %v5472_v21 = vld [vmem:[#allocation16 + $0x26c] sm:$0xf0] }
  0xc8   :  { %v6251_v35 = vpop.f32.mrf.mxu1 }
  0xcb   :  { %v269_v58 = vpop.f32.mrf.mxu3 }
  0xcc   :  { %v331_v59 = vpop.f32.mrf.mxu2  ;;  %v298_v22 = vadd.f32 %v6251_v35, %v269_v58  ;;  %v4061_v35 = vor.u32 %v5424_v30, %v4060_v29  ;;  %v4301_v58 = vor.u32 %v5484_v49, %v4300_v48  ;;  %v5436_v29 = vld [vmem:[#allocation16 + $0x14c] sm:$0xf0]  ;;  %v3948_v49 = vld [vmem:[#allocation16] sm:$0xf] }
  0xcd   :  { %v5496_v48 = vld [vmem:[#allocation16 + $0x32c] sm:$0xf0] }
  0xce   :  { %v335_v23 = vadd.f32 %v331_v59, %v298_v22  ;;  %v4429_v59 = vor.u32 %v5516_v51, %v4428_v50  ;;  %v4380_v22 = vld [vmem:[#allocation16 + $0x360] sm:$0xf]  ;;  %v5396_v51 = vld [vmem:[#allocation16 + $0xc] sm:$0xf0] }
  0xd0   :  { %v299_v6 = vpop.f32.mrf.mxu1 }
  0xd1   :  { %v4285_v6 = vor.u32 %v5480_v61, %v4284_v60  ;;  %v4204_v60 = vld [vmem:[#allocation16 + $0x200] sm:$0xf]  ;;  %v5460_v61 = vld [vmem:[#allocation16 + $0x20c] sm:$0xf0] }
  0xd3   :  { %v271_v19 = vpop.f32.mrf.mxu3 }
  0xd4   :  { %v333_v20 = vpop.f32.mrf.mxu2  ;;  %v4397_v19 = vor.u32 %v5508_v11, %v4396_v10  ;;  %v4684_v10 = vld [vmem:[#allocation16 + $0x5c0] sm:$0xf]  ;;  %v5580_v11 = vld [vmem:[#allocation16 + $0x5cc] sm:$0xf0] }
  0xd5   :  { %v4252_v20 = vld [vmem:[#allocation16 + $0x260] sm:$0xf] }
  0xd6   :  { %v4253_v30 = vor.u32 %v5472_v21, %v4252_v20  ;;  %v4557_v20 = vor.u32 %v5548_v9, %v4556_v8  ;;  %v4685_v21 = vor.u32 %v5580_v11, %v4684_v10  ;;  %v4748_v8 = vld [vmem:[#allocation16 + $0x640] sm:$0xf]  ;;  %v5596_v9 = vld [vmem:[#allocation16 + $0x64c] sm:$0xf0] }
  0xd7   :  { %v4876_v10 = vld [vmem:[#allocation16 + $0x740] sm:$0xf]  ;;  %v4749_v11 = vor.u32 %v5596_v9, %v4748_v8  ;;  %v4030_v8 = vld [vmem:[#allocation16 + $0xb0] sm:$0xf0]  ;;  %v5446_v9 = vld [vmem:[#allocation16 + $0x1a4] sm:$0xf] }
  0xdb   :  { %v366_v25 = vpop.f32.mrf.mxu3 }
  0xdc   :  { %v370_v26 = vadd.f32 %v366_v25, %v335_v23  ;;  %v5504_v23 = vld [vmem:[#allocation16 + $0x36c] sm:$0xf0]  ;;  %v4125_v25 = vor.u32 %v5440_v17, %v4124_v16  ;;  %v4812_v16 = vld [vmem:[#allocation16 + $0x6c0] sm:$0xf] }
  0xdd   :  { %v4381_v31 = vor.u32 %v5504_v23, %v4380_v22  ;;  %v5612_v17 = vld [vmem:[#allocation16 + $0x6cc] sm:$0xf0]  ;;  %v4540_v22 = vld [vmem:[#allocation16 + $0x4a0] sm:$0xf] }
  0xde   :  { %v375_v27 = vadd.f32 %v5759_v24, %v370_v26  ;;  %v3997_v24 = vor.u32 %v5408_v15, %v3996_v14  ;;  %v3980_v26 = vld [vmem:[#allocation16 + $0x40] sm:$0xf]  ;;  %v4957_v15 = vor.u32 %v5648_v5, %v4956_v4  ;;  %v5544_v23 = vld [vmem:[#allocation16 + $0x4ac] sm:$0xf0] }
  0xdf   :  { %v4541_v32 = vor.u32 %v5544_v23, %v4540_v22  ;;  %v4604_v4 = vld [vmem:[#allocation16 + $0x520] sm:$0xf] }
  0xe0   :  { %v376_v28 = vmul.f32 0.01, %v375_v27  ;;  %v4860_v22 = vld [vmem:[#allocation16 + $0x720] sm:$0xf] }
  0xe2   :  { %v377_v34 = vmax.f32 %v375_v27, %v376_v28  ;;  %v5404_v27 = vld [vmem:[#allocation16 + $0x4c] sm:$0xf0]  ;;  %v4108_v28 = vld [vmem:[#allocation16 + $0x140] sm:$0xf] }
  0xe3   :  { %v368_v39 = vpop.f32.mrf.mxu3  ;;  %v3981_v37 = vor.u32 %v5404_v27, %v3980_v26  ;;  %v4109_v38 = vor.u32 %v5436_v29, %v4108_v28  ;;  %v4813_v26 = vor.u32 %v5612_v17, %v4812_v16  ;;  %v4796_v28 = vld [vmem:[#allocation16 + $0x6a0] sm:$0xf]  ;;  %v5608_v29 = vld [vmem:[#allocation16 + $0x6ac] sm:$0xf0] }
  0xe4   :  { %v6254_v40 = vpack.c.bf16 %v377_v34, %v377_v34  ;;  %v4364_v34 = vld [vmem:[#allocation16 + $0x340] sm:$0xf] }
  0xe5   :  { %v3964_v39 = vld [vmem:[#allocation16 + $0x20] sm:$0xf]  ;;  %v4365_v44 = vor.u32 %v5500_v36, %v4364_v34  ;;  %v5540_v36 = vld [vmem:[#allocation16 + $0x48c] sm:$0xf0] }
  0xe6   :  { %789 = vmatmul.bf16.vlgmr.msra.gmra.mxu0 %v6254_v40  ;;  %802 = vmatmul.bf16.vlgmr.msrb.gmra.mxu1 %v6254_v40  ;;  %v4524_v34 = vld [vmem:[#allocation16 + $0x480] sm:$0xf] }
  0xe7   :  { %815 = vmatmul.bf16.vlgmr.msrb.gmra.mxu2 %v6254_v40  ;;  %828 = vmatmul.bf16.vlgmr.msra.gmra.mxu3 %v6254_v40  ;;  %v4588_v17 = vld [vmem:[#allocation16 + $0x500] sm:$0xf] }
  0xe8   :  { %2455 = vmatpush.bf16.msra.mxu0 %v4061_v35  ;;  %2468 = vmatpush.bf16.msrb.mxu1 %v4189_v41  ;;  %v5400_v35 = vld [vmem:[#allocation16 + $0x2c] sm:$0xf0]  ;;  %v4092_v41 = vld [vmem:[#allocation16 + $0x120] sm:$0xf] }
  0xe9   :  { %2481 = vmatpush.bf16.msrb.mxu2 %v4317_v46  ;;  %2494 = vmatpush.bf16.msra.mxu3 %v4445_v47  ;;  %v5464_v46 = vld [vmem:[#allocation16 + $0x22c] sm:$0xf0]  ;;  %v4348_v47 = vld [vmem:[#allocation16 + $0x320] sm:$0xf]  ;;  %v4093_v50 = vor.u32 %v5432_v42, %v4092_v41 }
  0xea   :  { %v4221_v57 = vor.u32 %v5464_v46, %v4220_v45  ;;  %v4780_v41 = vld [vmem:[#allocation16 + $0x680] sm:$0xf]  ;;  %v5604_v42 = vld [vmem:[#allocation16 + $0x68c] sm:$0xf0]  ;;  %v4525_v45 = vor.u32 %v5540_v36, %v4524_v34 }
  0xec   :  { %2456 = vmatpush.bf16.msra.mxu0 %v4045_v52  ;;  %2469 = vmatpush.bf16.msrb.mxu1 %v4173_v53  ;;  %v4076_v52 = vld [vmem:[#allocation16 + $0x100] sm:$0xf]  ;;  %v5428_v53 = vld [vmem:[#allocation16 + $0x10c] sm:$0xf0] }
  0xed   :  { %2482 = vmatpush.bf16.msrb.mxu2 %v4301_v58  ;;  %2495 = vmatpush.bf16.msra.mxu3 %v4429_v59  ;;  %v4349_v58 = vor.u32 %v5496_v48, %v4348_v47  ;;  %v5584_v59 = vld [vmem:[#allocation16 + $0x5ec] sm:$0xf0]  ;;  %v4077_v2 = vor.u32 %v5428_v53, %v4076_v52  ;;  %v4508_v47 = vld [vmem:[#allocation16 + $0x460] sm:$0xf] }
  0xee   :  { %v5536_v48 = vld [vmem:[#allocation16 + $0x46c] sm:$0xf0] }
  0xef   :  { %v4509_v52 = vor.u32 %v5536_v48, %v4508_v47 }
  0xf0   :  { %2457 = vmatpush.bf16.msra.mxu0 %v4029_v0  ;;  %2470 = vmatpush.bf16.msrb.mxu1 %v4157_v1  ;;  %v4828_v0 = vld [vmem:[#allocation16 + $0x6e0] sm:$0xf]  ;;  %v3949_v1 = vor.u32 %v5396_v51, %v3948_v49 }
  0xf1   :  { %2483 = vmatpush.bf16.msrb.mxu2 %v4285_v6  ;;  %2496 = vmatpush.bf16.msra.mxu3 %v4413_v7  ;;  %v4573_v6 = vor.u32 %v5552_v55, %v4572_v54  ;;  %v4701_v7 = vor.u32 %v5584_v59, %v4700_v56  ;;  %v4829_v14 = vor.u32 %v5616_v3, %v4828_v0  ;;  %v4636_v49 = vld [vmem:[#allocation16 + $0x560] sm:$0xf]  ;;  %v5532_v55 = vld [vmem:[#allocation16 + $0x44c] sm:$0xf0] }
  0xf2   :  { %v4492_v54 = vld [vmem:[#allocation16 + $0x440] sm:$0xf]  ;;  %v5632_v0 = vld [vmem:[#allocation16 + $0x76c] sm:$0xf0] }
  0xf3   :  { %v4620_v56 = vld [vmem:[#allocation16 + $0x540] sm:$0xf]  ;;  %v5528_v3 = vld [vmem:[#allocation16 + $0x42c] sm:$0xf0] }
  0xf4   :  { %2458 = vmatpush.bf16.msra.mxu0 %v4013_v12  ;;  %2471 = vmatpush.bf16.msrb.mxu1 %v4141_v13  ;;  %v4205_v12 = vor.u32 %v5460_v61, %v4204_v60  ;;  %v4333_v13 = vor.u32 %v5492_v63, %v4332_v62  ;;  %v4764_v60 = vld [vmem:[#allocation16 + $0x660] sm:$0xf]  ;;  %v5600_v61 = vld [vmem:[#allocation16 + $0x66c] sm:$0xf0] }
  0xf5   :  { %2484 = vmatpush.bf16.msrb.mxu2 %v4269_v18  ;;  %2497 = vmatpush.bf16.msra.mxu3 %v4397_v19  ;;  %v4940_v18 = vld [vmem:[#allocation16 + $0x7c0] sm:$0xf]  ;;  %v5644_v19 = vld [vmem:[#allocation16 + $0x7cc] sm:$0xf0]  ;;  %v4765_v62 = vor.u32 %v5600_v61, %v4764_v60 }
  0xf6   :  { %841 = vmatmul.bf16.vlgmr.msrb.gmra.mxu0 %v6254_v40  ;;  %854 = vmatmul.bf16.vlgmr.msra.gmra.mxu1 %v6254_v40  ;;  %v4941_v27 = vor.u32 %v5644_v19, %v4940_v18  ;;  %v4892_v63 = vld [vmem:[#allocation16 + $0x760] sm:$0xf]  ;;  %v5556_v18 = vld [vmem:[#allocation16 + $0x50c] sm:$0xf0] }
  0xf7   :  { %867 = vmatmul.bf16.vlgmr.msra.gmra.mxu2 %v6254_v40  ;;  %880 = vmatmul.bf16.vlgmr.msrb.gmra.mxu3 %v6254_v40  ;;  %v3965_v40 = vor.u32 %v5400_v35, %v3964_v39  ;;  %v4797_v39 = vor.u32 %v5608_v29, %v4796_v28  ;;  %v4589_v19 = vor.u32 %v5556_v18, %v4588_v17  ;;  %v4844_v29 = vld [vmem:[#allocation16 + $0x700] sm:$0xf]  ;;  %v5482_v18 = vld [vmem:[#allocation16 + $0x2c4] sm:$0xf] }
  0xf8   :  { %2459 = vmatpush.bf16.msra.mxu0 %v3997_v24  ;;  %2472 = vmatpush.bf16.msrb.mxu1 %v4125_v25  ;;  %v4668_v24 = vld [vmem:[#allocation16 + $0x5a0] sm:$0xf]  ;;  %v5576_v25 = vld [vmem:[#allocation16 + $0x5ac] sm:$0xf0] }
  0xf9   :  { %2485 = vmatpush.bf16.msrb.mxu2 %v4253_v30  ;;  %2498 = vmatpush.bf16.msra.mxu3 %v4381_v31  ;;  %v4924_v30 = vld [vmem:[#allocation16 + $0x7a0] sm:$0xf]  ;;  %v5640_v31 = vld [vmem:[#allocation16 + $0x7ac] sm:$0xf0]  ;;  %v4669_v33 = vor.u32 %v5576_v25, %v4668_v24 }
  0xfa   :  { %v4925_v35 = vor.u32 %v5640_v31, %v4924_v30  ;;  %v5624_v24 = vld [vmem:[#allocation16 + $0x72c] sm:$0xf0] }
  0xfb   :  { %v4861_v25 = vor.u32 %v5624_v24, %v4860_v22  ;;  %v5620_v30 = vld [vmem:[#allocation16 + $0x70c] sm:$0xf0]  ;;  %v4430_v24 = vld [vmem:[#allocation16 + $0x3d0] sm:$0xf0] }
  0xfc   :  { %2460 = vmatpush.bf16.msra.mxu0 %v3981_v37  ;;  %2473 = vmatpush.bf16.msrb.mxu1 %v4109_v38  ;;  %v4652_v37 = vld [vmem:[#allocation16 + $0x580] sm:$0xf]  ;;  %v5572_v38 = vld [vmem:[#allocation16 + $0x58c] sm:$0xf0]  ;;  %v4845_v31 = vor.u32 %v5620_v30, %v4844_v29  ;;  %v5442_v29 = vld [vmem:[#allocation16 + $0x184] sm:$0xf] }
  0xfd   :  { %2486 = vmatpush.bf16.msrb.mxu2 %v4237_v43  ;;  %2499 = vmatpush.bf16.msra.mxu3 %v4365_v44  ;;  %v4908_v43 = vld [vmem:[#allocation16 + $0x780] sm:$0xf]  ;;  %v5636_v44 = vld [vmem:[#allocation16 + $0x78c] sm:$0xf0]  ;;  %v4653_v46 = vor.u32 %v5572_v38, %v4652_v37  ;;  %v4142_v30 = vld [vmem:[#allocation16 + $0x190] sm:$0xf0] }
  0xfe   :  { %v4909_v51 = vor.u32 %v5636_v44, %v4908_v43 }
 0x100   :  { %2461 = vmatpush.bf16.msra.mxu0 %v3965_v40  ;;  %2474 = vmatpush.bf16.msrb.mxu1 %v4093_v50  ;;  %v5568_v40 = vld [vmem:[#allocation16 + $0x56c] sm:$0xf0]  ;;  %v4781_v50 = vor.u32 %v5604_v42, %v4780_v41  ;;  %v4062_v41 = vld [vmem:[#allocation16 + $0xf0] sm:$0xf0]  ;;  %v5454_v42 = vld [vmem:[#allocation16 + $0x1e4] sm:$0xf] }
 0x101   :  { %2487 = vmatpush.bf16.msrb.mxu2 %v4221_v57  ;;  %2500 = vmatpush.bf16.msra.mxu3 %v4349_v58  ;;  %v4637_v53 = vor.u32 %v5568_v40, %v4636_v49  ;;  %v4493_v57 = vor.u32 %v5532_v55, %v4492_v54  ;;  %v5564_v58 = vld [vmem:[#allocation16 + $0x54c] sm:$0xf0] }
 0x102   :  { %v4621_v59 = vor.u32 %v5564_v58, %v4620_v56  ;;  %v4046_v56 = vld [vmem:[#allocation16 + $0xd0] sm:$0xf0] }
 0x103   :  { %v4174_v58 = vld [vmem:[#allocation16 + $0x1d0] sm:$0xf0] }
 0x104   :  { %2462 = vmatpush.bf16.msra.mxu0 %v3949_v1  ;;  %2475 = vmatpush.bf16.msrb.mxu1 %v4077_v2  ;;  %v4893_v1 = vor.u32 %v5632_v0, %v4892_v63  ;;  %v4476_v2 = vld [vmem:[#allocation16 + $0x420] sm:$0xf]  ;;  %v5486_v63 = vld [vmem:[#allocation16 + $0x2e4] sm:$0xf]  ;;  %v4318_v0 = vld [vmem:[#allocation16 + $0x2f0] sm:$0xf0] }
 0x105   :  { %2488 = vmatpush.bf16.msrb.mxu2 %v4205_v12  ;;  %2501 = vmatpush.bf16.msra.mxu3 %v4333_v13  ;;  %v4477_v5 = vor.u32 %v5528_v3, %v4476_v2  ;;  %v5628_v12 = vld [vmem:[#allocation16 + $0x74c] sm:$0xf0]  ;;  %v4446_v2 = vld [vmem:[#allocation16 + $0x3f0] sm:$0xf0]  ;;  %v5414_v3 = vld [vmem:[#allocation16 + $0xa4] sm:$0xf] }
 0x106   :  { %v4877_v13 = vor.u32 %v5628_v12, %v4876_v10  ;;  %v4158_v10 = vld [vmem:[#allocation16 + $0x1b0] sm:$0xf0]  ;;  %v4033_v17 = vor.u32 %v5414_v3, %v4030_v8  ;;  %v5402_v3 = vld [vmem:[#allocation16 + $0x44] sm:$0xf] }
 0x107   :  { %v4161_v22 = vor.u32 %v5446_v9, %v4158_v10  ;;  %v3982_v8 = vld [vmem:[#allocation16 + $0x50] sm:$0xf0]  ;;  %v5434_v9 = vld [vmem:[#allocation16 + $0x144] sm:$0xf] }
 0x108   :  { %2507 = vmatpush.bf16.msrb.mxu0 %v4573_v6  ;;  %2520 = vmatpush.bf16.msra.mxu1 %v4701_v7  ;;  %v5560_v6 = vld [vmem:[#allocation16 + $0x52c] sm:$0xf0]  ;;  %v4110_v10 = vld [vmem:[#allocation16 + $0x150] sm:$0xf0] }
 0x109   :  { %2533 = vmatpush.bf16.msra.mxu2 %v4829_v14  ;;  %2546 = vmatpush.bf16.msrb.mxu3 %v4957_v15  ;;  %v4605_v7 = vor.u32 %v5560_v6, %v4604_v4  ;;  %v4460_v14 = vld [vmem:[#allocation16 + $0x400] sm:$0xf]  ;;  %v5524_v15 = vld [vmem:[#allocation16 + $0x40c] sm:$0xf0] }
 0x10a   :  { %v4461_v16 = vor.u32 %v5524_v15, %v4460_v14 }
 0x10c   :  { %2508 = vmatpush.bf16.msrb.mxu0 %v4557_v20  ;;  %2521 = vmatpush.bf16.msra.mxu1 %v4685_v21  ;;  %v4732_v20 = vld [vmem:[#allocation16 + $0x620] sm:$0xf]  ;;  %v5592_v21 = vld [vmem:[#allocation16 + $0x62c] sm:$0xf0] }
 0x10d   :  { %2534 = vmatpush.bf16.msra.mxu2 %v4813_v26  ;;  %2547 = vmatpush.bf16.msrb.mxu3 %v4941_v27  ;;  %v4733_v23 = vor.u32 %v5592_v21, %v4732_v20  ;;  %v4716_v26 = vld [vmem:[#allocation16 + $0x600] sm:$0xf]  ;;  %v5588_v27 = vld [vmem:[#allocation16 + $0x60c] sm:$0xf0] }
 0x10e   :  { %v4717_v28 = vor.u32 %v5588_v27, %v4716_v26 }
 0x110   :  { %2509 = vmatpush.bf16.msrb.mxu0 %v4541_v32  ;;  %2522 = vmatpush.bf16.msra.mxu1 %v4669_v33  ;;  %v6264_v32 = vld [vmem:[#allocation14] sm:$0xff] }
 0x111   :  { %2535 = vmatpush.bf16.msra.mxu2 %v4797_v39  ;;  %2548 = vmatpush.bf16.msrb.mxu3 %v4925_v35  ;;  %v445_v33 = vperm.slane %v6264_v32, 0  ;;  %v446_v34 = vperm.slane %v6264_v32, 1  ;;  %v5422_v35 = vld [vmem:[#allocation16 + $0xe4] sm:$0xf]  ;;  %v448_v47 = vperm.slane %v6264_v32, 3  ;;  %v449_v15 = vperm.slane %v6264_v32, 4 }
 0x112   :  { %v4065_v40 = vor.u32 %v5422_v35, %v4062_v41  ;;  %v4286_v35 = vld [vmem:[#allocation16 + $0x2b0] sm:$0xf0] }
 0x114   :  { %2510 = vmatpush.bf16.msrb.mxu0 %v4525_v45  ;;  %2523 = vmatpush.bf16.msra.mxu1 %v4653_v46  ;;  %v4190_v45 = vld [vmem:[#allocation16 + $0x1f0] sm:$0xf0]  ;;  %v447_v46 = vperm.slane %v6264_v32, 2 }
 0x115   :  { %2536 = vmatpush.bf16.msra.mxu2 %v4781_v50  ;;  %2549 = vmatpush.bf16.msrb.mxu3 %v4909_v51  ;;  %v4193_v50 = vor.u32 %v5454_v42, %v4190_v45  ;;  %v5418_v51 = vld [vmem:[#allocation16 + $0xc4] sm:$0xf]  ;;  %v4145_v42 = vor.u32 %v5442_v29, %v4142_v30 }
 0x116   :  { %v4049_v6 = vor.u32 %v5418_v51, %v4046_v56  ;;  %v5510_v45 = vld [vmem:[#allocation16 + $0x3a4] sm:$0xf] }
 0x117   :  { %v5438_v51 = vld [vmem:[#allocation16 + $0x164] sm:$0xf] }
 0x118   :  { %2511 = vmatpush.bf16.msrb.mxu0 %v4509_v52  ;;  %2524 = vmatpush.bf16.msra.mxu1 %v4637_v53 }
 0x119   :  { %2537 = vmatpush.bf16.msra.mxu2 %v4765_v62  ;;  %2550 = vmatpush.bf16.msrb.mxu3 %v4893_v1  ;;  %v5518_v1 = vld [vmem:[#allocation16 + $0x3e4] sm:$0xf] }
 0x11a   :  { %v4449_v14 = vor.u32 %v5518_v1, %v4446_v2 }
 0x11c   :  { %2512 = vmatpush.bf16.msrb.mxu0 %v4493_v57  ;;  %2525 = vmatpush.bf16.msra.mxu1 %v4621_v59  ;;  %v5450_v57 = vld [vmem:[#allocation16 + $0x1c4] sm:$0xf] }
 0x11d   :  { %2538 = vmatpush.bf16.msra.mxu2 %v4749_v11  ;;  %2551 = vmatpush.bf16.msrb.mxu3 %v4877_v13  ;;  %v4321_v13 = vor.u32 %v5486_v63, %v4318_v0 }
 0x120   :  { %2513 = vmatpush.bf16.msrb.mxu0 %v4477_v5  ;;  %2526 = vmatpush.bf16.msra.mxu1 %v4605_v7  ;;  %v4177_v7 = vor.u32 %v5450_v57, %v4174_v58  ;;  %v5474_v58 = vld [vmem:[#allocation16 + $0x284] sm:$0xf] }
 0x121   :  { %2539 = vmatpush.bf16.msra.mxu2 %v4733_v23  ;;  %2552 = vmatpush.bf16.msrb.mxu3 %v4861_v25  ;;  %v5514_v23 = vld [vmem:[#allocation16 + $0x3c4] sm:$0xf] }
 0x122   :  { %v5410_v25 = vld [vmem:[#allocation16 + $0x84] sm:$0xf] }
 0x124   :  { %2514 = vmatpush.bf16.msrb.mxu0 %v4461_v16  ;;  %2527 = vmatpush.bf16.msra.mxu1 %v4589_v19  ;;  %v450_v16 = vperm.slane %v6264_v32, 5  ;;  %v4302_v19 = vld [vmem:[#allocation16 + $0x2d0] sm:$0xf0] }
 0x125   :  { %2540 = vmatpush.bf16.msra.mxu2 %v4717_v28  ;;  %2553 = vmatpush.bf16.msrb.mxu3 %v4845_v31  ;;  %v4014_v28 = vld [vmem:[#allocation16 + $0x90] sm:$0xf0] }
 0x126   :  { %v4017_v41 = vor.u32 %v5410_v25, %v4014_v28  ;;  %v4094_v28 = vld [vmem:[#allocation16 + $0x130] sm:$0xf0] }
 0x163   :  { %v790_v36 = vpop.f32.mrf.mxu0  ;;  %v803_v37 = vpop.f32.mrf.mxu1 }
 0x164   :  { %v791_v38 = vadd.f32 %v790_v36, %v445_v33  ;;  %v804_v39 = vadd.f32 %v803_v37, %v446_v34  ;;  %v4305_v34 = vor.u32 %v5482_v18, %v4302_v19  ;;  %v4382_v18 = vld [vmem:[#allocation16 + $0x370] sm:$0xf0]  ;;  %v3985_v19 = vor.u32 %v5402_v3, %v3982_v8 }
 0x165   :  { %v4334_v8 = vld [vmem:[#allocation16 + $0x310] sm:$0xf0] }
 0x166   :  { %v885_v43 = vmul.f32 0.01, %v791_v38  ;;  %v886_v44 = vmul.f32 0.01, %v804_v39 }
 0x168   :  { %v893_v48 = vmax.f32 %v791_v38, %v885_v43  ;;  %v894_v49 = vmax.f32 %v804_v39, %v886_v44  ;;  %v4433_v38 = vor.u32 %v5514_v23, %v4430_v24  ;;  %v5478_v39 = vld [vmem:[#allocation16 + $0x2a4] sm:$0xf]  ;;  %v451_v43 = vperm.slane %v6264_v32, 6 }
 0x169   :  { %v452_v44 = vperm.slane %v6264_v32, 7  ;;  %v4398_v32 = vld [vmem:[#allocation16 + $0x390] sm:$0xf0]  ;;  %v5398_v23 = vld [vmem:[#allocation16 + $0x24] sm:$0xf] }
 0x16a   :  { %v6270_v52 = vpack.c.bf16 %v893_v48, %v893_v48  ;;  %v6272_v53 = vpack.c.bf16 %v894_v49, %v894_v49  ;;  %v816_v54 = vpop.f32.mrf.mxu2  ;;  %v829_v55 = vpop.f32.mrf.mxu3  ;;  %v5406_v49 = vld [vmem:[#allocation16 + $0x64] sm:$0xf] }
 0x16b   :  { %v817_v59 = vadd.f32 %v816_v54, %v447_v46  ;;  %v830_v60 = vadd.f32 %v829_v55, %v448_v47  ;;  %v792_v61 = vpop.f32.mrf.mxu0  ;;  %v805_v62 = vpop.f32.mrf.mxu1  ;;  %v4414_v46 = vld [vmem:[#allocation16 + $0x3b0] sm:$0xf0] }
 0x16c   :  { %2463 = vmatmul.bf16.vlgmr.msra.gmra.mxu0 %v6270_v52  ;;  %2476 = vmatmul.bf16.vlgmr.msrb.gmra.mxu1 %v6272_v53  ;;  %v4126_v54 = vld [vmem:[#allocation16 + $0x170] sm:$0xf0]  ;;  %v4417_v57 = vor.u32 %v5510_v45, %v4414_v46  ;;  %v5426_v45 = vld [vmem:[#allocation16 + $0x104] sm:$0xf] }
 0x16d   :  { %v887_v4 = vmul.f32 0.01, %v817_v59  ;;  %v888_v5 = vmul.f32 0.01, %v830_v60  ;;  %2559 = vmatpush.bf16.msra.mxu0 %v4065_v40  ;;  %2572 = vmatpush.bf16.msrb.mxu1 %v4193_v50  ;;  %v4289_v40 = vor.u32 %v5478_v39, %v4286_v35  ;;  %v3998_v50 = vld [vmem:[#allocation16 + $0x70] sm:$0xf0]  ;;  %v4129_v2 = vor.u32 %v5438_v51, %v4126_v54 }
 0x16e   :  { %v4001_v1 = vor.u32 %v5406_v49, %v3998_v50  ;;  %v4078_v46 = vld [vmem:[#allocation16 + $0x110] sm:$0xf0]  ;;  %v5582_v50 = vld [vmem:[#allocation16 + $0x5e4] sm:$0xf] }
 0x16f   :  { %v895_v11 = vmax.f32 %v817_v59, %v887_v4  ;;  %v896_v12 = vmax.f32 %v830_v60, %v888_v5  ;;  %v4270_v59 = vld [vmem:[#allocation16 + $0x290] sm:$0xf0]  ;;  %v5506_v60 = vld [vmem:[#allocation16 + $0x384] sm:$0xf] }
 0x170   :  { %v4702_v51 = vld [vmem:[#allocation16 + $0x5f0] sm:$0xf0]  ;;  %v5462_v54 = vld [vmem:[#allocation16 + $0x224] sm:$0xf] }
 0x171   :  { %v6278_v20 = vpack.c.bf16 %v895_v11, %v895_v11  ;;  %v6280_v21 = vpack.c.bf16 %v896_v12, %v896_v12  ;;  %2560 = vmatpush.bf16.msra.mxu0 %v4049_v6  ;;  %2573 = vmatpush.bf16.msrb.mxu1 %v4177_v7  ;;  %v4273_v11 = vor.u32 %v5474_v58, %v4270_v59 }
 0x172   :  { %v818_v26 = vpop.f32.mrf.mxu2  ;;  %v831_v27 = vpop.f32.mrf.mxu3  ;;  %v4401_v12 = vor.u32 %v5506_v60, %v4398_v32  ;;  %v4081_v59 = vor.u32 %v5426_v45, %v4078_v46  ;;  %v4705_v32 = vor.u32 %v5582_v50, %v4702_v51 }
 0x173   :  { %2489 = vmatmul.bf16.vlgmr.msrb.gmra.mxu2 %v6278_v20  ;;  %2502 = vmatmul.bf16.vlgmr.msra.gmra.mxu3 %v6280_v21  ;;  %v842_v31 = vpop.f32.mrf.mxu0  ;;  %v855_v33 = vpop.f32.mrf.mxu1  ;;  %v3966_v26 = vld [vmem:[#allocation16 + $0x30] sm:$0xf0]  ;;  %v5430_v27 = vld [vmem:[#allocation16 + $0x124] sm:$0xf] }
 0x174   :  { %2585 = vmatpush.bf16.msrb.mxu2 %v4321_v13  ;;  %2598 = vmatpush.bf16.msra.mxu3 %v4449_v14  ;;  %v843_v36 = vadd.f32 %v842_v31, %v449_v15  ;;  %v856_v37 = vadd.f32 %v855_v33, %v450_v16  ;;  %v5470_v13 = vld [vmem:[#allocation16 + $0x264] sm:$0xf]  ;;  %v4254_v14 = vld [vmem:[#allocation16 + $0x270] sm:$0xf0] }
 0x175   :  { %2561 = vmatpush.bf16.msra.mxu0 %v4033_v17  ;;  %2574 = vmatpush.bf16.msrb.mxu1 %v4161_v22  ;;  %v5502_v15 = vld [vmem:[#allocation16 + $0x364] sm:$0xf]  ;;  %v4113_v22 = vor.u32 %v5434_v9, %v4110_v10  ;;  %v4257_v29 = vor.u32 %v5470_v13, %v4254_v14  ;;  %v4830_v10 = vld [vmem:[#allocation16 + $0x6f0] sm:$0xf0] }
 0x176   :  { %v889_v47 = vmul.f32 0.01, %v843_v36  ;;  %v890_v48 = vmul.f32 0.01, %v856_v37  ;;  %v4385_v30 = vor.u32 %v5502_v15, %v4382_v18  ;;  %v5466_v31 = vld [vmem:[#allocation16 + $0x244] sm:$0xf] }
 0x177   :  { %v5614_v9 = vld [vmem:[#allocation16 + $0x6e4] sm:$0xf]  ;;  %v4542_v18 = vld [vmem:[#allocation16 + $0x4b0] sm:$0xf0] }
 0x178   :  { %v897_v55 = vmax.f32 %v843_v36, %v889_v47  ;;  %v898_v56 = vmax.f32 %v856_v37, %v890_v48  ;;  %2586 = vmatpush.bf16.msrb.mxu2 %v4305_v34  ;;  %2599 = vmatpush.bf16.msra.mxu3 %v4433_v38  ;;  %v4238_v36 = vld [vmem:[#allocation16 + $0x250] sm:$0xf0]  ;;  %v5498_v37 = vld [vmem:[#allocation16 + $0x344] sm:$0xf] }
 0x179   :  { %2562 = vmatpush.bf16.msra.mxu0 %v4017_v41  ;;  %2575 = vmatpush.bf16.msrb.mxu1 %v4145_v42  ;;  %v4366_v38 = vld [vmem:[#allocation16 + $0x350] sm:$0xf0]  ;;  %v3969_v41 = vor.u32 %v5398_v23, %v3966_v26  ;;  %v4097_v42 = vor.u32 %v5430_v27, %v4094_v28  ;;  %v5550_v47 = vld [vmem:[#allocation16 + $0x4e4] sm:$0xf]  ;;  %v4241_v49 = vor.u32 %v5466_v31, %v4238_v36 }
 0x17a   :  { %v6286_v61 = vpack.c.bf16 %v897_v55, %v897_v55  ;;  %v6288_v62 = vpack.c.bf16 %v898_v56, %v898_v56  ;;  %v868_v63 = vpop.f32.mrf.mxu2  ;;  %v881_v0 = vpop.f32.mrf.mxu3  ;;  %v4574_v48 = vld [vmem:[#allocation16 + $0x4f0] sm:$0xf0]  ;;  %v5494_v56 = vld [vmem:[#allocation16 + $0x324] sm:$0xf]  ;;  %v4833_v23 = vor.u32 %v5614_v9, %v4830_v10 }
 0x17b   :  { %v869_v4 = vadd.f32 %v868_v63, %v451_v43  ;;  %v882_v5 = vadd.f32 %v881_v0, %v452_v44  ;;  %v844_v6 = vpop.f32.mrf.mxu0  ;;  %v857_v7 = vpop.f32.mrf.mxu1  ;;  %v5394_v43 = vld [vmem:[#allocation16 + $0x4] sm:$0xf]  ;;  %v3950_v44 = vld [vmem:[#allocation16 + $0x10] sm:$0xf0]  ;;  %v4577_v60 = vor.u32 %v5550_v47, %v4574_v48 }
 0x17c   :  { %2587 = vmatpush.bf16.msrb.mxu2 %v4289_v40  ;;  %2600 = vmatpush.bf16.msra.mxu3 %v4417_v57  ;;  %v4369_v40 = vor.u32 %v5498_v37, %v4366_v38  ;;  %v4222_v55 = vld [vmem:[#allocation16 + $0x230] sm:$0xf0]  ;;  %v3953_v58 = vor.u32 %v5394_v43, %v3950_v44  ;;  %v5546_v63 = vld [vmem:[#allocation16 + $0x4c4] sm:$0xf] }
 0x17d   :  { %v891_v16 = vmul.f32 0.01, %v869_v4  ;;  %v892_v17 = vmul.f32 0.01, %v882_v5  ;;  %2515 = vmatmul.bf16.vlgmr.msrb.gmra.mxu0 %v6286_v61  ;;  %2528 = vmatmul.bf16.vlgmr.msra.gmra.mxu1 %v6288_v62  ;;  %v4350_v57 = vld [vmem:[#allocation16 + $0x330] sm:$0xf0] }
 0x17e   :  { %2563 = vmatpush.bf16.msra.mxu0 %v4001_v1  ;;  %2576 = vmatpush.bf16.msrb.mxu1 %v4129_v2  ;;  %v4558_v0 = vld [vmem:[#allocation16 + $0x4d0] sm:$0xf0]  ;;  %v5578_v1 = vld [vmem:[#allocation16 + $0x5c4] sm:$0xf]  ;;  %v4225_v2 = vor.u32 %v5462_v54, %v4222_v55  ;;  %v4353_v3 = vor.u32 %v5494_v56, %v4350_v57 }
 0x17f   :  { %v899_v24 = vmax.f32 %v869_v4, %v891_v16  ;;  %v900_v25 = vmax.f32 %v882_v5, %v892_v17  ;;  %v4686_v4 = vld [vmem:[#allocation16 + $0x5d0] sm:$0xf0]  ;;  %v5458_v5 = vld [vmem:[#allocation16 + $0x204] sm:$0xf]  ;;  %v4561_v13 = vor.u32 %v5546_v63, %v4558_v0 }
 0x180   :  { %2588 = vmatpush.bf16.msrb.mxu2 %v4273_v11  ;;  %2601 = vmatpush.bf16.msra.mxu3 %v4401_v12  ;;  %v4206_v6 = vld [vmem:[#allocation16 + $0x210] sm:$0xf0]  ;;  %v5490_v7 = vld [vmem:[#allocation16 + $0x304] sm:$0xf]  ;;  %v4689_v14 = vor.u32 %v5578_v1, %v4686_v4 }
 0x181   :  { %v6292_v33 = vpack.c.bf16 %v899_v24, %v899_v24  ;;  %v6294_v34 = vpack.c.bf16 %v900_v25, %v900_v25  ;;  %v5646_v11 = vld [vmem:[#allocation16 + $0x7e4] sm:$0xf]  ;;  %v4958_v12 = vld [vmem:[#allocation16 + $0x7f0] sm:$0xf0]  ;;  %v4209_v16 = vor.u32 %v5458_v5, %v4206_v6  ;;  %v4337_v17 = vor.u32 %v5490_v7, %v4334_v8 }
 0x182   :  { %2564 = vmatpush.bf16.msra.mxu0 %v3985_v19  ;;  %2577 = vmatpush.bf16.msrb.mxu1 %v4113_v22  ;;  %v870_v39 = vpop.f32.mrf.mxu2  ;;  %v883_v35 = vpop.f32.mrf.mxu3  ;;  %v5542_v15 = vld [vmem:[#allocation16 + $0x4a4] sm:$0xf]  ;;  %v4670_v22 = vld [vmem:[#allocation16 + $0x5b0] sm:$0xf0]  ;;  %v4961_v24 = vor.u32 %v5646_v11, %v4958_v12 }
 0x183   :  { %2541 = vmatmul.bf16.vlgmr.msra.gmra.mxu2 %v6292_v33  ;;  %2554 = vmatmul.bf16.vlgmr.msrb.gmra.mxu3 %v6294_v34  ;;  %v5574_v19 = vld [vmem:[#allocation16 + $0x5a4] sm:$0xf]  ;;  %v4814_v26 = vld [vmem:[#allocation16 + $0x6d0] sm:$0xf0] }
 0x184   :  { %2589 = vmatpush.bf16.msrb.mxu2 %v4257_v29  ;;  %2602 = vmatpush.bf16.msra.mxu3 %v4385_v30  ;;  %v5610_v25 = vld [vmem:[#allocation16 + $0x6c4] sm:$0xf]  ;;  %v4942_v28 = vld [vmem:[#allocation16 + $0x7d0] sm:$0xf0]  ;;  %v4545_v29 = vor.u32 %v5542_v15, %v4542_v18  ;;  %v4673_v30 = vor.u32 %v5574_v19, %v4670_v22 }
 0x185   :  { %v5642_v27 = vld [vmem:[#allocation16 + $0x7c4] sm:$0xf]  ;;  %v4526_v36 = vld [vmem:[#allocation16 + $0x490] sm:$0xf0]  ;;  %v4817_v39 = vor.u32 %v5610_v25, %v4814_v26 }
 0x186   :  { %2565 = vmatpush.bf16.msra.mxu0 %v3969_v41  ;;  %2578 = vmatpush.bf16.msrb.mxu1 %v4097_v42  ;;  %v5538_v31 = vld [vmem:[#allocation16 + $0x484] sm:$0xf]  ;;  %v4654_v38 = vld [vmem:[#allocation16 + $0x590] sm:$0xf0]  ;;  %v4945_v35 = vor.u32 %v5642_v27, %v4942_v28  ;;  %v4068_v27 = vld [vmem:[#allocation16 + $0xe8] sm:$0xf] }
 0x187   :  { %v5570_v37 = vld [vmem:[#allocation16 + $0x584] sm:$0xf]  ;;  %v4798_v42 = vld [vmem:[#allocation16 + $0x6b0] sm:$0xf0]  ;;  %v4529_v45 = vor.u32 %v5538_v31, %v4526_v36  ;;  %v5425_v28 = vld [vmem:[#allocation16 + $0xf4] sm:$0xf0] }
 0x188   :  { %2590 = vmatpush.bf16.msrb.mxu2 %v4241_v49  ;;  %2603 = vmatpush.bf16.msra.mxu3 %v4369_v40  ;;  %v5606_v41 = vld [vmem:[#allocation16 + $0x6a4] sm:$0xf]  ;;  %v4926_v44 = vld [vmem:[#allocation16 + $0x7b0] sm:$0xf0]  ;;  %v4657_v46 = vor.u32 %v5570_v37, %v4654_v38  ;;  %v4196_v31 = vld [vmem:[#allocation16 + $0x1e8] sm:$0xf] }
 0x189   :  { %v5638_v43 = vld [vmem:[#allocation16 + $0x7a4] sm:$0xf]  ;;  %v4510_v48 = vld [vmem:[#allocation16 + $0x470] sm:$0xf0]  ;;  %v4801_v50 = vor.u32 %v5606_v41, %v4798_v42  ;;  %v5457_v36 = vld [vmem:[#allocation16 + $0x1f4] sm:$0xf0] }
 0x18a   :  { %2566 = vmatpush.bf16.msra.mxu0 %v3953_v58  ;;  %2579 = vmatpush.bf16.msrb.mxu1 %v4081_v59  ;;  %v5534_v47 = vld [vmem:[#allocation16 + $0x464] sm:$0xf]  ;;  %v4638_v40 = vld [vmem:[#allocation16 + $0x570] sm:$0xf0]  ;;  %v4929_v51 = vor.u32 %v5638_v43, %v4926_v44  ;;  %v4069_v43 = vor.u32 %v5425_v28, %v4068_v27  ;;  %v4197_v44 = vor.u32 %v5457_v36, %v4196_v31  ;;  %v4004_v27 = vld [vmem:[#allocation16 + $0x68] sm:$0xf] }
 0x18b   :  { %v5566_v49 = vld [vmem:[#allocation16 + $0x564] sm:$0xf]  ;;  %v4782_v55 = vld [vmem:[#allocation16 + $0x690] sm:$0xf0]  ;;  %v4513_v58 = vor.u32 %v5534_v47, %v4510_v48  ;;  %v4180_v47 = vld [vmem:[#allocation16 + $0x1c8] sm:$0xf] }
 0x18c   :  { %2591 = vmatpush.bf16.msrb.mxu2 %v4225_v2  ;;  %2604 = vmatpush.bf16.msra.mxu3 %v4353_v3  ;;  %v5602_v54 = vld [vmem:[#allocation16 + $0x684] sm:$0xf]  ;;  %v4910_v57 = vld [vmem:[#allocation16 + $0x790] sm:$0xf0]  ;;  %v4641_v59 = vor.u32 %v5566_v49, %v4638_v40  ;;  %v5453_v40 = vld [vmem:[#allocation16 + $0x1d4] sm:$0xf0] }
 0x18d   :  { %2567 = vmatmul.bf16.vlgmr.msra.gmra.mxu0 %v6270_v52  ;;  %2580 = vmatmul.bf16.vlgmr.msrb.gmra.mxu1 %v6272_v53  ;;  %v5634_v56 = vld [vmem:[#allocation16 + $0x784] sm:$0xf]  ;;  %v4622_v0 = vld [vmem:[#allocation16 + $0x550] sm:$0xf0]  ;;  %v4785_v1 = vor.u32 %v5602_v54, %v4782_v55  ;;  %v5409_v28 = vld [vmem:[#allocation16 + $0x74] sm:$0xf0] }
 0x18e   :  { %2611 = vmatpush.bf16.msrb.mxu0 %v4577_v60  ;;  %2624 = vmatpush.bf16.msra.mxu1 %v4705_v32  ;;  %v5530_v60 = vld [vmem:[#allocation16 + $0x444] sm:$0xf]  ;;  %v4494_v32 = vld [vmem:[#allocation16 + $0x450] sm:$0xf0]  ;;  %v4913_v2 = vor.u32 %v5634_v56, %v4910_v57  ;;  %v4324_v56 = vld [vmem:[#allocation16 + $0x2e8] sm:$0xf] }
 0x18f   :  { %v5562_v63 = vld [vmem:[#allocation16 + $0x544] sm:$0xf]  ;;  %v4766_v4 = vld [vmem:[#allocation16 + $0x670] sm:$0xf0]  ;;  %v4497_v7 = vor.u32 %v5530_v60, %v4494_v32  ;;  %v5489_v57 = vld [vmem:[#allocation16 + $0x2f4] sm:$0xf0]  ;;  %v4181_v32 = vor.u32 %v5453_v40, %v4180_v47 }
 0x190   :  { %2592 = vmatpush.bf16.msrb.mxu2 %v4209_v16  ;;  %2605 = vmatpush.bf16.msra.mxu3 %v4337_v17  ;;  %v5598_v3 = vld [vmem:[#allocation16 + $0x664] sm:$0xf]  ;;  %v4894_v6 = vld [vmem:[#allocation16 + $0x770] sm:$0xf0]  ;;  %v4625_v8 = vor.u32 %v5562_v63, %v4622_v0  ;;  %v4132_v31 = vld [vmem:[#allocation16 + $0x168] sm:$0xf] }
 0x191   :  { %v5630_v5 = vld [vmem:[#allocation16 + $0x764] sm:$0xf]  ;;  %v4478_v10 = vld [vmem:[#allocation16 + $0x430] sm:$0xf0]  ;;  %v5441_v36 = vld [vmem:[#allocation16 + $0x174] sm:$0xf0] }
 0x192   :  { %2612 = vmatpush.bf16.msrb.mxu0 %v4561_v13  ;;  %2625 = vmatpush.bf16.msra.mxu1 %v4689_v14  ;;  %v5526_v9 = vld [vmem:[#allocation16 + $0x424] sm:$0xf]  ;;  %v4606_v12 = vld [vmem:[#allocation16 + $0x530] sm:$0xf0]  ;;  %v4769_v13 = vor.u32 %v5598_v3, %v4766_v4  ;;  %v4897_v14 = vor.u32 %v5630_v5, %v4894_v6  ;;  %v4325_v3 = vor.u32 %v5489_v57, %v4324_v56  ;;  %v4164_v5 = vld [vmem:[#allocation16 + $0x1a8] sm:$0xf] }
 0x193   :  { %2593 = vmatmul.bf16.vlgmr.msrb.gmra.mxu2 %v6278_v20  ;;  %2606 = vmatmul.bf16.vlgmr.msra.gmra.mxu3 %v6280_v21  ;;  %v5558_v11 = vld [vmem:[#allocation16 + $0x524] sm:$0xf]  ;;  %v4750_v16 = vld [vmem:[#allocation16 + $0x650] sm:$0xf0]  ;;  %v4481_v19 = vor.u32 %v5526_v9, %v4478_v10  ;;  %v5449_v6 = vld [vmem:[#allocation16 + $0x1b4] sm:$0xf0] }
 0x194   :  { %2637 = vmatpush.bf16.msra.mxu2 %v4833_v23  ;;  %2650 = vmatpush.bf16.msrb.mxu3 %v4961_v24  ;;  %v5594_v15 = vld [vmem:[#allocation16 + $0x644] sm:$0xf]  ;;  %v4878_v18 = vld [vmem:[#allocation16 + $0x750] sm:$0xf0]  ;;  %v4609_v22 = vor.u32 %v5558_v11, %v4606_v12  ;;  %v4436_v9 = vld [vmem:[#allocation16 + $0x3c8] sm:$0xf]  ;;  %v4165_v12 = vor.u32 %v5449_v6, %v4164_v5 }
 0x195   :  { %v5626_v17 = vld [vmem:[#allocation16 + $0x744] sm:$0xf]  ;;  %v4462_v24 = vld [vmem:[#allocation16 + $0x410] sm:$0xf0]  ;;  %v5517_v10 = vld [vmem:[#allocation16 + $0x3d4] sm:$0xf0] }
 0x196   :  { %2613 = vmatpush.bf16.msrb.mxu0 %v4545_v29  ;;  %2626 = vmatpush.bf16.msra.mxu1 %v4673_v30  ;;  %v5522_v23 = vld [vmem:[#allocation16 + $0x404] sm:$0xf]  ;;  %v4590_v26 = vld [vmem:[#allocation16 + $0x510] sm:$0xf0]  ;;  %v4753_v29 = vor.u32 %v5594_v15, %v4750_v16  ;;  %v4881_v30 = vor.u32 %v5626_v17, %v4878_v18  ;;  %v4437_v16 = vor.u32 %v5517_v10, %v4436_v9  ;;  %v4148_v17 = vld [vmem:[#allocation16 + $0x188] sm:$0xf] }
 0x197   :  { %v5554_v25 = vld [vmem:[#allocation16 + $0x504] sm:$0xf]  ;;  %v4734_v38 = vld [vmem:[#allocation16 + $0x630] sm:$0xf0]  ;;  %v4465_v41 = vor.u32 %v5522_v23, %v4462_v24  ;;  %v5445_v18 = vld [vmem:[#allocation16 + $0x194] sm:$0xf0] }
 0x198   :  { %2638 = vmatpush.bf16.msra.mxu2 %v4817_v39  ;;  %2651 = vmatpush.bf16.msrb.mxu3 %v4945_v35  ;;  %v5590_v37 = vld [vmem:[#allocation16 + $0x624] sm:$0xf]  ;;  %v4862_v35 = vld [vmem:[#allocation16 + $0x730] sm:$0xf0]  ;;  %v4593_v42 = vor.u32 %v5554_v25, %v4590_v26  ;;  %v4420_v23 = vld [vmem:[#allocation16 + $0x3a8] sm:$0xf]  ;;  %v4149_v26 = vor.u32 %v5445_v18, %v4148_v17 }
 0x199   :  { %v5622_v39 = vld [vmem:[#allocation16 + $0x724] sm:$0xf]  ;;  %v4737_v48 = vor.u32 %v5590_v37, %v4734_v38  ;;  %v4846_v55 = vld [vmem:[#allocation16 + $0x710] sm:$0xf0]  ;;  %v5513_v24 = vld [vmem:[#allocation16 + $0x3b4] sm:$0xf0] }
 0x19a   :  { %2614 = vmatpush.bf16.msrb.mxu0 %v4529_v45  ;;  %2627 = vmatpush.bf16.msra.mxu1 %v4657_v46  ;;  %v4052_v45 = vld [vmem:[#allocation16 + $0xc8] sm:$0xf]  ;;  %v5421_v46 = vld [vmem:[#allocation16 + $0xd4] sm:$0xf0]  ;;  %v4865_v49 = vor.u32 %v5622_v39, %v4862_v35  ;;  %v5618_v54 = vld [vmem:[#allocation16 + $0x704] sm:$0xf] }
 0x19b   :  { %v4053_v60 = vor.u32 %v5421_v46, %v4052_v45  ;;  %v4849_v0 = vor.u32 %v5618_v54, %v4846_v55  ;;  %v4276_v37 = vld [vmem:[#allocation16 + $0x288] sm:$0xf]  ;;  %v5477_v38 = vld [vmem:[#allocation16 + $0x294] sm:$0xf0] }
 0x19c   :  { %2639 = vmatpush.bf16.msra.mxu2 %v4801_v50  ;;  %2652 = vmatpush.bf16.msrb.mxu3 %v4929_v51  ;;  %v5586_v50 = vld [vmem:[#allocation16 + $0x604] sm:$0xf]  ;;  %v4718_v51 = vld [vmem:[#allocation16 + $0x610] sm:$0xf0]  ;;  %v4404_v39 = vld [vmem:[#allocation16 + $0x388] sm:$0xf]  ;;  %v4277_v45 = vor.u32 %v5477_v38, %v4276_v37 }
 0x19d   :  { %v4721_v63 = vor.u32 %v5586_v50, %v4718_v51  ;;  %v5509_v35 = vld [vmem:[#allocation16 + $0x394] sm:$0xf0]  ;;  %v4116_v47 = vld [vmem:[#allocation16 + $0x148] sm:$0xf] }
 0x19e   :  { %2615 = vmatpush.bf16.msrb.mxu0 %v4513_v58  ;;  %2628 = vmatpush.bf16.msra.mxu1 %v4641_v59  ;;  %v4452_v58 = vld [vmem:[#allocation16 + $0x3e8] sm:$0xf]  ;;  %v5521_v59 = vld [vmem:[#allocation16 + $0x3f4] sm:$0xf0]  ;;  %v4405_v46 = vor.u32 %v5509_v35, %v4404_v39 }
 0x19f   :  { %v4453_v4 = vor.u32 %v5521_v59, %v4452_v58  ;;  %v5473_v40 = vld [vmem:[#allocation16 + $0x274] sm:$0xf0]  ;;  %v4388_v50 = vld [vmem:[#allocation16 + $0x368] sm:$0xf] }
 0x1a0   :  { %2640 = vmatpush.bf16.msra.mxu2 %v4785_v1  ;;  %2653 = vmatpush.bf16.msrb.mxu3 %v4913_v2  ;;  %v4036_v1 = vld [vmem:[#allocation16 + $0xa8] sm:$0xf]  ;;  %v5417_v2 = vld [vmem:[#allocation16 + $0xb4] sm:$0xf0] }
 0x1a1   :  { %v4037_v11 = vor.u32 %v5417_v2, %v4036_v1  ;;  %v5505_v51 = vld [vmem:[#allocation16 + $0x374] sm:$0xf0]  ;;  %v3972_v56 = vld [vmem:[#allocation16 + $0x28] sm:$0xf] }
 0x1a2   :  { %2616 = vmatpush.bf16.msrb.mxu0 %v4497_v7  ;;  %2629 = vmatpush.bf16.msra.mxu1 %v4625_v8  ;;  %v4308_v7 = vld [vmem:[#allocation16 + $0x2c8] sm:$0xf]  ;;  %v5485_v8 = vld [vmem:[#allocation16 + $0x2d4] sm:$0xf0]  ;;  %v4389_v59 = vor.u32 %v5505_v51, %v4388_v50 }
 0x1a3   :  { %v4309_v15 = vor.u32 %v5485_v8, %v4308_v7  ;;  %v5401_v57 = vld [vmem:[#allocation16 + $0x34] sm:$0xf0]  ;;  %v4372_v1 = vld [vmem:[#allocation16 + $0x348] sm:$0xf] }
 0x1a4   :  { %2641 = vmatpush.bf16.msra.mxu2 %v4769_v13  ;;  %2654 = vmatpush.bf16.msrb.mxu3 %v4897_v14  ;;  %v4020_v13 = vld [vmem:[#allocation16 + $0x88] sm:$0xf]  ;;  %v5413_v14 = vld [vmem:[#allocation16 + $0x94] sm:$0xf0] }
 0x1a5   :  { %v4021_v25 = vor.u32 %v5413_v14, %v4020_v13  ;;  %v5501_v2 = vld [vmem:[#allocation16 + $0x354] sm:$0xf0]  ;;  %v3956_v5 = vld [vmem:[#allocation16 + $0x8] sm:$0xf] }
 0x1a6   :  { %2617 = vmatpush.bf16.msrb.mxu0 %v4481_v19  ;;  %2630 = vmatpush.bf16.msra.mxu1 %v4609_v22  ;;  %v4292_v19 = vld [vmem:[#allocation16 + $0x2a8] sm:$0xf]  ;;  %v5481_v22 = vld [vmem:[#allocation16 + $0x2b4] sm:$0xf0]  ;;  %v4373_v9 = vor.u32 %v5501_v2, %v4372_v1 }
 0x1a7   :  { %v5397_v6 = vld [vmem:[#allocation16 + $0x14] sm:$0xf0]  ;;  %v4084_v7 = vld [vmem:[#allocation16 + $0x108] sm:$0xf] }
 0x1a8   :  { %2642 = vmatpush.bf16.msra.mxu2 %v4753_v29  ;;  %2655 = vmatpush.bf16.msrb.mxu3 %v4881_v30  ;;  %v4293_v29 = vor.u32 %v5481_v22, %v4292_v19  ;;  %v4421_v30 = vor.u32 %v5513_v24, %v4420_v23  ;;  %v5429_v10 = vld [vmem:[#allocation16 + $0x114] sm:$0xf0]  ;;  %v4708_v13 = vld [vmem:[#allocation16 + $0x5e8] sm:$0xf]  ;;  %v3957_v19 = vor.u32 %v5397_v6, %v3956_v5 }
 0x1a9   :  { %v5585_v14 = vld [vmem:[#allocation16 + $0x5f4] sm:$0xf0]  ;;  %v4356_v17 = vld [vmem:[#allocation16 + $0x328] sm:$0xf]  ;;  %v4085_v22 = vor.u32 %v5429_v10, %v4084_v7 }
 0x1aa   :  { %2618 = vmatpush.bf16.msrb.mxu0 %v4465_v41  ;;  %2631 = vmatpush.bf16.msra.mxu1 %v4593_v42  ;;  %v4005_v41 = vor.u32 %v5409_v28, %v4004_v27  ;;  %v4133_v42 = vor.u32 %v5441_v36, %v4132_v31  ;;  %v5497_v18 = vld [vmem:[#allocation16 + $0x334] sm:$0xf0]  ;;  %v4709_v24 = vor.u32 %v5585_v14, %v4708_v13  ;;  %v4692_v27 = vld [vmem:[#allocation16 + $0x5c8] sm:$0xf] }
 0x1ab   :  { %v4212_v31 = vld [vmem:[#allocation16 + $0x208] sm:$0xf]  ;;  %v5461_v36 = vld [vmem:[#allocation16 + $0x214] sm:$0xf0] }
 0x1ac   :  { %2643 = vmatpush.bf16.msra.mxu2 %v4737_v48  ;;  %2656 = vmatpush.bf16.msrb.mxu3 %v4865_v49  ;;  %v5437_v48 = vld [vmem:[#allocation16 + $0x154] sm:$0xf0]  ;;  %v4260_v49 = vld [vmem:[#allocation16 + $0x268] sm:$0xf] }
 0x1ad   :  { %2619 = vmatmul.bf16.vlgmr.msrb.gmra.mxu0 %v6286_v61  ;;  %2632 = vmatmul.bf16.vlgmr.msra.gmra.mxu1 %v6288_v62  ;;  %v4117_v55 = vor.u32 %v5437_v48, %v4116_v47  ;;  %v4261_v58 = vor.u32 %v5473_v40, %v4260_v49  ;;  %v4340_v37 = vld [vmem:[#allocation16 + $0x308] sm:$0xf]  ;;  %v5493_v38 = vld [vmem:[#allocation16 + $0x314] sm:$0xf0] }
 0x1ae   :  { %2663 = vmatpush.bf16.msra.mxu0 %v4069_v43  ;;  %2676 = vmatpush.bf16.msrb.mxu1 %v4197_v44  ;;  %v3988_v43 = vld [vmem:[#allocation16 + $0x48] sm:$0xf]  ;;  %v5405_v44 = vld [vmem:[#allocation16 + $0x54] sm:$0xf0] }
 0x1af   :  { %v3989_v54 = vor.u32 %v5405_v44, %v3988_v43  ;;  %v4836_v39 = vld [vmem:[#allocation16 + $0x6e8] sm:$0xf]  ;;  %v5617_v35 = vld [vmem:[#allocation16 + $0x6f4] sm:$0xf0] }
 0x1b0   :  { %2644 = vmatpush.bf16.msra.mxu2 %v4721_v63  ;;  %2657 = vmatpush.bf16.msrb.mxu3 %v4849_v0  ;;  %v4244_v63 = vld [vmem:[#allocation16 + $0x248] sm:$0xf]  ;;  %v5469_v0 = vld [vmem:[#allocation16 + $0x254] sm:$0xf0]  ;;  %v4837_v49 = vor.u32 %v5617_v35, %v4836_v39 }
 0x1b1   :  { %v4245_v8 = vor.u32 %v5469_v0, %v4244_v63  ;;  %v4548_v47 = vld [vmem:[#allocation16 + $0x4a8] sm:$0xf]  ;;  %v5545_v48 = vld [vmem:[#allocation16 + $0x4b4] sm:$0xf0] }
 0x1b2   :  { %2664 = vmatpush.bf16.msra.mxu0 %v4053_v60  ;;  %2677 = vmatpush.bf16.msrb.mxu1 %v4181_v32  ;;  %v4100_v60 = vld [vmem:[#allocation16 + $0x128] sm:$0xf]  ;;  %v5433_v32 = vld [vmem:[#allocation16 + $0x134] sm:$0xf0] }
 0x1b3   :  { %2645 = vmatmul.bf16.vlgmr.msra.gmra.mxu2 %v6292_v33  ;;  %2658 = vmatmul.bf16.vlgmr.msrb.gmra.mxu3 %v6294_v34  ;;  %v4676_v50 = vld [vmem:[#allocation16 + $0x5a8] sm:$0xf]  ;;  %v5577_v51 = vld [vmem:[#allocation16 + $0x5b4] sm:$0xf0] }
 0x1b4   :  { %2689 = vmatpush.bf16.msrb.mxu2 %v4325_v3  ;;  %2702 = vmatpush.bf16.msra.mxu3 %v4453_v4  ;;  %v3973_v3 = vor.u32 %v5401_v57, %v3972_v56  ;;  %v4101_v4 = vor.u32 %v5433_v32, %v4100_v60  ;;  %v4948_v56 = vld [vmem:[#allocation16 + $0x7c8] sm:$0xf]  ;;  %v5645_v57 = vld [vmem:[#allocation16 + $0x7d4] sm:$0xf0] }
 0x1b5   :  { %v4532_v60 = vld [vmem:[#allocation16 + $0x488] sm:$0xf]  ;;  %v5541_v32 = vld [vmem:[#allocation16 + $0x494] sm:$0xf0]  ;;  %v4949_v0 = vor.u32 %v5645_v57, %v4948_v56 }
 0x1b6   :  { %2665 = vmatpush.bf16.msra.mxu0 %v4037_v11  ;;  %2678 = vmatpush.bf16.msrb.mxu1 %v4165_v12  ;;  %v4580_v11 = vld [vmem:[#allocation16 + $0x4e8] sm:$0xf]  ;;  %v5553_v12 = vld [vmem:[#allocation16 + $0x4f4] sm:$0xf0]  ;;  %v4533_v7 = vor.u32 %v5541_v32, %v4532_v60  ;;  %v5455_v60 = vld [vmem:[#allocation16 + $0x1ec] sm:$0xf] }
 0x1b7   :  { %v4581_v23 = vor.u32 %v5553_v12, %v4580_v11  ;;  %v4660_v1 = vld [vmem:[#allocation16 + $0x588] sm:$0xf]  ;;  %v5573_v2 = vld [vmem:[#allocation16 + $0x594] sm:$0xf0]  ;;  %v4198_v32 = vld [vmem:[#allocation16 + $0x1f8] sm:$0xf0] }
 0x1b8   :  { %2690 = vmatpush.bf16.msrb.mxu2 %v4309_v15  ;;  %2703 = vmatpush.bf16.msra.mxu3 %v4437_v16  ;;  %v4228_v15 = vld [vmem:[#allocation16 + $0x228] sm:$0xf]  ;;  %v5465_v16 = vld [vmem:[#allocation16 + $0x234] sm:$0xf0] }
 0x1b9   :  { %v4229_v28 = vor.u32 %v5465_v16, %v4228_v15  ;;  %v4932_v5 = vld [vmem:[#allocation16 + $0x7a8] sm:$0xf]  ;;  %v5641_v6 = vld [vmem:[#allocation16 + $0x7b4] sm:$0xf0] }
 0x1ba   :  { %2666 = vmatpush.bf16.msra.mxu0 %v4021_v25  ;;  %2679 = vmatpush.bf16.msrb.mxu1 %v4149_v26  ;;  %v4564_v25 = vld [vmem:[#allocation16 + $0x4c8] sm:$0xf]  ;;  %v5549_v26 = vld [vmem:[#allocation16 + $0x4d4] sm:$0xf0]  ;;  %v4933_v12 = vor.u32 %v5641_v6, %v4932_v5  ;;  %v5419_v5 = vld [vmem:[#allocation16 + $0xcc] sm:$0xf] }
 0x1bb   :  { %v4565_v43 = vor.u32 %v5549_v26, %v4564_v25  ;;  %v5537_v10 = vld [vmem:[#allocation16 + $0x474] sm:$0xf0]  ;;  %v4644_v13 = vld [vmem:[#allocation16 + $0x568] sm:$0xf] }
 0x1bc   :  { %2691 = vmatpush.bf16.msrb.mxu2 %v4293_v29  ;;  %2704 = vmatpush.bf16.msra.mxu3 %v4421_v30  ;;  %v4357_v29 = vor.u32 %v5497_v18, %v4356_v17  ;;  %v5581_v30 = vld [vmem:[#allocation16 + $0x5d4] sm:$0xf0]  ;;  %v4788_v15 = vld [vmem:[#allocation16 + $0x688] sm:$0xf] }
 0x1bd   :  { %v4693_v44 = vor.u32 %v5581_v30, %v4692_v27  ;;  %v5569_v14 = vld [vmem:[#allocation16 + $0x574] sm:$0xf0]  ;;  %v4916_v17 = vld [vmem:[#allocation16 + $0x788] sm:$0xf] }
 0x1be   :  { %2667 = vmatpush.bf16.msra.mxu0 %v4005_v41  ;;  %2680 = vmatpush.bf16.msrb.mxu1 %v4133_v42  ;;  %v4964_v41 = vld [vmem:[#allocation16 + $0x7e8] sm:$0xf]  ;;  %v5649_v42 = vld [vmem:[#allocation16 + $0x7f4] sm:$0xf0] }
 0x1bf   :  { %v4965_v40 = vor.u32 %v5649_v42, %v4964_v41  ;;  %v5605_v16 = vld [vmem:[#allocation16 + $0x694] sm:$0xf0]  ;;  %v4628_v27 = vld [vmem:[#allocation16 + $0x548] sm:$0xf] }
 0x1c0   :  { %2692 = vmatpush.bf16.msrb.mxu2 %v4277_v45  ;;  %2705 = vmatpush.bf16.msra.mxu3 %v4405_v46  ;;  %v4213_v45 = vor.u32 %v5461_v36, %v4212_v31  ;;  %v4341_v46 = vor.u32 %v5493_v38, %v4340_v37  ;;  %v5637_v18 = vld [vmem:[#allocation16 + $0x794] sm:$0xf0]  ;;  %v4789_v25 = vor.u32 %v5605_v16, %v4788_v15  ;;  %v4900_v31 = vld [vmem:[#allocation16 + $0x768] sm:$0xf] }
 0x1c1   :  { %v4917_v26 = vor.u32 %v5637_v18, %v4916_v17  ;;  %v5601_v30 = vld [vmem:[#allocation16 + $0x674] sm:$0xf0]  ;;  %v4484_v39 = vld [vmem:[#allocation16 + $0x428] sm:$0xf]  ;;  %v5487_v17 = vld [vmem:[#allocation16 + $0x2ec] sm:$0xf] }
 0x1c2   :  { %2668 = vmatpush.bf16.msra.mxu0 %v3989_v54  ;;  %2681 = vmatpush.bf16.msrb.mxu1 %v4117_v55  ;;  %v4820_v54 = vld [vmem:[#allocation16 + $0x6c8] sm:$0xf]  ;;  %v5613_v55 = vld [vmem:[#allocation16 + $0x6d4] sm:$0xf0]  ;;  %v4326_v18 = vld [vmem:[#allocation16 + $0x2f8] sm:$0xf0] }
 0x1c3   :  { %v4821_v63 = vor.u32 %v5613_v55, %v4820_v54  ;;  %v5633_v36 = vld [vmem:[#allocation16 + $0x774] sm:$0xf0]  ;;  %v4596_v54 = vld [vmem:[#allocation16 + $0x508] sm:$0xf] }
 0x1c4   :  { %2693 = vmatpush.bf16.msrb.mxu2 %v4261_v58  ;;  %2706 = vmatpush.bf16.msra.mxu3 %v4389_v59  ;;  %v4549_v58 = vor.u32 %v5545_v48, %v4548_v47  ;;  %v4677_v59 = vor.u32 %v5577_v51, %v4676_v50  ;;  %v5529_v35 = vld [vmem:[#allocation16 + $0x434] sm:$0xf0]  ;;  %v4901_v42 = vor.u32 %v5633_v36, %v4900_v31  ;;  %v4884_v47 = vld [vmem:[#allocation16 + $0x748] sm:$0xf] }
 0x1c5   :  { %v5629_v48 = vld [vmem:[#allocation16 + $0x754] sm:$0xf0]  ;;  %v4468_v50 = vld [vmem:[#allocation16 + $0x408] sm:$0xf]  ;;  %v4329_v31 = vor.u32 %v5487_v17, %v4326_v18  ;;  %v5435_v17 = vld [vmem:[#allocation16 + $0x14c] sm:$0xf] }
 0x1c6   :  { %2669 = vmatpush.bf16.msra.mxu0 %v3973_v3  ;;  %2682 = vmatpush.bf16.msrb.mxu1 %v4101_v4  ;;  %v4804_v3 = vld [vmem:[#allocation16 + $0x6a8] sm:$0xf]  ;;  %v5609_v4 = vld [vmem:[#allocation16 + $0x6b4] sm:$0xf0]  ;;  %v4885_v56 = vor.u32 %v5629_v48, %v4884_v47  ;;  %v5411_v47 = vld [vmem:[#allocation16 + $0x8c] sm:$0xf] }
 0x1c7   :  { %v4805_v11 = vor.u32 %v5609_v4, %v4804_v3  ;;  %v5525_v51 = vld [vmem:[#allocation16 + $0x414] sm:$0xf0]  ;;  %v4852_v15 = vld [vmem:[#allocation16 + $0x708] sm:$0xf]  ;;  %v4022_v48 = vld [vmem:[#allocation16 + $0x98] sm:$0xf0] }
 0x1c8   :  { %2694 = vmatpush.bf16.msrb.mxu2 %v4245_v8  ;;  %2707 = vmatpush.bf16.msra.mxu3 %v4373_v9  ;;  %v4661_v8 = vor.u32 %v5573_v2, %v4660_v1  ;;  %v4516_v9 = vld [vmem:[#allocation16 + $0x468] sm:$0xf]  ;;  %v5557_v57 = vld [vmem:[#allocation16 + $0x514] sm:$0xf0]  ;;  %v4469_v3 = vor.u32 %v5525_v51, %v4468_v50  ;;  %v5443_v51 = vld [vmem:[#allocation16 + $0x18c] sm:$0xf] }
 0x1c9   :  { %v4868_v1 = vld [vmem:[#allocation16 + $0x728] sm:$0xf]  ;;  %v5625_v2 = vld [vmem:[#allocation16 + $0x734] sm:$0xf0]  ;;  %v4597_v4 = vor.u32 %v5557_v57, %v4596_v54  ;;  %v4150_v54 = vld [vmem:[#allocation16 + $0x198] sm:$0xf0] }
 0x1ca   :  { %2670 = vmatpush.bf16.msra.mxu0 %v3957_v19  ;;  %2683 = vmatpush.bf16.msrb.mxu1 %v4085_v22  ;;  %v4517_v19 = vor.u32 %v5537_v10, %v4516_v9  ;;  %v4645_v22 = vor.u32 %v5569_v14, %v4644_v13  ;;  %v5451_v9 = vld [vmem:[#allocation16 + $0x1cc] sm:$0xf]  ;;  %v4182_v10 = vld [vmem:[#allocation16 + $0x1d8] sm:$0xf0]  ;;  %v4724_v13 = vld [vmem:[#allocation16 + $0x608] sm:$0xf] }
 0x1cb   :  { %v5589_v14 = vld [vmem:[#allocation16 + $0x614] sm:$0xf0]  ;;  %v5511_v57 = vld [vmem:[#allocation16 + $0x3ac] sm:$0xf]  ;;  %v4118_v18 = vld [vmem:[#allocation16 + $0x158] sm:$0xf0] }
 0x1cc   :  { %2695 = vmatpush.bf16.msrb.mxu2 %v4229_v28  ;;  %2708 = vmatpush.bf16.msra.mxu3 %v4357_v29  ;;  %v5565_v28 = vld [vmem:[#allocation16 + $0x554] sm:$0xf0]  ;;  %v4772_v29 = vld [vmem:[#allocation16 + $0x668] sm:$0xf] }
 0x1cd   :  { %2671 = vmatmul.bf16.vlgmr.msra.gmra.mxu0 %v6270_v52  ;;  %2684 = vmatmul.bf16.vlgmr.msrb.gmra.mxu1 %v6272_v53  ;;  %v4629_v38 = vor.u32 %v5565_v28, %v4628_v27  ;;  %v4773_v41 = vor.u32 %v5601_v30, %v4772_v29  ;;  %v5621_v16 = vld [vmem:[#allocation16 + $0x714] sm:$0xf0]  ;;  %v5415_v28 = vld [vmem:[#allocation16 + $0xac] sm:$0xf]  ;;  %v4038_v29 = vld [vmem:[#allocation16 + $0xb8] sm:$0xf0] }
 0x1ce   :  { %2715 = vmatpush.bf16.msrb.mxu0 %v4581_v23  ;;  %2728 = vmatpush.bf16.msra.mxu1 %v4709_v24  ;;  %v4500_v23 = vld [vmem:[#allocation16 + $0x448] sm:$0xf]  ;;  %v5533_v24 = vld [vmem:[#allocation16 + $0x454] sm:$0xf0]  ;;  %v4853_v27 = vor.u32 %v5621_v16, %v4852_v15  ;;  %v5447_v30 = vld [vmem:[#allocation16 + $0x1ac] sm:$0xf] }
 0x1cf   :  { %v4501_v37 = vor.u32 %v5533_v24, %v4500_v23  ;;  %v6313_v23 = vld [vmem:[%s6404_s9] sm:$0xf] }
 0x1d0   :  { %2696 = vmatpush.bf16.msrb.mxu2 %v4213_v45  ;;  %2709 = vmatpush.bf16.msra.mxu3 %v4341_v46  ;;  %v4756_v45 = vld [vmem:[#allocation16 + $0x648] sm:$0xf]  ;;  %v5597_v46 = vld [vmem:[#allocation16 + $0x654] sm:$0xf0] }
 0x1d1   :  { %v4757_v55 = vor.u32 %v5597_v46, %v4756_v45 }
 0x1d2   :  { %2716 = vmatpush.bf16.msrb.mxu0 %v4565_v43  ;;  %2729 = vmatpush.bf16.msra.mxu1 %v4693_v44  ;;  %v4612_v43 = vld [vmem:[#allocation16 + $0x528] sm:$0xf]  ;;  %v5561_v44 = vld [vmem:[#allocation16 + $0x534] sm:$0xf0] }
 0x1d3   :  { %2697 = vmatmul.bf16.vlgmr.msrb.gmra.mxu2 %v6278_v20  ;;  %2710 = vmatmul.bf16.vlgmr.msra.gmra.mxu3 %v6280_v21 }
 0x1d4   :  { %2741 = vmatpush.bf16.msra.mxu2 %v4837_v49  ;;  %2754 = vmatpush.bf16.msrb.mxu3 %v4965_v40  ;;  %v4485_v49 = vor.u32 %v5529_v35, %v4484_v39  ;;  %v4613_v40 = vor.u32 %v5561_v44, %v4612_v43  ;;  %v5483_v39 = vld [vmem:[#allocation16 + $0x2cc] sm:$0xf]  ;;  %v4310_v35 = vld [vmem:[#allocation16 + $0x2d8] sm:$0xf0]  ;;  %v4041_v43 = vor.u32 %v5415_v28, %v4038_v29 }
 0x1d5   :  { %v5399_v28 = vld [vmem:[#allocation16 + $0x2c] sm:$0xf]  ;;  %v3974_v29 = vld [vmem:[#allocation16 + $0x38] sm:$0xf0] }
 0x1d6   :  { %2717 = vmatpush.bf16.msrb.mxu0 %v4549_v58  ;;  %2730 = vmatpush.bf16.msra.mxu1 %v4677_v59  ;;  %v5423_v58 = vld [vmem:[#allocation16 + $0xec] sm:$0xf]  ;;  %v4070_v59 = vld [vmem:[#allocation16 + $0xf8] sm:$0xf0] }
 0x1d7   :  { %v4073_v6 = vor.u32 %v5423_v58, %v4070_v59  ;;  %v4422_v58 = vld [vmem:[#allocation16 + $0x3b8] sm:$0xf0] }
 0x1d8   :  { %2742 = vmatpush.bf16.msra.mxu2 %v4821_v63  ;;  %2755 = vmatpush.bf16.msrb.mxu3 %v4949_v0  ;;  %v4740_v63 = vld [vmem:[#allocation16 + $0x628] sm:$0xf]  ;;  %v5593_v0 = vld [vmem:[#allocation16 + $0x634] sm:$0xf0] }
 0x1da   :  { %2718 = vmatpush.bf16.msrb.mxu0 %v4533_v7  ;;  %2731 = vmatpush.bf16.msra.mxu1 %v4661_v8  ;;  %v4201_v7 = vor.u32 %v5455_v60, %v4198_v32  ;;  %v4054_v8 = vld [vmem:[#allocation16 + $0xd8] sm:$0xf0]  ;;  %v4025_v60 = vor.u32 %v5411_v47, %v4022_v48  ;;  %v4153_v32 = vor.u32 %v5443_v51, %v4150_v54  ;;  %v5427_v48 = vld [vmem:[#allocation16 + $0x10c] sm:$0xf] }
 0x1db   :  { %v4057_v24 = vor.u32 %v5419_v5, %v4054_v8  ;;  %v5475_v5 = vld [vmem:[#allocation16 + $0x28c] sm:$0xf]  ;;  %v4406_v8 = vld [vmem:[#allocation16 + $0x398] sm:$0xf0] }
 0x1dc   :  { %2743 = vmatpush.bf16.msra.mxu2 %v4805_v11  ;;  %2756 = vmatpush.bf16.msrb.mxu3 %v4933_v12  ;;  %v4741_v11 = vor.u32 %v5593_v0, %v4740_v63  ;;  %v4869_v12 = vor.u32 %v5625_v2, %v4868_v1  ;;  %v5407_v63 = vld [vmem:[#allocation16 + $0x6c] sm:$0xf]  ;;  %v4006_v0 = vld [vmem:[#allocation16 + $0x78] sm:$0xf0]  ;;  %v4425_v2 = vor.u32 %v5511_v57, %v4422_v58 }
 0x1dd   :  { %v3958_v47 = vld [vmem:[#allocation16 + $0x18] sm:$0xf0]  ;;  %v5583_v57 = vld [vmem:[#allocation16 + $0x5ec] sm:$0xf] }
 0x1de   :  { %2719 = vmatpush.bf16.msrb.mxu0 %v4517_v19  ;;  %2732 = vmatpush.bf16.msra.mxu1 %v4645_v22  ;;  %v5519_v19 = vld [vmem:[#allocation16 + $0x3ec] sm:$0xf]  ;;  %v4454_v22 = vld [vmem:[#allocation16 + $0x3f8] sm:$0xf0] }
 0x1df   :  { %v4457_v36 = vor.u32 %v5519_v19, %v4454_v22  ;;  %v5471_v19 = vld [vmem:[#allocation16 + $0x26c] sm:$0xf]  ;;  %v4262_v22 = vld [vmem:[#allocation16 + $0x278] sm:$0xf0] }
 0x1e0   :  { %2744 = vmatpush.bf16.msra.mxu2 %v4789_v25  ;;  %2757 = vmatpush.bf16.msrb.mxu3 %v4917_v26  ;;  %v4185_v25 = vor.u32 %v5451_v9, %v4182_v10  ;;  %v4725_v26 = vor.u32 %v5589_v14, %v4724_v13  ;;  %v4009_v9 = vor.u32 %v5407_v63, %v4006_v0  ;;  %v5403_v13 = vld [vmem:[#allocation16 + $0x4c] sm:$0xf]  ;;  %v3990_v14 = vld [vmem:[#allocation16 + $0x58] sm:$0xf0] }
 0x1e1   :  { %v4086_v54 = vld [vmem:[#allocation16 + $0x118] sm:$0xf0]  ;;  %v5495_v63 = vld [vmem:[#allocation16 + $0x32c] sm:$0xf] }
 0x1e2   :  { %2720 = vmatpush.bf16.msrb.mxu0 %v4501_v37  ;;  %2733 = vmatpush.bf16.msra.mxu1 %v4629_v38  ;;  %v4166_v37 = vld [vmem:[#allocation16 + $0x1b8] sm:$0xf0]  ;;  %v1167_v38 = vperm.slane %v6313_v23, 0 }
 0x1e3   :  { %v4169_v44 = vor.u32 %v5447_v30, %v4166_v37  ;;  %v4710_v58 = vld [vmem:[#allocation16 + $0x5f8] sm:$0xf0] }
 0x1e4   :  { %2745 = vmatpush.bf16.msra.mxu2 %v4773_v41  ;;  %2758 = vmatpush.bf16.msrb.mxu3 %v4901_v42  ;;  %v5515_v41 = vld [vmem:[#allocation16 + $0x3cc] sm:$0xf]  ;;  %v4438_v42 = vld [vmem:[#allocation16 + $0x3d8] sm:$0xf0] }
 0x1e5   :  { %v4441_v50 = vor.u32 %v5515_v41, %v4438_v42  ;;  %v4246_v41 = vld [vmem:[#allocation16 + $0x258] sm:$0xf0]  ;;  %v5499_v42 = vld [vmem:[#allocation16 + $0x34c] sm:$0xf] }
 0x1e6   :  { %2721 = vmatpush.bf16.msrb.mxu0 %v4485_v49  ;;  %2734 = vmatpush.bf16.msra.mxu1 %v4613_v40  ;;  %v4313_v40 = vor.u32 %v5483_v39, %v4310_v35  ;;  %v4102_v39 = vld [vmem:[#allocation16 + $0x138] sm:$0xf0]  ;;  %v5467_v35 = vld [vmem:[#allocation16 + $0x24c] sm:$0xf] }
 0x1e7   :  { %v4358_v0 = vld [vmem:[#allocation16 + $0x338] sm:$0xf0] }
 0x1e8   :  { %2746 = vmatpush.bf16.msra.mxu2 %v4757_v55  ;;  %2759 = vmatpush.bf16.msrb.mxu3 %v4885_v56  ;;  %v5479_v55 = vld [vmem:[#allocation16 + $0x2ac] sm:$0xf]  ;;  %v4294_v56 = vld [vmem:[#allocation16 + $0x2b8] sm:$0xf0] }
 0x1e9   :  { %v2464_v45 = vpop.f32.mrf.mxu0  ;;  %v2477_v46 = vpop.f32.mrf.mxu1  ;;  %v4297_v1 = vor.u32 %v5479_v55, %v4294_v56  ;;  %v5551_v55 = vld [vmem:[#allocation16 + $0x4ec] sm:$0xf]  ;;  %v4582_v56 = vld [vmem:[#allocation16 + $0x4f8] sm:$0xf0] }
 0x1ea   :  { %2722 = vmatpush.bf16.msrb.mxu0 %v4469_v3  ;;  %2735 = vmatpush.bf16.msra.mxu1 %v4597_v4  ;;  %v2465_v49 = vadd.f32 %v2464_v45, %v1167_v38  ;;  %v5439_v3 = vld [vmem:[#allocation16 + $0x16c] sm:$0xf]  ;;  %v4134_v4 = vld [vmem:[#allocation16 + $0x178] sm:$0xf0] }
 0x1eb   :  { %v4137_v10 = vor.u32 %v5439_v3, %v4134_v4  ;;  %v5431_v38 = vld [vmem:[#allocation16 + $0x12c] sm:$0xf] }
 0x1ec   :  { %2747 = vmatpush.bf16.msra.mxu2 %v4741_v11  ;;  %2760 = vmatpush.bf16.msrb.mxu3 %v4869_v12  ;;  %v6320_v59 = vadd.f32 %v2477_v46, %v2465_v49  ;;  %v4105_v45 = vor.u32 %v5431_v38, %v4102_v39  ;;  %v5395_v46 = vld [vmem:[#allocation16 + $0xc] sm:$0xf] }
 0x1ed   :  { %2723 = vmatmul.bf16.vlgmr.msrb.gmra.mxu0 %v6286_v61  ;;  %2736 = vmatmul.bf16.vlgmr.msra.gmra.mxu1 %v6288_v62 }
 0x1ee   :  { %2767 = vmatpush.bf16.msra.mxu0 %v4073_v6  ;;  %2780 = vmatpush.bf16.msrb.mxu1 %v4201_v7  ;;  %v4278_v6 = vld [vmem:[#allocation16 + $0x298] sm:$0xf0]  ;;  %v5507_v7 = vld [vmem:[#allocation16 + $0x38c] sm:$0xf] }
 0x1ef   :  { %v4281_v15 = vor.u32 %v5475_v5, %v4278_v6  ;;  %v4409_v16 = vor.u32 %v5507_v7, %v4406_v8  ;;  %v4585_v5 = vor.u32 %v5551_v55, %v4582_v56  ;;  %v4713_v6 = vor.u32 %v5583_v57, %v4710_v58  ;;  %v5547_v7 = vld [vmem:[#allocation16 + $0x4cc] sm:$0xf]  ;;  %v4566_v8 = vld [vmem:[#allocation16 + $0x4d8] sm:$0xf0] }
 0x1f0   :  { %2748 = vmatpush.bf16.msra.mxu2 %v4725_v26  ;;  %2761 = vmatpush.bf16.msrb.mxu3 %v4853_v27  ;;  %v3993_v26 = vor.u32 %v5403_v13, %v3990_v14  ;;  %v4121_v27 = vor.u32 %v5435_v17, %v4118_v18  ;;  %v5459_v13 = vld [vmem:[#allocation16 + $0x20c] sm:$0xf]  ;;  %v4214_v14 = vld [vmem:[#allocation16 + $0x218] sm:$0xf0] }
 0x1f1   :  { %v2466_v11 = vpop.f32.mrf.mxu0  ;;  %v2479_v12 = vpop.f32.mrf.mxu1  ;;  %v5615_v17 = vld [vmem:[#allocation16 + $0x6ec] sm:$0xf]  ;;  %v4838_v18 = vld [vmem:[#allocation16 + $0x6f8] sm:$0xf0] }
 0x1f2   :  { %2768 = vmatpush.bf16.msra.mxu0 %v4057_v24  ;;  %2781 = vmatpush.bf16.msrb.mxu1 %v4185_v25  ;;  %v5503_v24 = vld [vmem:[#allocation16 + $0x36c] sm:$0xf]  ;;  %v4390_v25 = vld [vmem:[#allocation16 + $0x378] sm:$0xf0]  ;;  %v4361_v11 = vor.u32 %v5495_v63, %v4358_v0  ;;  %v4841_v38 = vor.u32 %v5615_v17, %v4838_v18 }
 0x1f3   :  { %2749 = vmatmul.bf16.vlgmr.msra.gmra.mxu2 %v6292_v33  ;;  %2762 = vmatmul.bf16.vlgmr.msrb.gmra.mxu3 %v6294_v34  ;;  %v4393_v37 = vor.u32 %v5503_v24, %v4390_v25  ;;  %v4694_v12 = vld [vmem:[#allocation16 + $0x5d8] sm:$0xf0]  ;;  %v5571_v55 = vld [vmem:[#allocation16 + $0x58c] sm:$0xf] }
 0x1f4   :  { %2793 = vmatpush.bf16.msrb.mxu2 %v4329_v31  ;;  %2806 = vmatpush.bf16.msra.mxu3 %v4457_v36  ;;  %v4265_v36 = vor.u32 %v5471_v19, %v4262_v22  ;;  %v5647_v19 = vld [vmem:[#allocation16 + $0x7ec] sm:$0xf]  ;;  %v4966_v22 = vld [vmem:[#allocation16 + $0x7f8] sm:$0xf0] }
 0x1f5   :  { %v4969_v39 = vor.u32 %v5647_v19, %v4966_v22  ;;  %v4662_v56 = vld [vmem:[#allocation16 + $0x598] sm:$0xf0]  ;;  %v5607_v57 = vld [vmem:[#allocation16 + $0x6ac] sm:$0xf] }
 0x1f6   :  { %2769 = vmatpush.bf16.msra.mxu0 %v4041_v43  ;;  %2782 = vmatpush.bf16.msrb.mxu1 %v4169_v44  ;;  %v6322_v30 = vpop.f32.mrf.mxu2  ;;  %v6324_v31 = vpop.f32.mrf.mxu3  ;;  %v4374_v43 = vld [vmem:[#allocation16 + $0x358] sm:$0xf0]  ;;  %v3977_v44 = vor.u32 %v5399_v28, %v3974_v29  ;;  %v4217_v28 = vor.u32 %v5459_v13, %v4214_v14  ;;  %v5563_v19 = vld [vmem:[#allocation16 + $0x54c] sm:$0xf] }
 0x1f7   :  { %v4377_v51 = vor.u32 %v5499_v42, %v4374_v43  ;;  %v5611_v42 = vld [vmem:[#allocation16 + $0x6cc] sm:$0xf]  ;;  %v4822_v43 = vld [vmem:[#allocation16 + $0x6d8] sm:$0xf0] }
 0x1f8   :  { %2794 = vmatpush.bf16.msrb.mxu2 %v4313_v40  ;;  %2807 = vmatpush.bf16.msra.mxu3 %v4441_v50  ;;  %v4249_v50 = vor.u32 %v5467_v35, %v4246_v41  ;;  %v5575_v35 = vld [vmem:[#allocation16 + $0x5ac] sm:$0xf]  ;;  %v4678_v41 = vld [vmem:[#allocation16 + $0x5b8] sm:$0xf0] }
 0x1f9   :  { %v4806_v58 = vld [vmem:[#allocation16 + $0x6b8] sm:$0xf0] }
 0x1fa   :  { %2770 = vmatpush.bf16.msra.mxu0 %v4025_v60  ;;  %2783 = vmatpush.bf16.msrb.mxu1 %v4153_v32  ;;  %v6326_v49 = vpop.f32.mrf.mxu0  ;;  %v6328_v40 = vpop.f32.mrf.mxu1  ;;  %v5463_v60 = vld [vmem:[#allocation16 + $0x22c] sm:$0xf]  ;;  %v4230_v32 = vld [vmem:[#allocation16 + $0x238] sm:$0xf0] }
 0x1fb   :  { %v4630_v22 = vld [vmem:[#allocation16 + $0x558] sm:$0xf0] }
 0x1fc   :  { %2795 = vmatpush.bf16.msrb.mxu2 %v4297_v1  ;;  %2808 = vmatpush.bf16.msra.mxu3 %v4425_v2  ;;  %v3961_v1 = vor.u32 %v5395_v46, %v3958_v47  ;;  %v4089_v2 = vor.u32 %v5427_v48, %v4086_v54 }
 0x1fe   :  { %2771 = vmatpush.bf16.msra.mxu0 %v4009_v9  ;;  %2784 = vmatpush.bf16.msrb.mxu1 %v4137_v10  ;;  %v2492_v3 = vpop.f32.mrf.mxu2  ;;  %v2505_v4 = vpop.f32.mrf.mxu3  ;;  %v5579_v9 = vld [vmem:[#allocation16 + $0x5cc] sm:$0xf]  ;;  %v4233_v10 = vor.u32 %v5463_v60, %v4230_v32  ;;  %v4934_v32 = vld [vmem:[#allocation16 + $0x7b8] sm:$0xf0] }
 0x1ff   :  { %v5639_v60 = vld [vmem:[#allocation16 + $0x7ac] sm:$0xf]  ;;  %v4518_v4 = vld [vmem:[#allocation16 + $0x478] sm:$0xf0] }
 0x200   :  { %2796 = vmatpush.bf16.msrb.mxu2 %v4281_v15  ;;  %2809 = vmatpush.bf16.msra.mxu3 %v4409_v16  ;;  %v5491_v15 = vld [vmem:[#allocation16 + $0x30c] sm:$0xf]  ;;  %v4342_v16 = vld [vmem:[#allocation16 + $0x318] sm:$0xf0] }
 0x201   :  { %v4345_v29 = vor.u32 %v5491_v15, %v4342_v16  ;;  %v5535_v3 = vld [vmem:[#allocation16 + $0x46c] sm:$0xf]  ;;  %v4502_v16 = vld [vmem:[#allocation16 + $0x458] sm:$0xf0] }
 0x202   :  { %2772 = vmatpush.bf16.msra.mxu0 %v3993_v26  ;;  %2785 = vmatpush.bf16.msrb.mxu1 %v4121_v27  ;;  %v2518_v24 = vpop.f32.mrf.mxu0  ;;  %v2531_v25 = vpop.f32.mrf.mxu1  ;;  %v4569_v26 = vor.u32 %v5547_v7, %v4566_v8  ;;  %v4697_v27 = vor.u32 %v5579_v9, %v4694_v12  ;;  %v5567_v7 = vld [vmem:[#allocation16 + $0x56c] sm:$0xf]  ;;  %v4646_v8 = vld [vmem:[#allocation16 + $0x578] sm:$0xf0]  ;;  %v4521_v13 = vor.u32 %v5535_v3, %v4518_v4  ;;  %v5092_v3 = vld [vmem:[#allocation17 + $0xf0] sm:$0xf] }
 0x203   :  { %v5603_v9 = vld [vmem:[#allocation16 + $0x68c] sm:$0xf]  ;;  %v4649_v14 = vor.u32 %v5567_v7, %v4646_v8  ;;  %v4774_v25 = vld [vmem:[#allocation16 + $0x678] sm:$0xf0]  ;;  %v5681_v4 = vld [vmem:[#allocation17 + $0xf4] sm:$0xf0] }
 0x204   :  { %2797 = vmatpush.bf16.msrb.mxu2 %v4265_v36  ;;  %2810 = vmatpush.bf16.msra.mxu3 %v4393_v37  ;;  %v5543_v36 = vld [vmem:[#allocation16 + $0x4ac] sm:$0xf]  ;;  %v4550_v37 = vld [vmem:[#allocation16 + $0x4b8] sm:$0xf0] }
 0x205   :  { %v4553_v48 = vor.u32 %v5543_v36, %v4550_v37  ;;  %v5531_v15 = vld [vmem:[#allocation16 + $0x44c] sm:$0xf]  ;;  %v4633_v37 = vor.u32 %v5563_v19, %v4630_v22  ;;  %v4870_v8 = vld [vmem:[#allocation16 + $0x738] sm:$0xf0]  ;;  %v2491_v19 = vadd.f32 %v6322_v30, %v6320_v59  ;;  %v5661_v30 = vld [vmem:[#allocation17 + $0x54] sm:$0xf0] }
 0x206   :  { %2773 = vmatpush.bf16.msra.mxu0 %v3977_v44  ;;  %2786 = vmatpush.bf16.msrb.mxu1 %v4105_v45  ;;  %v5643_v44 = vld [vmem:[#allocation16 + $0x7cc] sm:$0xf]  ;;  %v4950_v45 = vld [vmem:[#allocation16 + $0x7d8] sm:$0xf0]  ;;  %v6332_v46 = vpop.f32.mrf.mxu2  ;;  %v6334_v47 = vpop.f32.mrf.mxu3  ;;  %v4505_v36 = vor.u32 %v5531_v15, %v4502_v16  ;;  %v5084_v16 = vld [vmem:[#allocation17 + $0xe0] sm:$0xf] }
 0x207   :  { %v4953_v54 = vor.u32 %v5643_v44, %v4950_v45  ;;  %v5599_v24 = vld [vmem:[#allocation16 + $0x66c] sm:$0xf]  ;;  %v4758_v45 = vld [vmem:[#allocation16 + $0x658] sm:$0xf0] }
 0x208   :  { %2798 = vmatpush.bf16.msrb.mxu2 %v4249_v50  ;;  %2811 = vmatpush.bf16.msra.mxu3 %v4377_v51  ;;  %v5539_v50 = vld [vmem:[#allocation16 + $0x48c] sm:$0xf]  ;;  %v4825_v51 = vor.u32 %v5611_v42, %v4822_v43  ;;  %v4614_v43 = vld [vmem:[#allocation16 + $0x538] sm:$0xf0] }
 0x209   :  { %v5559_v42 = vld [vmem:[#allocation16 + $0x52c] sm:$0xf]  ;;  %v4726_v22 = vld [vmem:[#allocation16 + $0x618] sm:$0xf0] }
 0x20a   :  { %2774 = vmatpush.bf16.msra.mxu0 %v3961_v1  ;;  %2787 = vmatpush.bf16.msrb.mxu1 %v4089_v2  ;;  %v6338_v63 = vpop.f32.mrf.mxu0  ;;  %v6340_v0 = vpop.f32.mrf.mxu1  ;;  %v4665_v2 = vor.u32 %v5571_v55, %v4662_v56  ;;  %v5595_v44 = vld [vmem:[#allocation16 + $0x64c] sm:$0xf]  ;;  %v4470_v56 = vld [vmem:[#allocation16 + $0x418] sm:$0xf0] }
 0x20b   :  { %v5523_v55 = vld [vmem:[#allocation16 + $0x40c] sm:$0xf] }
 0x20c   :  { %2799 = vmatpush.bf16.msrb.mxu2 %v4233_v10  ;;  %2812 = vmatpush.bf16.msra.mxu3 %v4361_v11  ;;  %v5635_v10 = vld [vmem:[#allocation16 + $0x78c] sm:$0xf] }
 0x20d   :  { %2775 = vmatmul.bf16.vlgmr.msra.gmra.mxu0 %v6270_v52  ;;  %2788 = vmatmul.bf16.vlgmr.msrb.gmra.mxu1 %v6272_v53  ;;  %v4681_v52 = vor.u32 %v5575_v35, %v4678_v41  ;;  %v4534_v53 = vld [vmem:[#allocation16 + $0x498] sm:$0xf0]  ;;  %v4777_v35 = vor.u32 %v5599_v24, %v4774_v25  ;;  %v5623_v7 = vld [vmem:[#allocation16 + $0x72c] sm:$0xf] }
 0x20e   :  { %2819 = vmatpush.bf16.msrb.mxu0 %v4585_v5  ;;  %2832 = vmatpush.bf16.msra.mxu1 %v4713_v6  ;;  %v4537_v1 = vor.u32 %v5539_v50, %v4534_v53  ;;  %v4809_v5 = vor.u32 %v5607_v57, %v4806_v58  ;;  %v4937_v6 = vor.u32 %v5639_v60, %v4934_v32  ;;  %v2544_v11 = vpop.f32.mrf.mxu2  ;;  %v2557_v12 = vpop.f32.mrf.mxu3  ;;  %v5555_v57 = vld [vmem:[#allocation16 + $0x50c] sm:$0xf]  ;;  %v4598_v32 = vld [vmem:[#allocation16 + $0x518] sm:$0xf0] }
 0x20f   :  { %v4761_v58 = vor.u32 %v5595_v44, %v4758_v45  ;;  %v5093_v11 = vor.u32 %v5681_v4, %v5092_v3  ;;  %v5020_v12 = vld [vmem:[#allocation17 + $0x60] sm:$0xf]  ;;  %v4873_v15 = vor.u32 %v5623_v7, %v4870_v8  ;;  %v5619_v24 = vld [vmem:[#allocation16 + $0x70c] sm:$0xf]  ;;  %v4854_v25 = vld [vmem:[#allocation16 + $0x718] sm:$0xf0] }
 0x210   :  { %2800 = vmatpush.bf16.msrb.mxu2 %v4217_v28  ;;  %2813 = vmatpush.bf16.msra.mxu3 %v4345_v29  ;;  %v5004_v44 = vld [vmem:[#allocation17 + $0x40] sm:$0xf]  ;;  %v5671_v4 = vld [vmem:[#allocation17 + $0xa4] sm:$0xf0] }
 0x212   :  { %2820 = vmatpush.bf16.msrb.mxu0 %v4569_v26  ;;  %2833 = vmatpush.bf16.msra.mxu1 %v4697_v27  ;;  %v5631_v26 = vld [vmem:[#allocation16 + $0x76c] sm:$0xf]  ;;  %v4902_v27 = vld [vmem:[#allocation16 + $0x778] sm:$0xf0]  ;;  %v2570_v28 = vpop.f32.mrf.mxu0  ;;  %v2583_v29 = vpop.f32.mrf.mxu1 }
 0x213   :  { %2801 = vmatmul.bf16.vlgmr.msrb.gmra.mxu2 %v6278_v20  ;;  %2814 = vmatmul.bf16.vlgmr.msra.gmra.mxu3 %v6280_v21  ;;  %v4790_v20 = vld [vmem:[#allocation16 + $0x698] sm:$0xf0]  ;;  %v4905_v41 = vor.u32 %v5631_v26, %v4902_v27 }
 0x214   :  { %2845 = vmatpush.bf16.msra.mxu2 %v4841_v38  ;;  %2858 = vmatpush.bf16.msrb.mxu3 %v4969_v39  ;;  %v4918_v21 = vld [vmem:[#allocation16 + $0x798] sm:$0xf0]  ;;  %v4793_v17 = vor.u32 %v5603_v9, %v4790_v20  ;;  %v5527_v38 = vld [vmem:[#allocation16 + $0x42c] sm:$0xf]  ;;  %v4473_v9 = vor.u32 %v5523_v55, %v4470_v56  ;;  %v4601_v20 = vor.u32 %v5555_v57, %v4598_v32  ;;  %v4996_v56 = vld [vmem:[#allocation17 + $0x30] sm:$0xf] }
 0x215   :  { %v4921_v18 = vor.u32 %v5635_v10, %v4918_v21  ;;  %v4486_v39 = vld [vmem:[#allocation16 + $0x438] sm:$0xf0]  ;;  %v1168_v10 = vperm.slane %v6313_v23, 1  ;;  %v5657_v57 = vld [vmem:[#allocation17 + $0x34] sm:$0xf0] }
 0x216   :  { %2821 = vmatpush.bf16.msrb.mxu0 %v4553_v48  ;;  %2834 = vmatpush.bf16.msra.mxu1 %v4681_v52  ;;  %v5627_v48 = vld [vmem:[#allocation16 + $0x74c] sm:$0xf]  ;;  %v4886_v52 = vld [vmem:[#allocation16 + $0x758] sm:$0xf0]  ;;  %v6342_v50 = vpop.f32.mrf.mxu2  ;;  %v6344_v53 = vpop.f32.mrf.mxu3 }
 0x217   :  { %v4889_v60 = vor.u32 %v5627_v48, %v4886_v52  ;;  %v2569_v59 = vadd.f32 %v6338_v63, %v1168_v10  ;;  %v5659_v48 = vld [vmem:[#allocation17 + $0x44] sm:$0xf0]  ;;  %v5068_v63 = vld [vmem:[#allocation17 + $0xc0] sm:$0xf]  ;;  %v5653_v10 = vld [vmem:[#allocation17 + $0x14] sm:$0xf0] }
 0x218   :  { %2846 = vmatpush.bf16.msra.mxu2 %v4825_v51  ;;  %2859 = vmatpush.bf16.msrb.mxu3 %v4953_v54  ;;  %v4489_v51 = vor.u32 %v5527_v38, %v4486_v39  ;;  %v4617_v54 = vor.u32 %v5559_v42, %v4614_v43  ;;  %v5012_v38 = vld [vmem:[#allocation17 + $0x50] sm:$0xf]  ;;  %v2504_v39 = vadd.f32 %v6324_v31, %v2491_v19  ;;  %v5675_v52 = vld [vmem:[#allocation17 + $0xc4] sm:$0xf0] }
 0x219   :  { %v5013_v42 = vor.u32 %v5661_v30, %v5012_v38  ;;  %v2582_v31 = vadd.f32 %v6340_v0, %v2569_v59  ;;  %v5069_v55 = vor.u32 %v5675_v52, %v5068_v63  ;;  %v5060_v0 = vld [vmem:[#allocation17 + $0xb0] sm:$0xf]  ;;  %v5030_v38 = vld [vmem:[#allocation17 + $0x78] sm:$0xf0]  ;;  %v5132_v63 = vld [vmem:[#allocation17 + $0x140] sm:$0xf] }
 0x21a   :  { %2822 = vmatpush.bf16.msrb.mxu0 %v4537_v1  ;;  %2835 = vmatpush.bf16.msra.mxu1 %v4665_v2  ;;  %v5028_v1 = vld [vmem:[#allocation17 + $0x70] sm:$0xf]  ;;  %v5665_v2 = vld [vmem:[#allocation17 + $0x74] sm:$0xf0]  ;;  %v2517_v45 = vadd.f32 %v6326_v49, %v2504_v39  ;;  %v5680_v39 = vld [vmem:[#allocation17 + $0xf4] sm:$0xf] }
 0x21b   :  { %v5029_v21 = vor.u32 %v5665_v2, %v5028_v1  ;;  %v4988_v1 = vld [vmem:[#allocation17 + $0x20] sm:$0xf]  ;;  %v5094_v59 = vld [vmem:[#allocation17 + $0xf8] sm:$0xf0]  ;;  %v5691_v52 = vld [vmem:[#allocation17 + $0x144] sm:$0xf0] }
 0x21c   :  { %2847 = vmatpush.bf16.msra.mxu2 %v4809_v5  ;;  %2860 = vmatpush.bf16.msrb.mxu3 %v4937_v6  ;;  %v5591_v5 = vld [vmem:[#allocation16 + $0x62c] sm:$0xf]  ;;  %v4742_v6 = vld [vmem:[#allocation16 + $0x638] sm:$0xf0]  ;;  %v2530_v49 = vadd.f32 %v6328_v40, %v2517_v45  ;;  %v5052_v2 = vld [vmem:[#allocation17 + $0xa0] sm:$0xf] }
 0x21e   :  { %2823 = vmatpush.bf16.msrb.mxu0 %v4521_v13  ;;  %2836 = vmatpush.bf16.msra.mxu1 %v4649_v14  ;;  %v5663_v13 = vld [vmem:[#allocation17 + $0x64] sm:$0xf0]  ;;  %v4745_v14 = vor.u32 %v5591_v5, %v4742_v6  ;;  %v2596_v26 = vpop.f32.mrf.mxu2  ;;  %v2609_v27 = vpop.f32.mrf.mxu3  ;;  %v5156_v5 = vld [vmem:[#allocation17 + $0x170] sm:$0xf]  ;;  %v5697_v6 = vld [vmem:[#allocation17 + $0x174] sm:$0xf0] }
 0x21f   :  { %v5021_v28 = vor.u32 %v5663_v13, %v5020_v12  ;;  %v5157_v8 = vor.u32 %v5697_v6, %v5156_v5  ;;  %v5669_v12 = vld [vmem:[#allocation17 + $0x94] sm:$0xf0]  ;;  %v5148_v13 = vld [vmem:[#allocation17 + $0x160] sm:$0xf]  ;;  %v5667_v27 = vld [vmem:[#allocation17 + $0x84] sm:$0xf0] }
 0x220   :  { %2848 = vmatpush.bf16.msra.mxu2 %v4793_v17  ;;  %2861 = vmatpush.bf16.msrb.mxu3 %v4921_v18  ;;  %v5679_v17 = vld [vmem:[#allocation17 + $0xe4] sm:$0xf0]  ;;  %v5587_v18 = vld [vmem:[#allocation16 + $0x60c] sm:$0xf]  ;;  %v5036_v26 = vld [vmem:[#allocation17 + $0x80] sm:$0xf] }
 0x221   :  { %v5085_v29 = vor.u32 %v5679_v17, %v5084_v16 }
 0x222   :  { %2824 = vmatpush.bf16.msrb.mxu0 %v4505_v36  ;;  %2837 = vmatpush.bf16.msra.mxu1 %v4633_v37  ;;  %v4729_v36 = vor.u32 %v5587_v18, %v4726_v22  ;;  %v4857_v37 = vor.u32 %v5619_v24, %v4854_v25  ;;  %v4972_v22 = vld [vmem:[#allocation17] sm:$0xf]  ;;  %v5651_v25 = vld [vmem:[#allocation17 + $0x4] sm:$0xf0] }
 0x224   :  { %2849 = vmatpush.bf16.msra.mxu2 %v4777_v35  ;;  %2862 = vmatpush.bf16.msrb.mxu3 %v4905_v41  ;;  %v5076_v35 = vld [vmem:[#allocation17 + $0xd0] sm:$0xf]  ;;  %v5677_v41 = vld [vmem:[#allocation17 + $0xd4] sm:$0xf0] }
 0x225   :  { %v5077_v43 = vor.u32 %v5677_v41, %v5076_v35  ;;  %v4973_v41 = vor.u32 %v5651_v25, %v4972_v22  ;;  %v4990_v25 = vld [vmem:[#allocation17 + $0x28] sm:$0xf0] }
 0x226   :  { %2825 = vmatpush.bf16.msrb.mxu0 %v4489_v51  ;;  %2838 = vmatpush.bf16.msra.mxu1 %v4617_v54  ;;  %v5005_v54 = vor.u32 %v5659_v48, %v5004_v44  ;;  %v5662_v48 = vld [vmem:[#allocation17 + $0x64] sm:$0xf] }
 0x228   :  { %2850 = vmatpush.bf16.msra.mxu2 %v4761_v58  ;;  %2863 = vmatpush.bf16.msrb.mxu3 %v4889_v60  ;;  %v5673_v58 = vld [vmem:[#allocation17 + $0xb4] sm:$0xf0]  ;;  %v2543_v60 = vadd.f32 %v6332_v46, %v2530_v49 }
 0x22a   :  { %2826 = vmatpush.bf16.msrb.mxu0 %v4473_v9  ;;  %2839 = vmatpush.bf16.msra.mxu1 %v4601_v20  ;;  %v2633_v51 = vpop.f32.mrf.mxu1  ;;  %v2556_v9 = vadd.f32 %v6334_v47, %v2543_v60  ;;  %v4980_v20 = vld [vmem:[#allocation17 + $0x10] sm:$0xf] }
 0x22b   :  { %v4981_v47 = vor.u32 %v5653_v10, %v4980_v20 }
 0x22c   :  { %2851 = vmatpush.bf16.msra.mxu2 %v4745_v14  ;;  %2864 = vmatpush.bf16.msrb.mxu3 %v4873_v15  ;;  %v5695_v14 = vld [vmem:[#allocation17 + $0x164] sm:$0xf0]  ;;  %v2871_v18 = vmul.f32 0.01, %v2556_v9 }
 0x22d   :  { %2827 = vmatmul.bf16.vlgmr.msrb.gmra.mxu0 %v6286_v61  ;;  %2840 = vmatmul.bf16.vlgmr.msra.gmra.mxu1 %v6288_v62  ;;  %v2620_v61 = vpop.f32.mrf.mxu0  ;;  %v2595_v62 = vadd.f32 %v6342_v50, %v2582_v31  ;;  %v4997_v50 = vor.u32 %v5657_v57, %v4996_v56  ;;  %v5149_v17 = vor.u32 %v5695_v14, %v5148_v13  ;;  %v5124_v57 = vld [vmem:[#allocation17 + $0x130] sm:$0xf]  ;;  %v5685_v13 = vld [vmem:[#allocation17 + $0x114] sm:$0xf0]  ;;  %v4998_v14 = vld [vmem:[#allocation17 + $0x38] sm:$0xf0] }
 0x22e   :  { %3273 = vmatpush.bf16.msra.mxu0 %v5029_v21  ;;  %3286 = vmatpush.bf16.msrb.mxu1 %v5093_v11  ;;  %v5044_v21 = vld [vmem:[#allocation17 + $0x90] sm:$0xf]  ;;  %v5097_v31 = vor.u32 %v5680_v39, %v5094_v59  ;;  %v5133_v56 = vor.u32 %v5691_v52, %v5132_v63 }
 0x22f   :  { %v2608_v32 = vadd.f32 %v6344_v53, %v2595_v62  ;;  %v5053_v53 = vor.u32 %v5671_v4, %v5052_v2  ;;  %v5045_v24 = vor.u32 %v5669_v12, %v5044_v21  ;;  %v5022_v62 = vld [vmem:[#allocation17 + $0x68] sm:$0xf0]  ;;  %v5687_v4 = vld [vmem:[#allocation17 + $0x124] sm:$0xf0]  ;;  %v5108_v12 = vld [vmem:[#allocation17 + $0x110] sm:$0xf] }
 0x230   :  { %2852 = vmatpush.bf16.msra.mxu2 %v4729_v36  ;;  %2865 = vmatpush.bf16.msrb.mxu3 %v4857_v37  ;;  %v5140_v36 = vld [vmem:[#allocation17 + $0x150] sm:$0xf]  ;;  %v5693_v37 = vld [vmem:[#allocation17 + $0x154] sm:$0xf0]  ;;  %v5025_v60 = vor.u32 %v5662_v48, %v5022_v62  ;;  %v4974_v62 = vld [vmem:[#allocation17 + $0x8] sm:$0xf0] }
 0x231   :  { %v2621_v3 = vadd.f32 %v2620_v61, %v2608_v32  ;;  %v5141_v30 = vor.u32 %v5693_v37, %v5140_v36  ;;  %v5158_v36 = vld [vmem:[#allocation17 + $0x178] sm:$0xf0] }
 0x232   :  { %3274 = vmatpush.bf16.msra.mxu0 %v5021_v28  ;;  %3287 = vmatpush.bf16.msrb.mxu1 %v5085_v29  ;;  %v2635_v40 = vpop.f32.mrf.mxu1  ;;  %v5664_v29 = vld [vmem:[#allocation17 + $0x74] sm:$0xf] }
 0x233   :  { %2853 = vmatmul.bf16.vlgmr.msra.gmra.mxu2 %v6292_v33  ;;  %2866 = vmatmul.bf16.vlgmr.msrb.gmra.mxu3 %v6294_v34  ;;  %v5061_v33 = vor.u32 %v5673_v58, %v5060_v0  ;;  %v5655_v34 = vld [vmem:[#allocation17 + $0x24] sm:$0xf0]  ;;  %v2634_v11 = vadd.f32 %v2633_v51, %v2621_v3  ;;  %v5033_v45 = vor.u32 %v5664_v29, %v5030_v38  ;;  %v5689_v0 = vld [vmem:[#allocation17 + $0x134] sm:$0xf0]  ;;  %v5116_v3 = vld [vmem:[#allocation17 + $0x120] sm:$0xf] }
 0x234   :  { %v4989_v46 = vor.u32 %v5655_v34, %v4988_v1  ;;  %3299 = vmatpush.bf16.msrb.mxu2 %v5157_v8  ;;  %v5676_v1 = vld [vmem:[#allocation17 + $0xd4] sm:$0xf]  ;;  %v5078_v34 = vld [vmem:[#allocation17 + $0xd8] sm:$0xf0]  ;;  %v5125_v2 = vor.u32 %v5689_v0, %v5124_v57  ;;  %v5006_v40 = vld [vmem:[#allocation17 + $0x48] sm:$0xf0] }
 0x235   :  { %v2622_v7 = vpop.f32.mrf.mxu0  ;;  %v5081_v6 = vor.u32 %v5676_v1, %v5078_v34  ;;  %v5674_v8 = vld [vmem:[#allocation17 + $0xc4] sm:$0xf]  ;;  %v5696_v29 = vld [vmem:[#allocation17 + $0x174] sm:$0xf]  ;;  %v5142_v57 = vld [vmem:[#allocation17 + $0x158] sm:$0xf0] }
 0x236   :  { %3275 = vmatpush.bf16.msra.mxu0 %v5013_v42  ;;  %3288 = vmatpush.bf16.msrb.mxu1 %v5077_v43  ;;  %v2646_v15 = vpop.f32.mrf.mxu2  ;;  %v2659_v16 = vpop.f32.mrf.mxu3  ;;  %v5037_v42 = vor.u32 %v5667_v27, %v5036_v26  ;;  %v2875_v43 = vmax.f32 %v2556_v9, %v2871_v18  ;;  %v5658_v7 = vld [vmem:[#allocation17 + $0x44] sm:$0xf]  ;;  %v5070_v9 = vld [vmem:[#allocation17 + $0xc8] sm:$0xf0]  ;;  %v5100_v18 = vld [vmem:[#allocation17 + $0x100] sm:$0xf]  ;;  %v5161_v37 = vor.u32 %v5696_v29, %v5158_v36 }
 0x237   :  { %v2647_v19 = vadd.f32 %v2646_v15, %v2634_v11  ;;  %v5009_v10 = vor.u32 %v5658_v7, %v5006_v40  ;;  %v5073_v21 = vor.u32 %v5674_v8, %v5070_v9  ;;  %v5656_v11 = vld [vmem:[#allocation17 + $0x34] sm:$0xf]  ;;  %v5670_v26 = vld [vmem:[#allocation17 + $0xa4] sm:$0xf]  ;;  %v5054_v27 = vld [vmem:[#allocation17 + $0xa8] sm:$0xf0] }
 0x238   :  { %3300 = vmatpush.bf16.msrb.mxu2 %v5149_v17  ;;  %v6364_v58 = vpack.c.bf16 %v2875_v43, %v2875_v43  ;;  %v5672_v15 = vld [vmem:[#allocation17 + $0xb4] sm:$0xf]  ;;  %v5109_v17 = vor.u32 %v5685_v13, %v5108_v12  ;;  %v5001_v22 = vor.u32 %v5656_v11, %v4998_v14  ;;  %v5046_v43 = vld [vmem:[#allocation17 + $0x98] sm:$0xf0]  ;;  %v5686_v7 = vld [vmem:[#allocation17 + $0x124] sm:$0xf] }
 0x239   :  { %v2660_v28 = vadd.f32 %v2659_v16, %v2647_v19  ;;  %v5062_v16 = vld [vmem:[#allocation17 + $0xb8] sm:$0xf0]  ;;  %v5683_v19 = vld [vmem:[#allocation17 + $0x104] sm:$0xf0]  ;;  %v5118_v40 = vld [vmem:[#allocation17 + $0x128] sm:$0xf0] }
 0x23a   :  { %3276 = vmatpush.bf16.msra.mxu0 %v5005_v54  ;;  %3289 = vmatpush.bf16.msrb.mxu1 %v5069_v55  ;;  %v5678_v54 = vld [vmem:[#allocation17 + $0xe4] sm:$0xf]  ;;  %v5086_v55 = vld [vmem:[#allocation17 + $0xe8] sm:$0xf0]  ;;  %v5121_v9 = vor.u32 %v5686_v7, %v5118_v40  ;;  %v5110_v11 = vld [vmem:[#allocation17 + $0x118] sm:$0xf0] }
 0x23b   :  { %v2872_v35 = vmul.f32 0.01, %v2660_v28  ;;  %v5089_v32 = vor.u32 %v5678_v54, %v5086_v55  ;;  %v5666_v54 = vld [vmem:[#allocation17 + $0x84] sm:$0xf]  ;;  %v5038_v55 = vld [vmem:[#allocation17 + $0x88] sm:$0xf0] }
 0x23c   :  { %3301 = vmatpush.bf16.msrb.mxu2 %v5141_v30  ;;  %v5057_v30 = vor.u32 %v5670_v26, %v5054_v27  ;;  %v5682_v14 = vld [vmem:[#allocation17 + $0x104] sm:$0xf]  ;;  %v5204_v29 = vld [vmem:[#allocation17 + $0x1d0] sm:$0xf]  ;;  %v5709_v36 = vld [vmem:[#allocation17 + $0x1d4] sm:$0xf0] }
 0x23d   :  { %v2876_v44 = vmax.f32 %v2660_v28, %v2872_v35  ;;  %v5101_v28 = vor.u32 %v5683_v19, %v5100_v18  ;;  %v5652_v35 = vld [vmem:[#allocation17 + $0x14] sm:$0xf]  ;;  %v5206_v40 = vld [vmem:[#allocation17 + $0x1d8] sm:$0xf0] }
 0x23e   :  { %3277 = vmatpush.bf16.msra.mxu0 %v4997_v50  ;;  %3290 = vmatpush.bf16.msrb.mxu1 %v5061_v33  ;;  %v2648_v61 = vpop.f32.mrf.mxu2  ;;  %v2661_v51 = vpop.f32.mrf.mxu3  ;;  %v5660_v50 = vld [vmem:[#allocation17 + $0x54] sm:$0xf]  ;;  %v5014_v33 = vld [vmem:[#allocation17 + $0x58] sm:$0xf0] }
 0x23f   :  { %v6362_v49 = vpack.c.bf16 %v2876_v44, %v2876_v44  ;;  %v5017_v5 = vor.u32 %v5660_v50, %v5014_v33  ;;  %v5694_v44 = vld [vmem:[#allocation17 + $0x164] sm:$0xf]  ;;  %v5134_v33 = vld [vmem:[#allocation17 + $0x148] sm:$0xf0]  ;;  %v5708_v7 = vld [vmem:[#allocation17 + $0x1d4] sm:$0xf] }
 0x240   :  { %3302 = vmatpush.bf16.msrb.mxu2 %v5133_v56  ;;  %v5650_v51 = vld [vmem:[#allocation17 + $0x4] sm:$0xf]  ;;  %v5692_v56 = vld [vmem:[#allocation17 + $0x154] sm:$0xf] }
 0x241   :  { %v5145_v0 = vor.u32 %v5692_v56, %v5142_v57  ;;  %v5690_v50 = vld [vmem:[#allocation17 + $0x144] sm:$0xf]  ;;  %v5164_v57 = vld [vmem:[#allocation17 + $0x180] sm:$0xf] }
 0x242   :  { %3278 = vmatpush.bf16.msra.mxu0 %v4989_v46  ;;  %3291 = vmatpush.bf16.msrb.mxu1 %v5053_v53  ;;  %v5117_v46 = vor.u32 %v5687_v4, %v5116_v3  ;;  %v5137_v1 = vor.u32 %v5690_v50, %v5134_v33  ;;  %v1169_v3 = vperm.slane %v6313_v23, 2  ;;  %v5688_v4 = vld [vmem:[#allocation17 + $0x134] sm:$0xf]  ;;  %v5222_v50 = vld [vmem:[#allocation17 + $0x1f8] sm:$0xf0] }
 0x244   :  { %3303 = vmatpush.bf16.msrb.mxu2 %v5125_v2 }
 0x246   :  { %3279 = vmatpush.bf16.msra.mxu0 %v4981_v47  ;;  %3292 = vmatpush.bf16.msrb.mxu1 %v5045_v24  ;;  %v5065_v47 = vor.u32 %v5672_v15, %v5062_v16  ;;  %v5654_v24 = vld [vmem:[#allocation17 + $0x24] sm:$0xf]  ;;  %v5102_v15 = vld [vmem:[#allocation17 + $0x108] sm:$0xf0]  ;;  %v5220_v16 = vld [vmem:[#allocation17 + $0x1f0] sm:$0xf] }
 0x247   :  { %v4993_v59 = vor.u32 %v5654_v24, %v4990_v25 }
 0x248   :  { %3304 = vmatpush.bf16.msrb.mxu2 %v5117_v46 }
 0x24a   :  { %3280 = vmatpush.bf16.msra.mxu0 %v4973_v41  ;;  %3293 = vmatpush.bf16.msrb.mxu1 %v5037_v42  ;;  %v6368_v53 = vpop.f32.mrf.mxu0  ;;  %v6370_v20 = vpop.f32.mrf.mxu1  ;;  %v4982_v41 = vld [vmem:[#allocation17 + $0x18] sm:$0xf0]  ;;  %v5668_v42 = vld [vmem:[#allocation17 + $0x94] sm:$0xf] }
 0x24b   :  { %v4985_v52 = vor.u32 %v5652_v35, %v4982_v41  ;;  %v5049_v61 = vor.u32 %v5668_v42, %v5046_v43  ;;  %v2673_v8 = vadd.f32 %v6368_v53, %v1169_v3  ;;  %v5188_v41 = vld [vmem:[#allocation17 + $0x1b0] sm:$0xf]  ;;  %v5705_v42 = vld [vmem:[#allocation17 + $0x1b4] sm:$0xf0]  ;;  %v5214_v3 = vld [vmem:[#allocation17 + $0x1e8] sm:$0xf0] }
 0x24c   :  { %3305 = vmatpush.bf16.msrb.mxu2 %v5109_v17  ;;  %v5713_v17 = vld [vmem:[#allocation17 + $0x1f4] sm:$0xf0] }
 0x24d   :  { %3281 = vmatmul.bf16.vlgmr.msra.gmra.mxu0 %v6364_v58  ;;  %3294 = vmatmul.bf16.vlgmr.msrb.gmra.mxu1 %v6362_v49  ;;  %v2686_v46 = vadd.f32 %v6370_v20, %v2673_v8  ;;  %v5221_v18 = vor.u32 %v5713_v17, %v5220_v16  ;;  %v5212_v20 = vld [vmem:[#allocation17 + $0x1e0] sm:$0xf]  ;;  %v5209_v8 = vor.u32 %v5708_v7, %v5206_v40  ;;  %v5716_v40 = vld [vmem:[#allocation19 + $0x10] sm:$0xff] }
 0x24e   :  { %3325 = vmatpush.bf16.msrb.mxu0 %v5033_v45  ;;  %3338 = vmatpush.bf16.msra.mxu1 %v5097_v31  ;;  %v5150_v45 = vld [vmem:[#allocation17 + $0x168] sm:$0xf0] }
 0x24f   :  { %v5153_v31 = vor.u32 %v5694_v44, %v5150_v45  ;;  %3312 = vmatpush.bf16.msra.mxu3 %v5221_v18  ;;  %v5700_v18 = vld [vmem:[#allocation17 + $0x194] sm:$0xf] }
 0x250   :  { %3306 = vmatpush.bf16.msrb.mxu2 %v5101_v28 }
 0x252   :  { %3326 = vmatpush.bf16.msrb.mxu0 %v5025_v60  ;;  %3339 = vmatpush.bf16.msra.mxu1 %v5089_v32  ;;  %v2674_v38 = vpop.f32.mrf.mxu0  ;;  %v2687_v39 = vpop.f32.mrf.mxu1  ;;  %v4977_v60 = vor.u32 %v5650_v51, %v4974_v62  ;;  %v5041_v32 = vor.u32 %v5666_v54, %v5038_v55  ;;  %v5172_v51 = vld [vmem:[#allocation17 + $0x190] sm:$0xf]  ;;  %v5701_v62 = vld [vmem:[#allocation17 + $0x194] sm:$0xf0] }
 0x253   :  { %v5173_v56 = vor.u32 %v5701_v62, %v5172_v51 }
 0x254   :  { %3351 = vmatpush.bf16.msra.mxu2 %v5161_v37  ;;  %v5205_v37 = vor.u32 %v5709_v36, %v5204_v29 }
 0x256   :  { %3327 = vmatpush.bf16.msrb.mxu0 %v5017_v5  ;;  %3340 = vmatpush.bf16.msra.mxu1 %v5081_v6  ;;  %v2698_v48 = vpop.f32.mrf.mxu2  ;;  %v2711_v63 = vpop.f32.mrf.mxu3  ;;  %v5126_v5 = vld [vmem:[#allocation17 + $0x138] sm:$0xf0] }
 0x257   :  { %v5129_v6 = vor.u32 %v5688_v4, %v5126_v5  ;;  %v2699_v12 = vadd.f32 %v2698_v48, %v2686_v46  ;;  %v5198_v46 = vld [vmem:[#allocation17 + $0x1c8] sm:$0xf0] }
 0x258   :  { %3352 = vmatpush.bf16.msra.mxu2 %v5153_v31  ;;  %v5189_v31 = vor.u32 %v5705_v42, %v5188_v41 }
 0x25a   :  { %3328 = vmatpush.bf16.msrb.mxu0 %v5009_v10  ;;  %3341 = vmatpush.bf16.msra.mxu1 %v5073_v21  ;;  %v5684_v21 = vld [vmem:[#allocation17 + $0x114] sm:$0xf] }
 0x25b   :  { %v5113_v13 = vor.u32 %v5684_v21, %v5110_v11  ;;  %v5704_v11 = vld [vmem:[#allocation17 + $0x1b4] sm:$0xf] }
 0x25c   :  { %3353 = vmatpush.bf16.msra.mxu2 %v5145_v0  ;;  %v5699_v0 = vld [vmem:[#allocation17 + $0x184] sm:$0xf0] }
 0x25e   :  { %3329 = vmatpush.bf16.msrb.mxu0 %v5001_v22  ;;  %3342 = vmatpush.bf16.msra.mxu1 %v5065_v47  ;;  %v2700_v34 = vpop.f32.mrf.mxu2  ;;  %v2713_v2 = vpop.f32.mrf.mxu3  ;;  %v5711_v47 = vld [vmem:[#allocation17 + $0x1e4] sm:$0xf0] }
 0x25f   :  { %v5213_v24 = vor.u32 %v5711_v47, %v5212_v20  ;;  %v5710_v2 = vld [vmem:[#allocation17 + $0x1e4] sm:$0xf] }
 0x260   :  { %3354 = vmatpush.bf16.msra.mxu2 %v5137_v1  ;;  %v5217_v4 = vor.u32 %v5710_v2, %v5214_v3  ;;  %v5728_v2 = vld [vmem:[#allocation19 + $0x70] sm:$0xff]  ;;  %v5719_v3 = vld [vmem:[#allocation19 + $0x28] sm:$0xff] }
 0x261   :  { %3313 = vmatpush.bf16.msra.mxu3 %v5213_v24 }
 0x262   :  { %3330 = vmatpush.bf16.msrb.mxu0 %v4993_v59  ;;  %3343 = vmatpush.bf16.msra.mxu1 %v5057_v30  ;;  %v5196_v59 = vld [vmem:[#allocation17 + $0x1c0] sm:$0xf]  ;;  %v5707_v30 = vld [vmem:[#allocation17 + $0x1c4] sm:$0xf0] }
 0x263   :  { %v5197_v35 = vor.u32 %v5707_v30, %v5196_v59 }
 0x264   :  { %3355 = vmatpush.bf16.msra.mxu2 %v5129_v6 }
 0x265   :  { %3314 = vmatpush.bf16.msra.mxu3 %v5205_v37 }
 0x266   :  { %3331 = vmatpush.bf16.msrb.mxu0 %v4985_v52  ;;  %3344 = vmatpush.bf16.msra.mxu1 %v5049_v61  ;;  %v5703_v52 = vld [vmem:[#allocation17 + $0x1a4] sm:$0xf0] }
 0x268   :  { %3356 = vmatpush.bf16.msra.mxu2 %v5121_v9  ;;  %v5706_v9 = vld [vmem:[#allocation17 + $0x1c4] sm:$0xf] }
 0x269   :  { %3315 = vmatpush.bf16.msra.mxu3 %v5197_v35 }
 0x26a   :  { %3332 = vmatpush.bf16.msrb.mxu0 %v4977_v60  ;;  %3345 = vmatpush.bf16.msra.mxu1 %v5041_v32  ;;  %v2724_v10 = vpop.f32.mrf.mxu0  ;;  %v2737_v23 = vpop.f32.mrf.mxu1  ;;  %v5165_v60 = vor.u32 %v5699_v0, %v5164_v57  ;;  %v5712_v32 = vld [vmem:[#allocation17 + $0x1f4] sm:$0xf] }
 0x26b   :  { %v5225_v33 = vor.u32 %v5712_v32, %v5222_v50 }
 0x26c   :  { %3357 = vmatpush.bf16.msra.mxu2 %v5113_v13  ;;  %v5762_v13 = vld [vmem:[%s6404_s9] sm:$0xf] }
 0x26d   :  { %3333 = vmatmul.bf16.vlgmr.msrb.gmra.mxu0 %v6364_v58  ;;  %3346 = vmatmul.bf16.vlgmr.msra.gmra.mxu1 %v6362_v49  ;;  %v2712_v58 = vadd.f32 %v2711_v63, %v2699_v12  ;;  %v5105_v49 = vor.u32 %v5682_v14, %v5102_v15  ;;  %v5180_v63 = vld [vmem:[#allocation17 + $0x1a0] sm:$0xf]  ;;  %v5190_v12 = vld [vmem:[#allocation17 + $0x1b8] sm:$0xf0]  ;;  %v1170_v14 = vperm.slane %v5762_v13, 3  ;;  %v5723_v13 = vld [vmem:[#allocation19 + $0x48] sm:$0xff] }
 0x26e   :  { %3316 = vmatpush.bf16.msra.mxu3 %v5189_v31  ;;  %v5181_v61 = vor.u32 %v5703_v52, %v5180_v63  ;;  %v5193_v15 = vor.u32 %v5704_v11, %v5190_v12  ;;  %v2947_v31 = vld [vmem:[%s6406_s11] sm:$0x3]  ;;  %v5725_v11 = vld [vmem:[#allocation19 + $0x58] sm:$0xff] }
 0x26f   :  { %v2725_v53 = vadd.f32 %v2724_v10, %v2712_v58  ;;  %v5201_v10 = vor.u32 %v5706_v9, %v5198_v46  ;;  %v5702_v58 = vld [vmem:[#allocation17 + $0x1a4] sm:$0xf]  ;;  %v5715_v46 = vld [vmem:[#allocation19 + $0x8] sm:$0xff]  ;;  %v5724_v12 = vld [vmem:[#allocation19 + $0x50] sm:$0xff] }
 0x270   :  { %3358 = vmatpush.bf16.msra.mxu2 %v5105_v49  ;;  %v5182_v49 = vld [vmem:[#allocation17 + $0x1a8] sm:$0xf0] }
 0x271   :  { %v2738_v25 = vadd.f32 %v2737_v23, %v2725_v53  ;;  %v5185_v16 = vor.u32 %v5702_v58, %v5182_v49  ;;  %v5174_v53 = vld [vmem:[#allocation17 + $0x198] sm:$0xf0]  ;;  %v5736_v58 = vld [vmem:[#allocation20 + $0x30] sm:$0xff] }
 0x272   :  { %v2726_v19 = vpop.f32.mrf.mxu0  ;;  %v2739_v22 = vpop.f32.mrf.mxu1  ;;  %3317 = vmatpush.bf16.msra.mxu3 %v5181_v61 }
 0x273   :  { %v5177_v22 = vor.u32 %v5700_v18, %v5174_v53 }
 0x276   :  { %v2750_v26 = vpop.f32.mrf.mxu2  ;;  %v2763_v27 = vpop.f32.mrf.mxu3  ;;  %3318 = vmatpush.bf16.msra.mxu3 %v5173_v56 }
 0x277   :  { %v2751_v28 = vadd.f32 %v2750_v26, %v2738_v25  ;;  %v5698_v25 = vld [vmem:[#allocation17 + $0x184] sm:$0xf]  ;;  %v5166_v26 = vld [vmem:[#allocation17 + $0x188] sm:$0xf0] }
 0x279   :  { %v2764_v38 = vadd.f32 %v2763_v27, %v2751_v28  ;;  %v5169_v27 = vor.u32 %v5698_v25, %v5166_v26 }
 0x27a   :  { %3319 = vmatpush.bf16.msra.mxu3 %v5165_v60 }
 0x27b   :  { %v2873_v39 = vmul.f32 0.01, %v2764_v38 }
 0x27d   :  { %v2877_v43 = vmax.f32 %v2764_v38, %v2873_v39 }
 0x27e   :  { %v2752_v44 = vpop.f32.mrf.mxu2  ;;  %v2765_v45 = vpop.f32.mrf.mxu3  ;;  %3364 = vmatpush.bf16.msrb.mxu3 %v5225_v33  ;;  %v5721_v33 = vld [vmem:[#allocation19 + $0x38] sm:$0xff] }
 0x27f   :  { %v2881_v48 = vpack.c.bf16 %v2877_v43, %v2877_v43  ;;  %3515 = vmatpush.bf16.msra.mxu0 %v5721_v33 }
 0x281   :  { %3307 = vmatmul.bf16.vlgmr.msrb.gmra.mxu2 %v2881_v48 }
 0x282   :  { %3365 = vmatpush.bf16.msrb.mxu3 %v5217_v4 }
 0x286   :  { %3366 = vmatpush.bf16.msrb.mxu3 %v5209_v8 }
 0x28a   :  { %v2776_v54 = vpop.f32.mrf.mxu0  ;;  %v2789_v55 = vpop.f32.mrf.mxu1  ;;  %3367 = vmatpush.bf16.msrb.mxu3 %v5201_v10  ;;  %v5727_v10 = vld [vmem:[#allocation19 + $0x68] sm:$0xff] }
 0x28b   :  { %v2777_v17 = vadd.f32 %v2776_v54, %v1170_v14  ;;  %v5722_v14 = vld [vmem:[#allocation19 + $0x40] sm:$0xff] }
 0x28d   :  { %v2790_v19 = vadd.f32 %v2789_v55, %v2777_v17  ;;  %v2950_v55 = vperm.slane %v2947_v31, 1 }
 0x28e   :  { %3368 = vmatpush.bf16.msrb.mxu3 %v5193_v15  ;;  %v5737_v15 = vld [vmem:[#allocation20 + $0x38] sm:$0xff] }
 0x28f   :  { %3612 = vmatpush.bf16.msrb.mxu2 %v5737_v15 }
 0x291   :  { %3359 = vmatmul.bf16.vlgmr.msra.gmra.mxu2 %v2881_v48  ;;  %v2949_v48 = vperm.slane %v2947_v31, 0 }
 0x292   :  { %v2778_v1 = vpop.f32.mrf.mxu0  ;;  %v2791_v34 = vpop.f32.mrf.mxu1  ;;  %3369 = vmatpush.bf16.msrb.mxu3 %v5185_v16 }
 0x293   :  { %v5729_v1 = vld [vmem:[#allocation19 + $0x78] sm:$0xff]  ;;  %v5720_v34 = vld [vmem:[#allocation19 + $0x30] sm:$0xff]  ;;  %3613 = vmatpush.bf16.msrb.mxu2 %v5736_v58 }
 0x294   :  { %3528 = vmatpush.bf16.msrb.mxu1 %v5729_v1  ;;  %3516 = vmatpush.bf16.msra.mxu0 %v5720_v34 }
 0x296   :  { %v2802_v5 = vpop.f32.mrf.mxu2  ;;  %v2815_v6 = vpop.f32.mrf.mxu3  ;;  %3370 = vmatpush.bf16.msrb.mxu3 %v5177_v22 }
 0x297   :  { %v2803_v24 = vadd.f32 %v2802_v5, %v2790_v19  ;;  %v5718_v5 = vld [vmem:[#allocation19 + $0x20] sm:$0xff] }
 0x298   :  { %3529 = vmatpush.bf16.msrb.mxu1 %v5728_v2  ;;  %3517 = vmatpush.bf16.msra.mxu0 %v5719_v3 }
 0x299   :  { %v2816_v28 = vadd.f32 %v2815_v6, %v2803_v24  ;;  %v5717_v6 = vld [vmem:[#allocation19 + $0x18] sm:$0xff] }
 0x29a   :  { %3371 = vmatpush.bf16.msrb.mxu3 %v5169_v27 }
 0x29c   :  { %3518 = vmatpush.bf16.msra.mxu0 %v5718_v5  ;;  %3530 = vmatpush.bf16.msrb.mxu1 %v5727_v10 }
 0x29e   :  { %v2804_v23 = vpop.f32.mrf.mxu2  ;;  %v2817_v21 = vpop.f32.mrf.mxu3 }
 0x29f   :  { %v5714_v23 = vld [vmem:[#allocation19] sm:$0xff] }
 0x2a0   :  { %3519 = vmatpush.bf16.msra.mxu0 %v5717_v6  ;;  %v5726_v21 = vld [vmem:[#allocation19 + $0x60] sm:$0xff] }
 0x2a1   :  { %3531 = vmatpush.bf16.msrb.mxu1 %v5726_v21 }
 0x2a4   :  { %3520 = vmatpush.bf16.msra.mxu0 %v5716_v40 }
 0x2a5   :  { %3532 = vmatpush.bf16.msrb.mxu1 %v5725_v11 }
 0x2a8   :  { %3521 = vmatpush.bf16.msra.mxu0 %v5715_v46 }
 0x2a9   :  { %3533 = vmatpush.bf16.msrb.mxu1 %v5724_v12 }
 0x2aa   :  { %v2828_v20 = vpop.f32.mrf.mxu0  ;;  %v2841_v47 = vpop.f32.mrf.mxu1 }
 0x2ab   :  { %v2829_v29 = vadd.f32 %v2828_v20, %v2816_v28 }
 0x2ac   :  { %3522 = vmatpush.bf16.msra.mxu0 %v5714_v23 }
 0x2ad   :  { %v2842_v38 = vadd.f32 %v2841_v47, %v2829_v29  ;;  %3534 = vmatpush.bf16.msrb.mxu1 %v5723_v13  ;;  %v5735_v29 = vld [vmem:[#allocation20 + $0x28] sm:$0xff] }
 0x2ae   :  { %3614 = vmatpush.bf16.msrb.mxu2 %v5735_v29 }
 0x2b1   :  { %3535 = vmatpush.bf16.msrb.mxu1 %v5722_v14 }
 0x2b2   :  { %v2830_v36 = vpop.f32.mrf.mxu0  ;;  %v2843_v37 = vpop.f32.mrf.mxu1 }
 0x2b3   :  { %v5734_v36 = vld [vmem:[#allocation20 + $0x20] sm:$0xff]  ;;  %v5733_v37 = vld [vmem:[#allocation20 + $0x18] sm:$0xff] }
 0x2b4   :  { %3615 = vmatpush.bf16.msrb.mxu2 %v5734_v36 }
 0x2b6   :  { %v2854_v39 = vpop.f32.mrf.mxu2  ;;  %v2867_v59 = vpop.f32.mrf.mxu3 }
 0x2b7   :  { %v2855_v30 = vadd.f32 %v2854_v39, %v2842_v38  ;;  %v5732_v38 = vld [vmem:[#allocation20 + $0x10] sm:$0xff]  ;;  %v5731_v39 = vld [vmem:[#allocation20 + $0x8] sm:$0xff] }
 0x2b8   :  { %3616 = vmatpush.bf16.msrb.mxu2 %v5733_v37 }
 0x2b9   :  { %v2868_v35 = vadd.f32 %v2867_v59, %v2855_v30  ;;  %v5730_v59 = vld [vmem:[#allocation20] sm:$0xff] }
 0x2bb   :  { %v2874_v41 = vmul.f32 0.01, %v2868_v35 }
 0x2bc   :  { %3617 = vmatpush.bf16.msrb.mxu2 %v5732_v38 }
 0x2bd   :  { %v2878_v42 = vmax.f32 %v2868_v35, %v2874_v41  ;;  %v5760_v41 = vld [vmem:[%s6408_s13] ss:$0 sm:$0xff] }
 0x2be   :  { %v2856_v43 = vpop.f32.mrf.mxu2  ;;  %v2869_v44 = vpop.f32.mrf.mxu3 }
 0x2bf   :  { %v2882_v45 = vpack.c.bf16 %v2878_v42, %v2878_v42 }
 0x2c0   :  { %3618 = vmatpush.bf16.msrb.mxu2 %v5731_v39 }
 0x2c1   :  { %3320 = vmatmul.bf16.vlgmr.msra.gmra.mxu3 %v2882_v45 }
 0x2c4   :  { %3619 = vmatpush.bf16.msrb.mxu2 %v5730_v59 }
 0x2ca   :  { %v3282_v63 = vpop.f32.mrf.mxu0  ;;  %v3295_v52 = vpop.f32.mrf.mxu1 }
 0x2cb   :  { %v3283_v61 = vadd.f32 %v3282_v63, %v2949_v48 }
 0x2cd   :  { %v3296_v51 = vadd.f32 %v3295_v52, %v3283_v61  ;;  %v5761_v52 = vld [vmem:[%s6410_s15] ss:$0 sm:$0xff] }
 0x2d1   :  { %3372 = vmatmul.bf16.vlgmr.msrb.gmra.mxu3 %v2882_v45 }
 0x2d2   :  { %v3284_v62 = vpop.f32.mrf.mxu0  ;;  %v3297_v54 = vpop.f32.mrf.mxu1 }
 0x2ea   :  { %v3334_v56 = vpop.f32.mrf.mxu0  ;;  %v3347_v57 = vpop.f32.mrf.mxu1 }
 0x2eb   :  { %v3335_v0 = vadd.f32 %v3334_v56, %v2950_v55 }
 0x2ed   :  { %v3348_v60 = vadd.f32 %v3347_v57, %v3335_v0 }
 0x2f2   :  { %v3336_v32 = vpop.f32.mrf.mxu0  ;;  %v3349_v50 = vpop.f32.mrf.mxu1 }
 0x304   :  { %v3308_v4 = vpop.f32.mrf.mxu2 }
 0x305   :  { %v3309_v49 = vadd.f32 %v3308_v4, %v3296_v51 }
 0x30c   :  { %v3310_v7 = vpop.f32.mrf.mxu2 }
 0x314   :  { %v3360_v8 = vpop.f32.mrf.mxu2 }
 0x315   :  { %v3361_v20 = vadd.f32 %v3360_v8, %v3348_v60 }
 0x31c   :  { %v3362_v9 = vpop.f32.mrf.mxu2 }
 0x344   :  { %v3321_v16 = vpop.f32.mrf.mxu3 }
 0x345   :  { %v3322_v17 = vadd.f32 %v3321_v16, %v3309_v49 }
 0x347   :  { %v3377_v18 = vmul.f32 0.01, %v3322_v17 }
 0x349   :  { %v3379_v53 = vmax.f32 %v3322_v17, %v3377_v18 }
 0x34b   :  { %v3381_v19 = vpack.c.bf16 %v3379_v53, %v3379_v53 }
 0x34c   :  { %v3323_v22 = vpop.f32.mrf.mxu3 }
 0x34d   :  { %3523 = vmatmul.bf16.vlgmr.msra.gmra.mxu0 %v3381_v19 }
 0x354   :  { %v3373_v47 = vpop.f32.mrf.mxu3 }
 0x355   :  { %v3374_v24 = vadd.f32 %v3373_v47, %v3361_v20 }
 0x357   :  { %v3378_v25 = vmul.f32 0.01, %v3374_v24 }
 0x359   :  { %v3380_v26 = vmax.f32 %v3374_v24, %v3378_v25 }
 0x35b   :  { %v3382_v27 = vpack.c.bf16 %v3380_v26, %v3380_v26 }
 0x35c   :  { %v3375_v28 = vpop.f32.mrf.mxu3 }
 0x35d   :  { %3536 = vmatmul.bf16.vlgmr.msrb.gmra.mxu1 %v3382_v27 }
 0x3ca   :  { %v3524_v30 = vpop.f32.mrf.mxu0 }
 0x3cb   :  { %v3525_v42 = vadd.f32 %v5760_v41, %v3524_v30 }
 0x3d2   :  { %v3526_v35 = vpop.f32.mrf.mxu0 }
 0x3da   :  { %v3537_v43 = vpop.f32.mrf.mxu1 }
 0x3db   :  { %v3538_v44 = vadd.f32 %v3537_v43, %v3525_v42 }
 0x3dd   :  { %v3541_v45 = vmul.f32 0.01, %v3538_v44 }
 0x3df   :  { %v3542_v31 = vmax.f32 %v3538_v44, %v3541_v45 }
 0x3e1   :  { %v3543_v48 = vpack.c.bf16 %v3542_v31, %v3542_v31  ;;  %3625 = vst [vmem:[#allocation22] sm:$0xff] %v3542_v31 }
 0x3e2   :  { %v3539_v63 = vpop.f32.mrf.mxu1  ;;  %3637 = dma.vmem_to_hbm [thread:$0]  %s3633_s23, 128, %s3635_s26, [#allocation4]  }
 0x3e3   :  { %3620 = vmatmul.bf16.vlgmr.msrb.gmra.mxu2 %v3543_v48 }
 0x466   :  { %v3621_v61 = vpop.f32.mrf.mxu2 }
 0x467   :  { %v3622_v51 = vadd.f32 %v5761_v52, %v3621_v61 }
 0x469   :  { %3626 = vst [vmem:[%s6412_s17] sm:$0xff] %v3622_v51 }
 0x46e   :  { %v3623_v62 = vpop.f32.mrf.mxu2 }
 0x46f   :  { %6089 = dma.done.wait [#allocation4], 128  }
 0x470   :  { %6090 = vsyncadd [#allocation4], 4294967168 }
 0x471   :  { %3646 = vsyncpa [#allocation3], 1 }
 0x472   :  { %3647 = vsyncpa [#allocation6], 1 }
 0x473   :  { %3648 = vsyncpa [#allocation9], 1 }
 0x474   :  { %3649 = vsyncpa [#allocation12], 1 }
 0x475   :  { %3650 = vsyncpa [#allocation15], 1 }
 0x476   :  { %3651 = vsyncpa [#allocation18], 1 }
 0x477   :  { %3652 = vsyncpa [#allocation21], 1 }
 0x478   :  { %3653 = vsyncpa [#allocation4], 1 }

</bundles_post_ra>
